<compile_context>
chip_gen: v7x
topology: tpu7x:2x2x1
jax: 0.10.0
libtpu: 0.0.40
codegen_flags: <defaults>
</compile_context>

<pallas_src>
import functools

import jax
import jax.numpy as jnp
from jax import lax
from jax.experimental import pallas as pl
from jax.experimental.pallas import tpu as pltpu


# ---------------------------------------------------------------------------
# Kernel
# ---------------------------------------------------------------------------
def _pinn_mlp_kernel(num_linear, in_dim, out_dim, chunk,
                     x_ref, w_ref, b_ref, out_ref):
    """Feature-major MLP over one batch tile, walked in lane chunks.

    x_ref:   (in_dim, tile_n)   input slab, batch on lanes
    w_ref:   (L, D, D)          zero-padded weight slab (PyTorch (out, in) layout)
    b_ref:   (L, D, 1)          zero-padded bias slab (broadcasts along lanes)
    out_ref: (out_dim, tile_n)  lane-dense output slab
    """
    tile_n = x_ref.shape[-1]
    num_chunks = tile_n // chunk

    def one_chunk(start):
        x = x_ref[:, pl.ds(start, chunk)]          # (in_dim, chunk), f32

        # ---- Layer 0: K = in_dim (tiny) -> broadcasted VPU FMAs, no MXU underfill.
        w0 = w_ref[0]                              # (D, D); cols >= in_dim are zero
        h = w0[:, 0:1] * x[0:1, :]                 # (D, chunk)
        for k in range(1, in_dim):
            h = h + w0[:, k:k + 1] * x[k:k + 1, :]
        h = jnp.tanh(h + b_ref[0])                 # padded rows stay exactly 0

        # ---- Hidden layers + output layer on the MXU (f32 accumulation).
        for li in range(1, num_linear):
            h = jnp.dot(w_ref[li], h, preferred_element_type=jnp.float32) + b_ref[li]
            if li < num_linear - 1:                # Tanh after every layer but the last
                h = jnp.tanh(h)

        out_ref[:, pl.ds(start, chunk)] = h[:out_dim, :].astype(out_ref.dtype)

    if num_chunks == 1:
        one_chunk(0)
    else:
        def body(c, carry):
            one_chunk(pl.multiple_of(c * chunk, chunk))
            return carry
        # Unroll short chunk loops for LLO scheduler visibility; keep long ones rolled.
        lax.fori_loop(0, num_chunks, body, 0, unroll=(num_chunks <= 8))


# ---------------------------------------------------------------------------
# Parameter packing (done once, outside the hot path)
# ---------------------------------------------------------------------------
def pack_pinn1d_params(params):
    """Pack PyTorch-layout (W, b) pairs into two zero-padded contiguous slabs."""
    num_linear = len(params)
    assert num_linear >= 2, "PINN1D has at least two Linear layers"
    in_dim = params[0][0].shape[1]
    out_dim = params[-1][0].shape[0]
    hidden = params[0][0].shape[0]
    d = max(hidden, in_dim, out_dim)
    d = -(-d // 8) * 8                                   # sublane-aligned pad width

    w_slab = jnp.zeros((num_linear, d, d), jnp.float32)
    b_slab = jnp.zeros((num_linear, d, 1), jnp.float32)
    for li, (w, b) in enumerate(params):
        o, i = w.shape
        w_slab = w_slab.at[li, :o, :i].set(w.astype(jnp.float32))
        b_slab = b_slab.at[li, :o, :].set(b.astype(jnp.float32).reshape(o, 1))

    return {"w": w_slab, "b": b_slab, "num_linear": num_linear,
            "in_dim": in_dim, "out_dim": out_dim, "padded_dim": d}


# ---------------------------------------------------------------------------
# Generation-aware tiling helpers
# ---------------------------------------------------------------------------
def _tensorcores_per_device():
    """Best-effort TensorCores-per-device (v5e/v6e = 1; v4/v5p/v7x = 2)."""
    try:
        kind = jax.devices()[0].device_kind.lower()
        if "v6" in kind or "v5 lite" in kind or "v5e" in kind or "v5lite" in kind:
            return 1
        if "v5p" in kind or "v5" in kind or "v4" in kind or "7" in kind:
            return 2
    except Exception:
        pass
    return 1


def _choose_tile_n(n, num_cores, tile_cap=16384):
    """Pick the lane-axis batch tile: few large steps, step count a multiple of
    the TC count (even on v7x).  Falls back to a single full-batch tile for
    ragged N (block dim == full array dim is always legal)."""
    if num_cores <= 1 and n <= tile_cap:
        return n
    steps = max(num_cores, -(-n // tile_cap))
    steps = -(-steps // num_cores) * num_cores
    for s in range(steps, min(n, steps + 4096) + 1, num_cores):
        if n % s == 0:
            t = n // s
            if t % 128 == 0:
                return t
    return n


def _choose_chunk(tile_n, chunk_cap=512):
    """Largest lane chunk in {512, 256, 128} that divides tile_n, else the tile."""
    for cand in (512, 256, 128):
        if cand <= chunk_cap and cand <= tile_n and tile_n % cand == 0:
            return cand
    return tile_n


# ---------------------------------------------------------------------------
# Forward wrappers
# ---------------------------------------------------------------------------
def pinn1d_forward_fm(x_fm, packed, *, tile_cap=16384):
    """PINN1D forward on feature-major input.

    Args:
      x_fm:   (3, N) float32 input (batch on the lane axis).
      packed: output of pack_pinn1d_params.
    Returns:
      (2, N) float32 output (feature-major).
    """
    in_dim, n = x_fm.shape
    assert in_dim == packed["in_dim"]
    out_dim = packed["out_dim"]

    num_cores = _tensorcores_per_device()
    tile_n = _choose_tile_n(n, num_cores, tile_cap)
    assert n % tile_n == 0
    chunk = _choose_chunk(tile_n)

    kernel = functools.partial(_pinn_mlp_kernel, packed["num_linear"],
                               in_dim, out_dim, chunk)

    return pl.pallas_call(
        kernel,
        out_shape=jax.ShapeDtypeStruct((out_dim, n), jnp.float32),
        grid_spec=pltpu.PrefetchScalarGridSpec(
            num_scalar_prefetch=0,
            grid=(n // tile_n,),
            in_specs=[
                pl.BlockSpec((in_dim, tile_n), lambda i: (0, i)),
                # Parameter slabs: full blocks, constant index_map -> resident.
                pl.BlockSpec(packed["w"].shape, lambda i: (0, 0, 0)),
                pl.BlockSpec(packed["b"].shape, lambda i: (0, 0, 0)),
            ],
            out_specs=pl.BlockSpec((out_dim, tile_n), lambda i: (0, i)),
        ),
        compiler_params=pltpu.CompilerParams(
            dimension_semantics=("parallel",)),
    )(x_fm, packed["w"], packed["b"])


def pinn1d_forward(x, packed, *, tile_cap=16384):
    """PyTorch-layout convenience wrapper: (N, 3) -> (N, 2).

    Prefer pinn1d_forward_fm in hot paths to avoid the two transposes."""
    return pinn1d_forward_fm(x.T, packed, tile_cap=tile_cap).T


# ---------------------------------------------------------------------------
# Init + reference
# ---------------------------------------------------------------------------
def init_pinn1d_params(key, num_layers, num_neurons):
    """Matches PyTorch nn.Linear default init (uniform +-1/sqrt(fan_in)).
    Weights in (out, in) layout, biases shaped (out, 1)."""
    dims = [3] + [num_neurons] * (num_layers - 1) + [2]
    params = []
    for li in range(num_layers):
        fan_in, fan_out = dims[li], dims[li + 1]
        key, kw, kb = jax.random.split(key, 3)
        bound = 1.0 / jnp.sqrt(float(fan_in))
        w = jax.random.uniform(kw, (fan_out, fan_in), jnp.float32, -bound, bound)
        b = jax.random.uniform(kb, (fan_out, 1), jnp.float32, -bound, bound)
        params.append((w, b))
    return params


def pinn1d_reference(x, params):
    """Pure-JAX reference with PyTorch semantics: h = h @ W.T + b."""
    h = x
    for li, (w, b) in enumerate(params):
        h = h @ w.T + b.T
        if li < len(params) - 1:
            h = jnp.tanh(h)
    return h


# ---------------------------------------------------------------------------
if __name__ == "__main__":
    num_layers = 4     # total Linear layers: Linear(3,H), 2x Linear(H,H), Linear(H,2)
    num_neurons = 32   # hidden width H
    N = 2048           # collocation points; each point = (x, t, extra) -> 3 features

    key = jax.random.PRNGKey(0)
    key, kx = jax.random.split(key)
    # Generate collocation points directly feature-major (3, N): no wrapper transpose.
    x_fm = jax.random.normal(kx, (3, N), jnp.float32)

    params = init_pinn1d_params(key, num_layers, num_neurons)
    packed = pack_pinn1d_params(params)   # one-time packing into two slabs

    out_fm = pinn1d_forward_fm(x_fm, packed)
    out_fm = jax.block_until_ready(out_fm)

    ref = pinn1d_reference(x_fm.T, params)   # PyTorch-layout reference
    assert out_fm.shape == (2, N)
    assert jnp.allclose(out_fm.T, ref, atol=1e-5, rtol=1e-5), "mismatch vs reference"

    print("KERNEL_OK")
</pallas_src>

<mosaic_0001>
module attributes {stable_mosaic.version = 11 : i64} {
  func.func @_pinn_mlp_kernel(%arg0: i32, %arg1: memref<3x2048xf32, #tpu.memory_space<vmem>>, %arg2: memref<4x32x32xf32, #tpu.memory_space<vmem>>, %arg3: memref<4x32x1xf32, #tpu.memory_space<vmem>>, %arg4: memref<2x2048xf32, #tpu.memory_space<vmem>>) attributes {dimension_semantics = [#tpu.dimension_semantics<parallel>], iteration_bounds = array<i64: 1>, scalar_prefetch = 0 : i64, scratch_operands = 0 : i64, tpu.core_type = #tpu.core_type<tc>, window_params = [{transform_indices = @transform_0, window_bounds = array<i64: 3, 2048>}, {pipeline_mode = #tpu.pipeline_mode<synchronous>, transform_indices = @transform_1, window_bounds = array<i64: 4, 32, 32>}, {pipeline_mode = #tpu.pipeline_mode<synchronous>, transform_indices = @transform_2, window_bounds = array<i64: 4, 32, 1>}, {transform_indices = @transform_3, window_bounds = array<i64: 2, 2048>}]} {
    %c0_i32 = arith.constant 0 : i32
    %c512_i32 = arith.constant 512 : i32
    %0 = arith.muli %c0_i32, %c512_i32 : i32
    %1 = tpu.assume_multiple %0, 512 : i32
    %c0 = arith.constant 0 : index
    %2 = arith.index_cast %1 : i32 to index
    %3 = vector.load %arg1[%c0, %2] : memref<3x2048xf32, #tpu.memory_space<vmem>>, vector<3x512xf32>
    %c0_0 = arith.constant 0 : index
    %c0_1 = arith.constant 0 : index
    %c0_2 = arith.constant 0 : index
    %4 = vector.load %arg2[%c0_0, %c0_1, %c0_2] : memref<4x32x32xf32, #tpu.memory_space<vmem>>, vector<1x32x32xf32>
    %5 = vector.shape_cast %4 : vector<1x32x32xf32> to vector<32x32xf32>
    %6 = vector.extract_strided_slice %5 {offsets = [0, 0], sizes = [32, 1], strides = [1, 1]} : vector<32x32xf32> to vector<32x1xf32>
    %7 = vector.extract_strided_slice %3 {offsets = [0, 0], sizes = [1, 512], strides = [1, 1]} : vector<3x512xf32> to vector<1x512xf32>
    %8 = vector.broadcast %6 : vector<32x1xf32> to vector<32x512xf32>
    %9 = vector.broadcast %7 : vector<1x512xf32> to vector<32x512xf32>
    %10 = arith.mulf %8, %9 : vector<32x512xf32>
    %11 = vector.extract_strided_slice %5 {offsets = [0, 1], sizes = [32, 1], strides = [1, 1]} : vector<32x32xf32> to vector<32x1xf32>
    %12 = vector.extract_strided_slice %3 {offsets = [1, 0], sizes = [1, 512], strides = [1, 1]} : vector<3x512xf32> to vector<1x512xf32>
    %13 = vector.broadcast %11 : vector<32x1xf32> to vector<32x512xf32>
    %14 = vector.broadcast %12 : vector<1x512xf32> to vector<32x512xf32>
    %15 = arith.mulf %13, %14 : vector<32x512xf32>
    %16 = arith.addf %10, %15 : vector<32x512xf32>
    %17 = vector.extract_strided_slice %5 {offsets = [0, 2], sizes = [32, 1], strides = [1, 1]} : vector<32x32xf32> to vector<32x1xf32>
    %18 = vector.extract_strided_slice %3 {offsets = [2, 0], sizes = [1, 512], strides = [1, 1]} : vector<3x512xf32> to vector<1x512xf32>
    %19 = vector.broadcast %17 : vector<32x1xf32> to vector<32x512xf32>
    %20 = vector.broadcast %18 : vector<1x512xf32> to vector<32x512xf32>
    %21 = arith.mulf %19, %20 : vector<32x512xf32>
    %22 = arith.addf %16, %21 : vector<32x512xf32>
    %c0_3 = arith.constant 0 : index
    %c0_4 = arith.constant 0 : index
    %c0_5 = arith.constant 0 : index
    %23 = vector.load %arg3[%c0_3, %c0_4, %c0_5] : memref<4x32x1xf32, #tpu.memory_space<vmem>>, vector<1x32x1xf32>
    %24 = vector.shape_cast %23 : vector<1x32x1xf32> to vector<32x1xf32>
    %25 = vector.broadcast %24 : vector<32x1xf32> to vector<32x512xf32>
    %26 = arith.addf %22, %25 : vector<32x512xf32>
    %27 = math.tanh %26 : vector<32x512xf32>
    %c1 = arith.constant 1 : index
    %c0_6 = arith.constant 0 : index
    %c0_7 = arith.constant 0 : index
    %28 = vector.load %arg2[%c1, %c0_6, %c0_7] : memref<4x32x32xf32, #tpu.memory_space<vmem>>, vector<1x32x32xf32>
    %29 = vector.shape_cast %28 : vector<1x32x32xf32> to vector<32x32xf32>
    %cst = arith.constant dense<0.000000e+00> : vector<32x512xf32>
    %30 = tpu.matmul %29, %27, %cst {dimension_numbers = #tpu.dot_dimension_numbers<[1], [0], [0], [1], [0, 0, 1, 1], [], []>} : vector<32x32xf32>, vector<32x512xf32>, vector<32x512xf32> -> vector<32x512xf32>
    %c1_8 = arith.constant 1 : index
    %c0_9 = arith.constant 0 : index
    %c0_10 = arith.constant 0 : index
    %31 = vector.load %arg3[%c1_8, %c0_9, %c0_10] : memref<4x32x1xf32, #tpu.memory_space<vmem>>, vector<1x32x1xf32>
    %32 = vector.shape_cast %31 : vector<1x32x1xf32> to vector<32x1xf32>
    %33 = vector.broadcast %32 : vector<32x1xf32> to vector<32x512xf32>
    %34 = arith.addf %30, %33 : vector<32x512xf32>
    %35 = math.tanh %34 : vector<32x512xf32>
    %c2 = arith.constant 2 : index
    %c0_11 = arith.constant 0 : index
    %c0_12 = arith.constant 0 : index
    %36 = vector.load %arg2[%c2, %c0_11, %c0_12] : memref<4x32x32xf32, #tpu.memory_space<vmem>>, vector<1x32x32xf32>
    %37 = vector.shape_cast %36 : vector<1x32x32xf32> to vector<32x32xf32>
    %cst_13 = arith.constant dense<0.000000e+00> : vector<32x512xf32>
    %38 = tpu.matmul %37, %35, %cst_13 {dimension_numbers = #tpu.dot_dimension_numbers<[1], [0], [0], [1], [0, 0, 1, 1], [], []>} : vector<32x32xf32>, vector<32x512xf32>, vector<32x512xf32> -> vector<32x512xf32>
    %c2_14 = arith.constant 2 : index
    %c0_15 = arith.constant 0 : index
    %c0_16 = arith.constant 0 : index
    %39 = vector.load %arg3[%c2_14, %c0_15, %c0_16] : memref<4x32x1xf32, #tpu.memory_space<vmem>>, vector<1x32x1xf32>
    %40 = vector.shape_cast %39 : vector<1x32x1xf32> to vector<32x1xf32>
    %41 = vector.broadcast %40 : vector<32x1xf32> to vector<32x512xf32>
    %42 = arith.addf %38, %41 : vector<32x512xf32>
    %43 = math.tanh %42 : vector<32x512xf32>
    %c3 = arith.constant 3 : index
    %c0_17 = arith.constant 0 : index
    %c0_18 = arith.constant 0 : index
    %44 = vector.load %arg2[%c3, %c0_17, %c0_18] : memref<4x32x32xf32, #tpu.memory_space<vmem>>, vector<1x32x32xf32>
    %45 = vector.shape_cast %44 : vector<1x32x32xf32> to vector<32x32xf32>
    %cst_19 = arith.constant dense<0.000000e+00> : vector<32x512xf32>
    %46 = tpu.matmul %45, %43, %cst_19 {dimension_numbers = #tpu.dot_dimension_numbers<[1], [0], [0], [1], [0, 0, 1, 1], [], []>} : vector<32x32xf32>, vector<32x512xf32>, vector<32x512xf32> -> vector<32x512xf32>
    %c3_20 = arith.constant 3 : index
    %c0_21 = arith.constant 0 : index
    %c0_22 = arith.constant 0 : index
    %47 = vector.load %arg3[%c3_20, %c0_21, %c0_22] : memref<4x32x1xf32, #tpu.memory_space<vmem>>, vector<1x32x1xf32>
    %48 = vector.shape_cast %47 : vector<1x32x1xf32> to vector<32x1xf32>
    %49 = vector.broadcast %48 : vector<32x1xf32> to vector<32x512xf32>
    %50 = arith.addf %46, %49 : vector<32x512xf32>
    %51 = vector.extract_strided_slice %50 {offsets = [0, 0], sizes = [2, 512], strides = [1, 1]} : vector<32x512xf32> to vector<2x512xf32>
    %c0_23 = arith.constant 0 : index
    %52 = arith.index_cast %1 : i32 to index
    %53 = vector.load %arg4[%c0_23, %52] : memref<2x2048xf32, #tpu.memory_space<vmem>>, vector<2x512xf32>
    tpu.vector_store %arg4[%c0_23, %52], %51 {strides = array<i32>} : memref<2x2048xf32, #tpu.memory_space<vmem>>, vector<2x512xf32>,
    %c1_i32 = arith.constant 1 : i32
    %c512_i32_24 = arith.constant 512 : i32
    %54 = arith.muli %c1_i32, %c512_i32_24 : i32
    %55 = tpu.assume_multiple %54, 512 : i32
    %c0_25 = arith.constant 0 : index
    %56 = arith.index_cast %55 : i32 to index
    %57 = vector.load %arg1[%c0_25, %56] : memref<3x2048xf32, #tpu.memory_space<vmem>>, vector<3x512xf32>
    %c0_26 = arith.constant 0 : index
    %c0_27 = arith.constant 0 : index
    %c0_28 = arith.constant 0 : index
    %58 = vector.load %arg2[%c0_26, %c0_27, %c0_28] : memref<4x32x32xf32, #tpu.memory_space<vmem>>, vector<1x32x32xf32>
    %59 = vector.shape_cast %58 : vector<1x32x32xf32> to vector<32x32xf32>
    %60 = vector.extract_strided_slice %59 {offsets = [0, 0], sizes = [32, 1], strides = [1, 1]} : vector<32x32xf32> to vector<32x1xf32>
    %61 = vector.extract_strided_slice %57 {offsets = [0, 0], sizes = [1, 512], strides = [1, 1]} : vector<3x512xf32> to vector<1x512xf32>
    %62 = vector.broadcast %60 : vector<32x1xf32> to vector<32x512xf32>
    %63 = vector.broadcast %61 : vector<1x512xf32> to vector<32x512xf32>
    %64 = arith.mulf %62, %63 : vector<32x512xf32>
    %65 = vector.extract_strided_slice %59 {offsets = [0, 1], sizes = [32, 1], strides = [1, 1]} : vector<32x32xf32> to vector<32x1xf32>
    %66 = vector.extract_strided_slice %57 {offsets = [1, 0], sizes = [1, 512], strides = [1, 1]} : vector<3x512xf32> to vector<1x512xf32>
    %67 = vector.broadcast %65 : vector<32x1xf32> to vector<32x512xf32>
    %68 = vector.broadcast %66 : vector<1x512xf32> to vector<32x512xf32>
    %69 = arith.mulf %67, %68 : vector<32x512xf32>
    %70 = arith.addf %64, %69 : vector<32x512xf32>
    %71 = vector.extract_strided_slice %59 {offsets = [0, 2], sizes = [32, 1], strides = [1, 1]} : vector<32x32xf32> to vector<32x1xf32>
    %72 = vector.extract_strided_slice %57 {offsets = [2, 0], sizes = [1, 512], strides = [1, 1]} : vector<3x512xf32> to vector<1x512xf32>
    %73 = vector.broadcast %71 : vector<32x1xf32> to vector<32x512xf32>
    %74 = vector.broadcast %72 : vector<1x512xf32> to vector<32x512xf32>
    %75 = arith.mulf %73, %74 : vector<32x512xf32>
    %76 = arith.addf %70, %75 : vector<32x512xf32>
    %c0_29 = arith.constant 0 : index
    %c0_30 = arith.constant 0 : index
    %c0_31 = arith.constant 0 : index
    %77 = vector.load %arg3[%c0_29, %c0_30, %c0_31] : memref<4x32x1xf32, #tpu.memory_space<vmem>>, vector<1x32x1xf32>
    %78 = vector.shape_cast %77 : vector<1x32x1xf32> to vector<32x1xf32>
    %79 = vector.broadcast %78 : vector<32x1xf32> to vector<32x512xf32>
    %80 = arith.addf %76, %79 : vector<32x512xf32>
    %81 = math.tanh %80 : vector<32x512xf32>
    %c1_32 = arith.constant 1 : index
    %c0_33 = arith.constant 0 : index
    %c0_34 = arith.constant 0 : index
    %82 = vector.load %arg2[%c1_32, %c0_33, %c0_34] : memref<4x32x32xf32, #tpu.memory_space<vmem>>, vector<1x32x32xf32>
    %83 = vector.shape_cast %82 : vector<1x32x32xf32> to vector<32x32xf32>
    %cst_35 = arith.constant dense<0.000000e+00> : vector<32x512xf32>
    %84 = tpu.matmul %83, %81, %cst_35 {dimension_numbers = #tpu.dot_dimension_numbers<[1], [0], [0], [1], [0, 0, 1, 1], [], []>} : vector<32x32xf32>, vector<32x512xf32>, vector<32x512xf32> -> vector<32x512xf32>
    %c1_36 = arith.constant 1 : index
    %c0_37 = arith.constant 0 : index
    %c0_38 = arith.constant 0 : index
    %85 = vector.load %arg3[%c1_36, %c0_37, %c0_38] : memref<4x32x1xf32, #tpu.memory_space<vmem>>, vector<1x32x1xf32>
    %86 = vector.shape_cast %85 : vector<1x32x1xf32> to vector<32x1xf32>
    %87 = vector.broadcast %86 : vector<32x1xf32> to vector<32x512xf32>
    %88 = arith.addf %84, %87 : vector<32x512xf32>
    %89 = math.tanh %88 : vector<32x512xf32>
    %c2_39 = arith.constant 2 : index
    %c0_40 = arith.constant 0 : index
    %c0_41 = arith.constant 0 : index
    %90 = vector.load %arg2[%c2_39, %c0_40, %c0_41] : memref<4x32x32xf32, #tpu.memory_space<vmem>>, vector<1x32x32xf32>
    %91 = vector.shape_cast %90 : vector<1x32x32xf32> to vector<32x32xf32>
    %cst_42 = arith.constant dense<0.000000e+00> : vector<32x512xf32>
    %92 = tpu.matmul %91, %89, %cst_42 {dimension_numbers = #tpu.dot_dimension_numbers<[1], [0], [0], [1], [0, 0, 1, 1], [], []>} : vector<32x32xf32>, vector<32x512xf32>, vector<32x512xf32> -> vector<32x512xf32>
    %c2_43 = arith.constant 2 : index
    %c0_44 = arith.constant 0 : index
    %c0_45 = arith.constant 0 : index
    %93 = vector.load %arg3[%c2_43, %c0_44, %c0_45] : memref<4x32x1xf32, #tpu.memory_space<vmem>>, vector<1x32x1xf32>
    %94 = vector.shape_cast %93 : vector<1x32x1xf32> to vector<32x1xf32>
    %95 = vector.broadcast %94 : vector<32x1xf32> to vector<32x512xf32>
    %96 = arith.addf %92, %95 : vector<32x512xf32>
    %97 = math.tanh %96 : vector<32x512xf32>
    %c3_46 = arith.constant 3 : index
    %c0_47 = arith.constant 0 : index
    %c0_48 = arith.constant 0 : index
    %98 = vector.load %arg2[%c3_46, %c0_47, %c0_48] : memref<4x32x32xf32, #tpu.memory_space<vmem>>, vector<1x32x32xf32>
    %99 = vector.shape_cast %98 : vector<1x32x32xf32> to vector<32x32xf32>
    %cst_49 = arith.constant dense<0.000000e+00> : vector<32x512xf32>
    %100 = tpu.matmul %99, %97, %cst_49 {dimension_numbers = #tpu.dot_dimension_numbers<[1], [0], [0], [1], [0, 0, 1, 1], [], []>} : vector<32x32xf32>, vector<32x512xf32>, vector<32x512xf32> -> vector<32x512xf32>
    %c3_50 = arith.constant 3 : index
    %c0_51 = arith.constant 0 : index
    %c0_52 = arith.constant 0 : index
    %101 = vector.load %arg3[%c3_50, %c0_51, %c0_52] : memref<4x32x1xf32, #tpu.memory_space<vmem>>, vector<1x32x1xf32>
    %102 = vector.shape_cast %101 : vector<1x32x1xf32> to vector<32x1xf32>
    %103 = vector.broadcast %102 : vector<32x1xf32> to vector<32x512xf32>
    %104 = arith.addf %100, %103 : vector<32x512xf32>
    %105 = vector.extract_strided_slice %104 {offsets = [0, 0], sizes = [2, 512], strides = [1, 1]} : vector<32x512xf32> to vector<2x512xf32>
    %c0_53 = arith.constant 0 : index
    %106 = arith.index_cast %55 : i32 to index
    %107 = vector.load %arg4[%c0_53, %106] : memref<2x2048xf32, #tpu.memory_space<vmem>>, vector<2x512xf32>
    tpu.vector_store %arg4[%c0_53, %106], %105 {strides = array<i32>} : memref<2x2048xf32, #tpu.memory_space<vmem>>, vector<2x512xf32>,
    %c2_i32 = arith.constant 2 : i32
    %c512_i32_54 = arith.constant 512 : i32
    %108 = arith.muli %c2_i32, %c512_i32_54 : i32
    %109 = tpu.assume_multiple %108, 512 : i32
    %c0_55 = arith.constant 0 : index
    %110 = arith.index_cast %109 : i32 to index
    %111 = vector.load %arg1[%c0_55, %110] : memref<3x2048xf32, #tpu.memory_space<vmem>>, vector<3x512xf32>
    %c0_56 = arith.constant 0 : index
    %c0_57 = arith.constant 0 : index
    %c0_58 = arith.constant 0 : index
    %112 = vector.load %arg2[%c0_56, %c0_57, %c0_58] : memref<4x32x32xf32, #tpu.memory_space<vmem>>, vector<1x32x32xf32>
    %113 = vector.shape_cast %112 : vector<1x32x32xf32> to vector<32x32xf32>
    %114 = vector.extract_strided_slice %113 {offsets = [0, 0], sizes = [32, 1], strides = [1, 1]} : vector<32x32xf32> to vector<32x1xf32>
    %115 = vector.extract_strided_slice %111 {offsets = [0, 0], sizes = [1, 512], strides = [1, 1]} : vector<3x512xf32> to vector<1x512xf32>
    %116 = vector.broadcast %114 : vector<32x1xf32> to vector<32x512xf32>
    %117 = vector.broadcast %115 : vector<1x512xf32> to vector<32x512xf32>
    %118 = arith.mulf %116, %117 : vector<32x512xf32>
    %119 = vector.extract_strided_slice %113 {offsets = [0, 1], sizes = [32, 1], strides = [1, 1]} : vector<32x32xf32> to vector<32x1xf32>
    %120 = vector.extract_strided_slice %111 {offsets = [1, 0], sizes = [1, 512], strides = [1, 1]} : vector<3x512xf32> to vector<1x512xf32>
    %121 = vector.broadcast %119 : vector<32x1xf32> to vector<32x512xf32>
    %122 = vector.broadcast %120 : vector<1x512xf32> to vector<32x512xf32>
    %123 = arith.mulf %121, %122 : vector<32x512xf32>
    %124 = arith.addf %118, %123 : vector<32x512xf32>
    %125 = vector.extract_strided_slice %113 {offsets = [0, 2], sizes = [32, 1], strides = [1, 1]} : vector<32x32xf32> to vector<32x1xf32>
    %126 = vector.extract_strided_slice %111 {offsets = [2, 0], sizes = [1, 512], strides = [1, 1]} : vector<3x512xf32> to vector<1x512xf32>
    %127 = vector.broadcast %125 : vector<32x1xf32> to vector<32x512xf32>
    %128 = vector.broadcast %126 : vector<1x512xf32> to vector<32x512xf32>
    %129 = arith.mulf %127, %128 : vector<32x512xf32>
    %130 = arith.addf %124, %129 : vector<32x512xf32>
    %c0_59 = arith.constant 0 : index
    %c0_60 = arith.constant 0 : index
    %c0_61 = arith.constant 0 : index
    %131 = vector.load %arg3[%c0_59, %c0_60, %c0_61] : memref<4x32x1xf32, #tpu.memory_space<vmem>>, vector<1x32x1xf32>
    %132 = vector.shape_cast %131 : vector<1x32x1xf32> to vector<32x1xf32>
    %133 = vector.broadcast %132 : vector<32x1xf32> to vector<32x512xf32>
    %134 = arith.addf %130, %133 : vector<32x512xf32>
    %135 = math.tanh %134 : vector<32x512xf32>
    %c1_62 = arith.constant 1 : index
    %c0_63 = arith.constant 0 : index
    %c0_64 = arith.constant 0 : index
    %136 = vector.load %arg2[%c1_62, %c0_63, %c0_64] : memref<4x32x32xf32, #tpu.memory_space<vmem>>, vector<1x32x32xf32>
    %137 = vector.shape_cast %136 : vector<1x32x32xf32> to vector<32x32xf32>
    %cst_65 = arith.constant dense<0.000000e+00> : vector<32x512xf32>
    %138 = tpu.matmul %137, %135, %cst_65 {dimension_numbers = #tpu.dot_dimension_numbers<[1], [0], [0], [1], [0, 0, 1, 1], [], []>} : vector<32x32xf32>, vector<32x512xf32>, vector<32x512xf32> -> vector<32x512xf32>
    %c1_66 = arith.constant 1 : index
    %c0_67 = arith.constant 0 : index
    %c0_68 = arith.constant 0 : index
    %139 = vector.load %arg3[%c1_66, %c0_67, %c0_68] : memref<4x32x1xf32, #tpu.memory_space<vmem>>, vector<1x32x1xf32>
    %140 = vector.shape_cast %139 : vector<1x32x1xf32> to vector<32x1xf32>
    %141 = vector.broadcast %140 : vector<32x1xf32> to vector<32x512xf32>
    %142 = arith.addf %138, %141 : vector<32x512xf32>
    %143 = math.tanh %142 : vector<32x512xf32>
    %c2_69 = arith.constant 2 : index
    %c0_70 = arith.constant 0 : index
    %c0_71 = arith.constant 0 : index
    %144 = vector.load %arg2[%c2_69, %c0_70, %c0_71] : memref<4x32x32xf32, #tpu.memory_space<vmem>>, vector<1x32x32xf32>
    %145 = vector.shape_cast %144 : vector<1x32x32xf32> to vector<32x32xf32>
    %cst_72 = arith.constant dense<0.000000e+00> : vector<32x512xf32>
    %146 = tpu.matmul %145, %143, %cst_72 {dimension_numbers = #tpu.dot_dimension_numbers<[1], [0], [0], [1], [0, 0, 1, 1], [], []>} : vector<32x32xf32>, vector<32x512xf32>, vector<32x512xf32> -> vector<32x512xf32>
    %c2_73 = arith.constant 2 : index
    %c0_74 = arith.constant 0 : index
    %c0_75 = arith.constant 0 : index
    %147 = vector.load %arg3[%c2_73, %c0_74, %c0_75] : memref<4x32x1xf32, #tpu.memory_space<vmem>>, vector<1x32x1xf32>
    %148 = vector.shape_cast %147 : vector<1x32x1xf32> to vector<32x1xf32>
    %149 = vector.broadcast %148 : vector<32x1xf32> to vector<32x512xf32>
    %150 = arith.addf %146, %149 : vector<32x512xf32>
    %151 = math.tanh %150 : vector<32x512xf32>
    %c3_76 = arith.constant 3 : index
    %c0_77 = arith.constant 0 : index
    %c0_78 = arith.constant 0 : index
    %152 = vector.load %arg2[%c3_76, %c0_77, %c0_78] : memref<4x32x32xf32, #tpu.memory_space<vmem>>, vector<1x32x32xf32>
    %153 = vector.shape_cast %152 : vector<1x32x32xf32> to vector<32x32xf32>
    %cst_79 = arith.constant dense<0.000000e+00> : vector<32x512xf32>
    %154 = tpu.matmul %153, %151, %cst_79 {dimension_numbers = #tpu.dot_dimension_numbers<[1], [0], [0], [1], [0, 0, 1, 1], [], []>} : vector<32x32xf32>, vector<32x512xf32>, vector<32x512xf32> -> vector<32x512xf32>
    %c3_80 = arith.constant 3 : index
    %c0_81 = arith.constant 0 : index
    %c0_82 = arith.constant 0 : index
    %155 = vector.load %arg3[%c3_80, %c0_81, %c0_82] : memref<4x32x1xf32, #tpu.memory_space<vmem>>, vector<1x32x1xf32>
    %156 = vector.shape_cast %155 : vector<1x32x1xf32> to vector<32x1xf32>
    %157 = vector.broadcast %156 : vector<32x1xf32> to vector<32x512xf32>
    %158 = arith.addf %154, %157 : vector<32x512xf32>
    %159 = vector.extract_strided_slice %158 {offsets = [0, 0], sizes = [2, 512], strides = [1, 1]} : vector<32x512xf32> to vector<2x512xf32>
    %c0_83 = arith.constant 0 : index
    %160 = arith.index_cast %109 : i32 to index
    %161 = vector.load %arg4[%c0_83, %160] : memref<2x2048xf32, #tpu.memory_space<vmem>>, vector<2x512xf32>
    tpu.vector_store %arg4[%c0_83, %160], %159 {strides = array<i32>} : memref<2x2048xf32, #tpu.memory_space<vmem>>, vector<2x512xf32>,
    %c3_i32 = arith.constant 3 : i32
    %c512_i32_84 = arith.constant 512 : i32
    %162 = arith.muli %c3_i32, %c512_i32_84 : i32
    %163 = tpu.assume_multiple %162, 512 : i32
    %c0_85 = arith.constant 0 : index
    %164 = arith.index_cast %163 : i32 to index
    %165 = vector.load %arg1[%c0_85, %164] : memref<3x2048xf32, #tpu.memory_space<vmem>>, vector<3x512xf32>
    %c0_86 = arith.constant 0 : index
    %c0_87 = arith.constant 0 : index
    %c0_88 = arith.constant 0 : index
    %166 = vector.load %arg2[%c0_86, %c0_87, %c0_88] : memref<4x32x32xf32, #tpu.memory_space<vmem>>, vector<1x32x32xf32>
    %167 = vector.shape_cast %166 : vector<1x32x32xf32> to vector<32x32xf32>
    %168 = vector.extract_strided_slice %167 {offsets = [0, 0], sizes = [32, 1], strides = [1, 1]} : vector<32x32xf32> to vector<32x1xf32>
    %169 = vector.extract_strided_slice %165 {offsets = [0, 0], sizes = [1, 512], strides = [1, 1]} : vector<3x512xf32> to vector<1x512xf32>
    %170 = vector.broadcast %168 : vector<32x1xf32> to vector<32x512xf32>
    %171 = vector.broadcast %169 : vector<1x512xf32> to vector<32x512xf32>
    %172 = arith.mulf %170, %171 : vector<32x512xf32>
    %173 = vector.extract_strided_slice %167 {offsets = [0, 1], sizes = [32, 1], strides = [1, 1]} : vector<32x32xf32> to vector<32x1xf32>
    %174 = vector.extract_strided_slice %165 {offsets = [1, 0], sizes = [1, 512], strides = [1, 1]} : vector<3x512xf32> to vector<1x512xf32>
    %175 = vector.broadcast %173 : vector<32x1xf32> to vector<32x512xf32>
    %176 = vector.broadcast %174 : vector<1x512xf32> to vector<32x512xf32>
    %177 = arith.mulf %175, %176 : vector<32x512xf32>
    %178 = arith.addf %172, %177 : vector<32x512xf32>
    %179 = vector.extract_strided_slice %167 {offsets = [0, 2], sizes = [32, 1], strides = [1, 1]} : vector<32x32xf32> to vector<32x1xf32>
    %180 = vector.extract_strided_slice %165 {offsets = [2, 0], sizes = [1, 512], strides = [1, 1]} : vector<3x512xf32> to vector<1x512xf32>
    %181 = vector.broadcast %179 : vector<32x1xf32> to vector<32x512xf32>
    %182 = vector.broadcast %180 : vector<1x512xf32> to vector<32x512xf32>
    %183 = arith.mulf %181, %182 : vector<32x512xf32>
    %184 = arith.addf %178, %183 : vector<32x512xf32>
    %c0_89 = arith.constant 0 : index
    %c0_90 = arith.constant 0 : index
    %c0_91 = arith.constant 0 : index
    %185 = vector.load %arg3[%c0_89, %c0_90, %c0_91] : memref<4x32x1xf32, #tpu.memory_space<vmem>>, vector<1x32x1xf32>
    %186 = vector.shape_cast %185 : vector<1x32x1xf32> to vector<32x1xf32>
    %187 = vector.broadcast %186 : vector<32x1xf32> to vector<32x512xf32>
    %188 = arith.addf %184, %187 : vector<32x512xf32>
    %189 = math.tanh %188 : vector<32x512xf32>
    %c1_92 = arith.constant 1 : index
    %c0_93 = arith.constant 0 : index
    %c0_94 = arith.constant 0 : index
    %190 = vector.load %arg2[%c1_92, %c0_93, %c0_94] : memref<4x32x32xf32, #tpu.memory_space<vmem>>, vector<1x32x32xf32>
    %191 = vector.shape_cast %190 : vector<1x32x32xf32> to vector<32x32xf32>
    %cst_95 = arith.constant dense<0.000000e+00> : vector<32x512xf32>
    %192 = tpu.matmul %191, %189, %cst_95 {dimension_numbers = #tpu.dot_dimension_numbers<[1], [0], [0], [1], [0, 0, 1, 1], [], []>} : vector<32x32xf32>, vector<32x512xf32>, vector<32x512xf32> -> vector<32x512xf32>
    %c1_96 = arith.constant 1 : index
    %c0_97 = arith.constant 0 : index
    %c0_98 = arith.constant 0 : index
    %193 = vector.load %arg3[%c1_96, %c0_97, %c0_98] : memref<4x32x1xf32, #tpu.memory_space<vmem>>, vector<1x32x1xf32>
    %194 = vector.shape_cast %193 : vector<1x32x1xf32> to vector<32x1xf32>
    %195 = vector.broadcast %194 : vector<32x1xf32> to vector<32x512xf32>
    %196 = arith.addf %192, %195 : vector<32x512xf32>
    %197 = math.tanh %196 : vector<32x512xf32>
    %c2_99 = arith.constant 2 : index
    %c0_100 = arith.constant 0 : index
    %c0_101 = arith.constant 0 : index
    %198 = vector.load %arg2[%c2_99, %c0_100, %c0_101] : memref<4x32x32xf32, #tpu.memory_space<vmem>>, vector<1x32x32xf32>
    %199 = vector.shape_cast %198 : vector<1x32x32xf32> to vector<32x32xf32>
    %cst_102 = arith.constant dense<0.000000e+00> : vector<32x512xf32>
    %200 = tpu.matmul %199, %197, %cst_102 {dimension_numbers = #tpu.dot_dimension_numbers<[1], [0], [0], [1], [0, 0, 1, 1], [], []>} : vector<32x32xf32>, vector<32x512xf32>, vector<32x512xf32> -> vector<32x512xf32>
    %c2_103 = arith.constant 2 : index
    %c0_104 = arith.constant 0 : index
    %c0_105 = arith.constant 0 : index
    %201 = vector.load %arg3[%c2_103, %c0_104, %c0_105] : memref<4x32x1xf32, #tpu.memory_space<vmem>>, vector<1x32x1xf32>
    %202 = vector.shape_cast %201 : vector<1x32x1xf32> to vector<32x1xf32>
    %203 = vector.broadcast %202 : vector<32x1xf32> to vector<32x512xf32>
    %204 = arith.addf %200, %203 : vector<32x512xf32>
    %205 = math.tanh %204 : vector<32x512xf32>
    %c3_106 = arith.constant 3 : index
    %c0_107 = arith.constant 0 : index
    %c0_108 = arith.constant 0 : index
    %206 = vector.load %arg2[%c3_106, %c0_107, %c0_108] : memref<4x32x32xf32, #tpu.memory_space<vmem>>, vector<1x32x32xf32>
    %207 = vector.shape_cast %206 : vector<1x32x32xf32> to vector<32x32xf32>
    %cst_109 = arith.constant dense<0.000000e+00> : vector<32x512xf32>
    %208 = tpu.matmul %207, %205, %cst_109 {dimension_numbers = #tpu.dot_dimension_numbers<[1], [0], [0], [1], [0, 0, 1, 1], [], []>} : vector<32x32xf32>, vector<32x512xf32>, vector<32x512xf32> -> vector<32x512xf32>
    %c3_110 = arith.constant 3 : index
    %c0_111 = arith.constant 0 : index
    %c0_112 = arith.constant 0 : index
    %209 = vector.load %arg3[%c3_110, %c0_111, %c0_112] : memref<4x32x1xf32, #tpu.memory_space<vmem>>, vector<1x32x1xf32>
    %210 = vector.shape_cast %209 : vector<1x32x1xf32> to vector<32x1xf32>
    %211 = vector.broadcast %210 : vector<32x1xf32> to vector<32x512xf32>
    %212 = arith.addf %208, %211 : vector<32x512xf32>
    %213 = vector.extract_strided_slice %212 {offsets = [0, 0], sizes = [2, 512], strides = [1, 1]} : vector<32x512xf32> to vector<2x512xf32>
    %c0_113 = arith.constant 0 : index
    %214 = arith.index_cast %163 : i32 to index
    %215 = vector.load %arg4[%c0_113, %214] : memref<2x2048xf32, #tpu.memory_space<vmem>>, vector<2x512xf32>
    tpu.vector_store %arg4[%c0_113, %214], %213 {strides = array<i32>} : memref<2x2048xf32, #tpu.memory_space<vmem>>, vector<2x512xf32>,
    %c4_i32 = arith.constant 4 : i32
    return
  }
  func.func @transform_0(%arg0: i32) -> (i32, i32) {
    %c0_i32 = arith.constant 0 : i32
    %c0_i32_0 = arith.constant 0 : i32
    return %c0_i32, %arg0 : i32, i32
  }
  func.func @transform_1(%arg0: i32) -> (i32, i32, i32) {
    %c0_i32 = arith.constant 0 : i32
    %c0_i32_0 = arith.constant 0 : i32
    %c0_i32_1 = arith.constant 0 : i32
    %c0_i32_2 = arith.constant 0 : i32
    return %c0_i32, %c0_i32_0, %c0_i32_1 : i32, i32, i32
  }
  func.func @transform_2(%arg0: i32) -> (i32, i32, i32) {
    %c0_i32 = arith.constant 0 : i32
    %c0_i32_0 = arith.constant 0 : i32
    %c0_i32_1 = arith.constant 0 : i32
    %c0_i32_2 = arith.constant 0 : i32
    return %c0_i32, %c0_i32_0, %c0_i32_1 : i32, i32, i32
  }
  func.func @transform_3(%arg0: i32) -> (i32, i32) {
    %c0_i32 = arith.constant 0 : i32
    %c0_i32_0 = arith.constant 0 : i32
    return %c0_i32, %arg0 : i32, i32
  }
}

</mosaic_0001>

<bundles_post_ra>
// kernel: tpu_custom_call.1
= control target key start
LH: loop header
LB: loop body
LE: loop exit
PB: predicated region body
PF: predicated region fallthrough
CT: control target
= control target key end

     0   :  { %8 = vsyncpa [#allocation3], 0  ;;  %s6683_s0 = inlined_call_operand.hbm [shape: f32[3,2048], index: 0, kind: input, shape index: {}]   ;;  %s6684_s1 = inlined_call_operand.vmem [shape: f32[4,32,32], index: 1, kind: input, shape index: {}]   ;;  %s6685_s2 = inlined_call_operand.vmem [shape: f32[4,32,1], index: 2, kind: input, shape index: {}]   ;;  %s6686_s3 = inlined_call_operand.hbm [shape: f32[2,2048], index: 3, kind: output, shape index: {}]  }
   0x1   :  { %9 = vsyncpa [#allocation4], 0  ;;  %s4908_s12 = smov [#allocation2]   ;;  %s4860_s16 = scalar_lea.hbm %s6683_s0, 1024 }
   0x2   :  { %s16_s13 = sshll.u32 %s4908_s12, 4  ;;  %p4861_p0 = scmp.ne.s32.totalorder %s6683_s0, %s4860_s16  ;;  %s17_s13 = int_to_ptr.vmem [resolvable:$true] %s16_s13 }
   0x3   :  { %p4864_p1 = scmp.lt.u32.totalorder %s4860_s16, %s6683_s0 }
   0x5   :  { %p4866_p2 = pnand %p4864_p1, %p4861_p0 }
   0x7   :  { %4869 = shalt.err (!%p4866_p2)
}
   0x8   :  { %s4870_s21 = scalar_lea.vmem %s17_s13, 1024  ;;  %p4875_p4 = scmp.lt.s32.totalorder %s17_s13, %s17_s13 }
   0x9   :  { %p4871_p3 = scmp.ne.s32.totalorder %s17_s13, %s4870_s21  ;;  %p4876_p5 = scmp.lt.s32.totalorder %s4870_s21, %s4870_s21 }
   0xb   :  { %p4877_p6 = por %p4876_p5, %p4875_p4 }
   0xd   :  { %p4878_p7 = pnand %p4877_p6, %p4871_p3 }
   0xf   :  { %4881 = shalt.err (!%p4878_p7)
}
  0x10   :  { %19 = dma.hbm_to_vmem [thread:$0]  %s6683_s0, 1024, %s17_s13, [#allocation3]  }
  0x11   :  { %4904 = dma.done.wait [#allocation3], 1024  }
  0x12   :  { %4905 = vsyncadd [#allocation3], 4294966272  ;;  %v6691_v0 = vmov 2   ;;  %v6693_v1 = vmov 1   ;;  %v4952_v2 = vld [vmem:[%s6684_s1] sm:$0xff]  ;;  %v4959_v3 = vld [vmem:[%s6684_s1 + $0x10] sm:$0xff]  ;;  %v55_v20 = vlaneseq }
  0x13   :  { %4439 = vset.pattern.permute.xlu0 %v6691_v0  ;;  %4438 = vset.pattern.permute.xlu1 %v6693_v1  ;;  %v4964_v4 = vld [vmem:[%s6684_s1 + $0x8] sm:$0xff]  ;;  %v6687_v5 = vmov 0   ;;  %v4978_v6 = vld [vmem:[%s6684_s1 + $0x18] sm:$0xff]  ;;  %v4051_v8 = vld [vmem:[%s6685_s2 + $0x20] sm:$0xff]  ;;  %v6689_v19 = vmov 0.0   ;;  %vm361_vm0 = vcmask 261120  }
  0x14   :  { %192 = vperm.xlu0 %4439, %v4952_v2   ;;  %108 = vperm.xlu1 %4438, %v4952_v2   ;;  %v4985_v7 = vld [vmem:[%s6685_s2 + $0x8] sm:$0xff]  ;;  %v4053_v9 = vld [vmem:[%s6685_s2 + $0x30] sm:$0xff]  ;;  %v4067_v10 = vld [vmem:[%s6685_s2 + $0x40] sm:$0xff]  ;;  %v5060_v21 = vshrl.u32 %v55_v20, 7 }
  0x15   :  { %v5004_v11 = vld [vmem:[%s6685_s2] sm:$0xff]  ;;  %v4069_v12 = vld [vmem:[%s6685_s2 + $0x50] sm:$0xff]  ;;  %v278_v14 = vld [vmem:[%s6685_s2 + $0x18] sm:$0xff]  ;;  %438 = vmatprep.mubr.f32.mxu0 %v6689_v19  ;;  %527 = vmatprep.mubr.f32.mxu1 %v6689_v19 }
  0x16   :  { %v277_v13 = vld [vmem:[%s6685_s2 + $0x10] sm:$0xff]  ;;  %v4052_v15 = vld [vmem:[%s6685_s2 + $0x28] sm:$0xff]  ;;  %v4054_v16 = vld [vmem:[%s6685_s2 + $0x38] sm:$0xff]  ;;  %6764 = vst [vmem:[#allocation8_spill] sm:$0xff] %v5060_v21  ;;  %v5067_v24 = vsub.s32 1, %v5060_v21  ;;  %v5074_v27 = vsub.s32 5, %v5060_v21 }
  0x17   :  { %v4068_v17 = vld [vmem:[%s6685_s2 + $0x48] sm:$0xff]  ;;  %v4070_v18 = vld [vmem:[%s6685_s2 + $0x58] sm:$0xff]  ;;  %v27_v28 = vld [vmem:[#allocation2] sm:$0x77]  ;;  %v5077_v29 = vsub.s32 0, %v5060_v21  ;;  %v5081_v31 = vsub.s32 4, %v5060_v21 }
  0x18   :  { %200 = vperm.xlu0 %4439, %v4959_v3   ;;  %112 = vperm.xlu1 %4438, %v4964_v4   ;;  %v28_v30 = vld [vmem:[#allocation2 + $0x8] sm:$0x77]  ;;  %v5085_v32 = vsub.s32 2, %v5060_v21  ;;  %v126_v33 = vrot.slane %v27_v28, %v5067_v24  ;;  %v5089_v34 = vsub.s32 6, %v5060_v21  ;;  %v130_v35 = vrot.slane %v27_v28, %v5074_v27 }
  0x19   :  { %v134_v36 = vrot.slane %v28_v30, %v5067_v24  ;;  %v138_v37 = vrot.slane %v28_v30, %v5074_v27  ;;  %v58_v39 = vrot.slane %v27_v28, %v5077_v29  ;;  %v62_v41 = vrot.slane %v27_v28, %v5081_v31 }
  0x1a   :  { %6765 = vst [vmem:[#allocation9_spill] sm:$0xff] %v5085_v32  ;;  %6766 = vst [vmem:[#allocation10_spill] sm:$0xff] %v5089_v34  ;;  %v66_v42 = vrot.slane %v28_v30, %v5077_v29  ;;  %v70_v43 = vrot.slane %v28_v30, %v5081_v31  ;;  %v210_v44 = vrot.slane %v27_v28, %v5085_v32 }
  0x1b   :  { %v5103_v45 = vrot.slane %v126_v33, %v5067_v24  ;;  %v214_v46 = vrot.slane %v27_v28, %v5089_v34  ;;  %v218_v47 = vrot.slane %v28_v30, %v5085_v32  ;;  %v222_v48 = vrot.slane %v28_v30, %v5089_v34 }
  0x1c   :  { %4443 = vset.pattern.permute.xlu0 %v6687_v5  ;;  %4440 = vset.pattern.permute.xlu1 %v6691_v0  ;;  %v5109_v49 = vrot.slane %v130_v35, %v5067_v24  ;;  %v5112_v50 = vrot.slane %v134_v36, %v5067_v24  ;;  %v5115_v51 = vrot.slane %v138_v37, %v5067_v24 }
  0x1d   :  { %35 = vperm.xlu0 %4443, %v4952_v2   ;;  %196 = vperm.xlu1 %4440, %v4964_v4   ;;  %v5118_v52 = vrot.slane %v58_v39, %v5077_v29  ;;  %v5121_v54 = vrot.slane %v62_v41, %v5077_v29  ;;  %v5124_v55 = vrot.slane %v66_v42, %v5077_v29 }
  0x1e   :  { %v5127_v56 = vrot.slane %v70_v43, %v5077_v29  ;;  %v5133_v58 = vrot.slane %v210_v44, %v5085_v32  ;;  %v5138_v60 = vrot.slane %v214_v46, %v5085_v32  ;;  %v5141_v61 = vrot.slane %v218_v47, %v5085_v32 }
  0x1f   :  { %v5144_v62 = vrot.slane %v222_v48, %v5085_v32 }
  0x21   :  { %40 = vperm.xlu0 %4443, %v4964_v4   ;;  %4441 = vset.pattern.permute.xlu1 %v6687_v5 }
  0x22   :  { %45 = vperm.xlu1 %4441, %v4959_v3  }
  0x25   :  { %50 = vperm.xlu0 %4443, %v4978_v6  }
  0x26   :  { %4442 = vset.pattern.permute.xlu1 %v6693_v1 }
  0x27   :  { %116 = vperm.xlu1 %4442, %v4959_v3  }
  0x29   :  { %286 = vperm.xlu0 %4443, %v4985_v7  }
  0x2b   :  { %120 = vperm.xlu1 %4442, %v4978_v6  }
  0x2d   :  { %343 = vperm.xlu0 %4443, %v4051_v8  }
  0x2f   :  { %4444 = vset.pattern.permute.xlu1 %v6691_v0 }
  0x30   :  { %204 = vperm.xlu1 %4444, %v4978_v6  }
  0x31   :  { %353 = vperm.xlu0 %4443, %v4053_v9  }
  0x34   :  { %4445 = vset.pattern.permute.xlu1 %v6687_v5 }
  0x35   :  { %580 = vperm.xlu0 %4443, %v4067_v10   ;;  %281 = vperm.xlu1 %4445, %v5004_v11  }
  0x39   :  { %590 = vperm.xlu0 %4443, %v4069_v12   ;;  %291 = vperm.xlu1 %4445, %v277_v13  }
  0x3d   :  { %1041 = vperm.xlu0 %4443, %v4952_v2   ;;  %296 = vperm.xlu1 %4445, %v278_v14  }
  0x41   :  { %4446 = vset.pattern.permute.xlu0 %v6693_v1  ;;  %348 = vperm.xlu1 %4445, %v4052_v15  }
  0x42   :  { %1114 = vperm.xlu0 %4446, %v4952_v2  }
  0x45   :  { %358 = vperm.xlu1 %4445, %v4054_v16  }
  0x46   :  { %1122 = vperm.xlu0 %4446, %v4959_v3  }
  0x49   :  { %585 = vperm.xlu1 %4445, %v4068_v17  }
  0x4a   :  { %4450 = vset.pattern.permute.xlu0 %v6691_v0 }
  0x4b   :  { %1202 = vperm.xlu0 %4450, %v4964_v4  }
  0x4d   :  { %595 = vperm.xlu1 %4445, %v4070_v18  }
  0x4f   :  { %1210 = vperm.xlu0 %4450, %v4978_v6  }
  0x51   :  { %1046 = vperm.xlu1 %4445, %v4964_v4  }
  0x53   :  { %4454 = vset.pattern.permute.xlu0 %v6687_v5 }
  0x54   :  { %1297 = vperm.xlu0 %4454, %v277_v13  }
  0x55   :  { %4447 = vset.pattern.permute.xlu1 %v6693_v1 }
  0x56   :  { %1118 = vperm.xlu1 %4447, %v4964_v4  }
  0x58   :  { %1352 = vperm.xlu0 %4454, %v4052_v15  }
  0x5a   :  { %4448 = vset.pattern.permute.xlu1 %v6691_v0 }
  0x5b   :  { %1198 = vperm.xlu1 %4448, %v4952_v2  }
  0x5c   :  { %1362 = vperm.xlu0 %4454, %v4054_v16  }
  0x5f   :  { %4449 = vset.pattern.permute.xlu1 %v6687_v5 }
  0x60   :  { %1051 = vperm.xlu1 %4449, %v4959_v3   ;;  %4456 = vset.pattern.permute.xlu0 %v6693_v1 }
  0x61   :  { %2118 = vperm.xlu0 %4456, %v4964_v4  }
  0x64   :  { %1056 = vperm.xlu1 %4449, %v4978_v6  }
  0x65   :  { %2126 = vperm.xlu0 %4456, %v4978_v6  }
  0x68   :  { %4451 = vset.pattern.permute.xlu1 %v6693_v1 }
  0x69   :  { %1126 = vperm.xlu1 %4451, %v4978_v6   ;;  %4460 = vset.pattern.permute.xlu0 %v6687_v5 }
  0x6a   :  { %1586 = vperm.xlu0 %4460, %v4068_v17  }
  0x6d   :  { %4452 = vset.pattern.permute.xlu1 %v6691_v0 }
  0x6e   :  { %1206 = vperm.xlu1 %4452, %v4959_v3   ;;  %1596 = vperm.xlu0 %4460, %v4070_v18  }
  0x72   :  { %4453 = vset.pattern.permute.xlu1 %v6687_v5  ;;  %2046 = vperm.xlu0 %4460, %v4964_v4  }
  0x73   :  { %1287 = vperm.xlu1 %4453, %v5004_v11  }
  0x77   :  { %1292 = vperm.xlu1 %4453, %v4985_v7  }
  0x7b   :  { %1302 = vperm.xlu1 %4453, %v278_v14  }
  0x7f   :  { %1347 = vperm.xlu1 %4453, %v4051_v8  }
  0x83   :  { %1357 = vperm.xlu1 %4453, %v4053_v9  }
  0x87   :  { %1581 = vperm.xlu1 %4453, %v4067_v10  }
  0x8b   :  { %1591 = vperm.xlu1 %4453, %v4069_v12  }
  0x8f   :  { %2041 = vperm.xlu1 %4453, %v4952_v2  }
  0x93   :  { %v109_v22 = vpop.permute.xlu1 %108  ;;  %v5062_v23 = vpop.permute.xlu0 %192  ;;  %4455 = vset.pattern.permute.xlu1 %v6693_v1 }
  0x94   :  { %2114 = vperm.xlu1 %4455, %v4952_v2   ;;  %v159_v59 = vmul.f32 %v5103_v45, %v109_v22  ;;  %v160_v63 = vmul.f32 %v5109_v49, %v109_v22  ;;  %v162_v3 = vmul.f32 %v5115_v51, %v109_v22  ;;  %v243_v12 = vmul.f32 %v5133_v58, %v5062_v23 }
  0x95   :  { %v244_v13 = vmul.f32 %v5138_v60, %v5062_v23  ;;  %v245_v18 = vmul.f32 %v5141_v61, %v5062_v23  ;;  %v246_v20 = vmul.f32 %v5144_v62, %v5062_v23 }
  0x97   :  { %v5069_v25 = vpop.permute.xlu1 %112  ;;  %v5071_v26 = vpop.permute.xlu0 %200 }
  0x98   :  { %4457 = vset.pattern.permute.xlu1 %v6691_v0  ;;  %v164_v28 = vmul.f32 %v5109_v49, %v5069_v25  ;;  %v165_v30 = vmul.f32 %v5112_v50, %v5069_v25  ;;  %v166_v33 = vmul.f32 %v5115_v51, %v5069_v25  ;;  %v251_v23 = vmul.f32 %v5133_v58, %v5071_v26 }
  0x99   :  { %2198 = vperm.xlu1 %4457, %v4952_v2   ;;  %v161_v2 = vmul.f32 %v5112_v50, %v109_v22  ;;  %v163_v22 = vmul.f32 %v5103_v45, %v5069_v25  ;;  %v252_v42 = vmul.f32 %v5138_v60, %v5071_v26  ;;  %v253_v47 = vmul.f32 %v5141_v61, %v5071_v26 }
  0x9a   :  { %v254_v25 = vmul.f32 %v5144_v62, %v5071_v26 }
  0x9c   :  { %v36_v38 = vpop.permute.xlu0 %35  ;;  %v5095_v40 = vpop.permute.xlu1 %196 }
  0x9d   :  { %2202 = vperm.xlu1 %4457, %v4964_v4   ;;  %v91_v4 = vmul.f32 %v5118_v52, %v36_v38  ;;  %v92_v7 = vmul.f32 %v5121_v54, %v36_v38  ;;  %v93_v8 = vmul.f32 %v5124_v55, %v36_v38  ;;  %v94_v9 = vmul.f32 %v5127_v56, %v36_v38 }
  0x9e   :  { %v247_v48 = vmul.f32 %v5133_v58, %v5095_v40 }
  0x9f   :  { %v175_v35 = vadd.f32 %v159_v59, %v91_v4  ;;  %v176_v37 = vadd.f32 %v160_v63, %v92_v7  ;;  %v177_v38 = vadd.f32 %v161_v2, %v93_v8  ;;  %v178_v39 = vadd.f32 %v162_v3, %v94_v9 }
  0xa0   :  { %v41_v53 = vpop.permute.xlu0 %40  ;;  %v249_v63 = vmul.f32 %v5141_v61, %v5095_v40  ;;  %v250_v2 = vmul.f32 %v5144_v62, %v5095_v40 }
  0xa1   :  { %v5129_v57 = vpop.permute.xlu1 %45  ;;  %4458 = vset.pattern.permute.xlu1 %v6687_v5  ;;  %v95_v10 = vmul.f32 %v5118_v52, %v41_v53  ;;  %v96_v14 = vmul.f32 %v5121_v54, %v41_v53  ;;  %v97_v15 = vmul.f32 %v5124_v55, %v41_v53  ;;  %v98_v36 = vmul.f32 %v5127_v56, %v41_v53 }
  0xa2   :  { %2056 = vperm.xlu1 %4458, %v4978_v6   ;;  %v248_v53 = vmul.f32 %v5138_v60, %v5095_v40  ;;  %v259_v59 = vadd.f32 %v243_v12, %v175_v35  ;;  %v260_v7 = vadd.f32 %v244_v13, %v176_v37  ;;  %v261_v8 = vadd.f32 %v245_v18, %v177_v38 }
  0xa3   :  { %v179_v41 = vadd.f32 %v163_v22, %v95_v10  ;;  %v180_v43 = vadd.f32 %v164_v28, %v96_v14  ;;  %v181_v44 = vadd.f32 %v165_v30, %v97_v15  ;;  %v182_v3 = vadd.f32 %v166_v33, %v98_v36 }
  0xa4   :  { %v51_v16 = vpop.permute.xlu0 %50  ;;  %v262_v9 = vadd.f32 %v246_v20, %v178_v39  ;;  %v99_v26 = vmul.f32 %v5118_v52, %v5129_v57  ;;  %v100_v13 = vmul.f32 %v5121_v54, %v5129_v57  ;;  %v101_v18 = vmul.f32 %v5124_v55, %v5129_v57 }
  0xa5   :  { %v263_v10 = vadd.f32 %v247_v48, %v179_v41  ;;  %v264_v15 = vadd.f32 %v248_v53, %v180_v43  ;;  %v265_v22 = vadd.f32 %v249_v63, %v181_v44  ;;  %v266_v20 = vadd.f32 %v250_v2, %v182_v3 }
  0xa6   :  { %v117_v17 = vpop.permute.xlu1 %116  ;;  %4459 = vset.pattern.permute.xlu1 %v6693_v1  ;;  %v102_v36 = vmul.f32 %v5127_v56, %v5129_v57  ;;  %v103_v37 = vmul.f32 %v5118_v52, %v51_v16  ;;  %v104_v38 = vmul.f32 %v5121_v54, %v51_v16  ;;  %v106_v41 = vmul.f32 %v5127_v56, %v51_v16 }
  0xa7   :  { %v167_v14 = vmul.f32 %v5103_v45, %v117_v17  ;;  %v168_v12 = vmul.f32 %v5109_v49, %v117_v17  ;;  %v169_v28 = vmul.f32 %v5112_v50, %v117_v17  ;;  %v170_v30 = vmul.f32 %v5115_v51, %v117_v17 }
  0xa8   :  { %v287_v4 = vpop.permute.xlu0 %286  ;;  %v105_v17 = vmul.f32 %v5124_v55, %v51_v16 }
  0xa9   :  { %v303_v40 = vadd.f32 %v287_v4, %v263_v10  ;;  %v304_v35 = vadd.f32 %v287_v4, %v264_v15  ;;  %v305_v39 = vadd.f32 %v287_v4, %v265_v22  ;;  %v183_v43 = vadd.f32 %v167_v14, %v99_v26 }
  0xaa   :  { %v121_v46 = vpop.permute.xlu1 %120  ;;  %v306_v44 = vadd.f32 %v287_v4, %v266_v20  ;;  %v184_v48 = vadd.f32 %v168_v12, %v100_v13  ;;  %v185_v53 = vadd.f32 %v169_v28, %v101_v18  ;;  %v186_v63 = vadd.f32 %v170_v30, %v102_v36 }
  0xab   :  { %4471 = vtanh.f32 %v303_v40  ;;  %v171_v2 = vmul.f32 %v5103_v45, %v121_v46  ;;  %v172_v57 = vmul.f32 %v5109_v49, %v121_v46  ;;  %v173_v52 = vmul.f32 %v5112_v50, %v121_v46 }
  0xac   :  { %4473 = vtanh.f32 %v304_v35  ;;  %v174_v56 = vmul.f32 %v5115_v51, %v121_v46  ;;  %v267_v4 = vadd.f32 %v251_v23, %v183_v43  ;;  %v268_v26 = vadd.f32 %v252_v42, %v184_v48 }
  0xad   :  { %4475 = vtanh.f32 %v305_v39  ;;  %v269_v14 = vadd.f32 %v253_v47, %v185_v53  ;;  %v270_v15 = vadd.f32 %v254_v25, %v186_v63  ;;  %v187_v23 = vadd.f32 %v171_v2, %v103_v37 }
  0xae   :  { %4477 = vtanh.f32 %v306_v44  ;;  %v188_v46 = vadd.f32 %v172_v57, %v104_v38  ;;  %v189_v47 = vadd.f32 %v173_v52, %v105_v17  ;;  %v190_v25 = vadd.f32 %v174_v56, %v106_v41 }
  0xaf   :  { %v205_v33 = vpop.permute.xlu1 %204 }
  0xb0   :  { %v255_v45 = vmul.f32 %v5133_v58, %v205_v33  ;;  %v256_v49 = vmul.f32 %v5138_v60, %v205_v33  ;;  %v257_v50 = vmul.f32 %v5141_v61, %v205_v33 }
  0xb2   :  { %v272_v60 = vadd.f32 %v256_v49, %v188_v46  ;;  %v273_v61 = vadd.f32 %v257_v50, %v189_v47 }
  0xb4   :  { %v282_v3 = vpop.permute.xlu1 %281 }
  0xb5   :  { %v299_v54 = vadd.f32 %v282_v3, %v259_v59  ;;  %v300_v10 = vadd.f32 %v282_v3, %v260_v7  ;;  %v301_v55 = vadd.f32 %v282_v3, %v261_v8  ;;  %v302_v16 = vadd.f32 %v282_v3, %v262_v9  ;;  %v4472_v12 = vpop.eup %4471 }
  0xb6   :  { %v258_v59 = vmul.f32 %v5144_v62, %v205_v33  ;;  %v271_v9 = vadd.f32 %v255_v45, %v187_v23  ;;  %v4474_v30 = vpop.eup %4473 }
  0xb7   :  { %4479 = vtanh.f32 %v299_v54  ;;  %v4476_v33 = vpop.eup %4475 }
  0xb8   :  { %4481 = vtanh.f32 %v300_v10  ;;  %v292_v22 = vpop.permute.xlu1 %291  ;;  %v274_v28 = vadd.f32 %v258_v59, %v190_v25  ;;  %v4478_v20 = vpop.eup %4477  ;;  %v5271_v25 = vld [vmem:[%s6684_s1 + $0x10] sm:$0xff] }
  0xb9   :  { %4483 = vtanh.f32 %v301_v55  ;;  %v307_v7 = vadd.f32 %v292_v22, %v267_v4  ;;  %v308_v8 = vadd.f32 %v292_v22, %v268_v26  ;;  %v309_v51 = vadd.f32 %v292_v22, %v269_v14  ;;  %v4048_v4 = vld [vmem:[%s6684_s1 + $0x28] sm:$0xff]  ;;  %v4049_v26 = vld [vmem:[%s6684_s1 + $0x30] sm:$0xff]  ;;  %v4050_v14 = vld [vmem:[%s6684_s1 + $0x38] sm:$0xff]  ;;  %2122 = vperm.xlu1 %4459, %v5271_v25   ;;  %2051 = vperm.xlu0 %4460, %v5271_v25  }
  0xba   :  { %4485 = vtanh.f32 %v302_v16  ;;  %v310_v42 = vadd.f32 %v292_v22, %v270_v15  ;;  %v4047_v16 = vld [vmem:[%s6684_s1 + $0x20] sm:$0xff] }
  0xbb   :  { %4487 = vtanh.f32 %v307_v7 }
  0xbc   :  { %v297_v58 = vpop.permute.xlu1 %296  ;;  %4489 = vtanh.f32 %v308_v8 }
  0xbd   :  { %4491 = vtanh.f32 %v309_v51  ;;  %v311_v62 = vadd.f32 %v297_v58, %v271_v9  ;;  %v312_v40 = vadd.f32 %v297_v58, %v272_v60  ;;  %v313_v13 = vadd.f32 %v297_v58, %v273_v61  ;;  %4461 = vset.pattern.permute.xlu1 %v6691_v0  ;;  %2287 = vperm.xlu0 %4460, %v5004_v11  }
  0xbe   :  { %4493 = vtanh.f32 %v310_v42  ;;  %v314_v18 = vadd.f32 %v297_v58, %v274_v28  ;;  %2206 = vperm.xlu1 %4461, %v5271_v25   ;;  %v5292_v28 = vld [vmem:[#allocation2 + $0x20] sm:$0x77] }
  0xbf   :  { %4495 = vtanh.f32 %v311_v62  ;;  %v2064_v11 = vrot.slane %v5292_v28, %v5077_v29 }
  0xc0   :  { %4497 = vtanh.f32 %v312_v40  ;;  %v5242_v15 = vpop.permute.xlu1 %348 }
  0xc1   :  { %v4480_v35 = vpop.eup %4479  ;;  %4499 = vtanh.f32 %v313_v13  ;;  %v2132_v13 = vrot.slane %v5292_v28, %v5067_v24 }
  0xc2   :  { %v4482_v36 = vpop.eup %4481  ;;  %4501 = vtanh.f32 %v314_v18  ;;  %v4241_v39 = vpack.c.bf16 %v4472_v12, %v4480_v35  ;;  %2210 = vperm.xlu1 %4461, %v4978_v6   ;;  %v5288_v12 = vld [vmem:[%s6685_s2 + $0x8] sm:$0xff]  ;;  %v2068_v6 = vrot.slane %v5292_v28, %v5081_v31  ;;  %v2136_v18 = vrot.slane %v5292_v28, %v5074_v27 }
  0xc3   :  { %v4484_v37 = vpop.eup %4483  ;;  %v4239_v38 = vpack.c.bf16 %v4474_v30, %v4482_v36  ;;  %v5294_v30 = vld [vmem:[#allocation2 + $0x28] sm:$0x77]  ;;  %v5317_v36 = vrot.slane %v2064_v11, %v5077_v29 }
  0xc4   :  { %v4486_v17 = vpop.eup %4485  ;;  %v4249_v41 = vpack.c.bf16 %v4476_v33, %v4484_v37  ;;  %v5244_v45 = vpop.permute.xlu1 %358  ;;  %v2072_v62 = vrot.slane %v5294_v30, %v5077_v29  ;;  %v2076_v40 = vrot.slane %v5294_v30, %v5081_v31  ;;  %v2144_v35 = vrot.slane %v5294_v30, %v5074_v27 }
  0xc5   :  { %4240 = vmatprep.subr.bf16.mxu0 %v4239_v38  ;;  %v4247_v43 = vpack.c.bf16 %v4478_v20, %v4486_v17  ;;  %v4488_v44 = vpop.eup %4487  ;;  %v2140_v20 = vrot.slane %v5294_v30, %v5067_v24  ;;  %v5320_v37 = vrot.slane %v2068_v6, %v5077_v29 }
  0xc6   :  { %4242 = vmatpush1.bf16.msra.mxu0 %v4241_v39  ;;  %v4490_v48 = vpop.eup %4489  ;;  %4462 = vset.pattern.permute.xlu1 %v6687_v5  ;;  %v5323_v38 = vrot.slane %v2072_v62, %v5077_v29  ;;  %v5326_v39 = vrot.slane %v2076_v40, %v5077_v29 }
  0xc7   :  { %4248 = vmatprep.subr.bf16.mxu1 %v4247_v43  ;;  %v4492_v53 = vpop.eup %4491  ;;  %2292 = vperm.xlu1 %4462, %v5288_v12   ;;  %v5332_v43 = vrot.slane %v2136_v18, %v5067_v24 }
  0xc8   :  { %4250 = vmatpush1.bf16.msra.mxu1 %v4249_v41  ;;  %v4494_v63 = vpop.eup %4493  ;;  %v5246_v49 = vpop.permute.xlu1 %585  ;;  %6778 = vst [vmem:[#allocation22_spill] sm:$0xff] %v5326_v39  ;;  %v5329_v41 = vrot.slane %v2132_v13, %v5067_v24 }
  0xc9   :  { %v4496_v2 = vpop.eup %4495  ;;  %6767 = vst [vmem:[#allocation11_spill] sm:$0xff] %v5246_v49 }
  0xca   :  { %v4498_v57 = vpop.eup %4497  ;;  %v4245_v52 = vpack.c.bf16 %v4496_v2, %v4488_v44  ;;  %v5335_v44 = vrot.slane %v2140_v20, %v5067_v24 }
  0xcb   :  { %v4500_v3 = vpop.eup %4499  ;;  %v4243_v54 = vpack.c.bf16 %v4498_v57, %v4490_v48  ;;  %v5338_v48 = vrot.slane %v2144_v35, %v5067_v24 }
  0xcc   :  { %v4502_v10 = vpop.eup %4501  ;;  %v4253_v55 = vpack.c.bf16 %v4500_v3, %v4492_v53  ;;  %v5248_v50 = vpop.permute.xlu1 %595 }
  0xcd   :  { %4244 = vmatprep.subr.bf16.mxu0 %v4243_v54  ;;  %v4251_v56 = vpack.c.bf16 %v4502_v10, %v4494_v63  ;;  %6768 = vst [vmem:[#allocation12_spill] sm:$0xff] %v5248_v50 }
  0xce   :  { %4246 = vmatpush1.bf16.msra.mxu0 %v4245_v52 }
  0xcf   :  { %4252 = vmatprep.subr.bf16.mxu1 %v4251_v56 }
  0xd0   :  { %4254 = vmatpush1.bf16.msra.mxu1 %v4253_v55  ;;  %v5250_v22 = vpop.permute.xlu1 %1046 }
  0xd1   :  { %4055 = vmatmul.mubr.msk.f32.vlgmr.msra.gmra.mrb[0].mxu0 %vm361_vm0, %v4047_v16 }
  0xd2   :  { %444 = vmatprep.mubr.f32.mxu0 %v6689_v19 }
  0xd3   :  { %4059 = vmatmul.mubr.msk.f32.vlgmr.msra.gmra.mrb[0].mxu1 %vm361_vm0, %v4047_v16 }
  0xd4   :  { %533 = vmatprep.mubr.f32.mxu1 %v6689_v19 }
  0xd5   :  { %4056 = vmatmul.mubr.msk.f32.gmra.mrb[2].mxu0 %vm361_vm0, %v4048_v4  ;;  %v5252_v59 = vpop.permute.xlu1 %1118 }
  0xd6   :  { %450 = vmatprep.mubr.f32.mxu0 %v6689_v19 }
  0xd7   :  { %4060 = vmatmul.mubr.msk.f32.gmra.mrb[2].mxu1 %vm361_vm0, %v4048_v4 }
  0xd8   :  { %539 = vmatprep.mubr.f32.mxu1 %v6689_v19 }
  0xd9   :  { %4057 = vmatmul.mubr.msk.f32.gmra.mrb[4].mxu0 %vm361_vm0, %v4049_v26 }
  0xda   :  { %456 = vmatprep.mubr.f32.mxu0 %v6689_v19  ;;  %v5254_v7 = vpop.permute.xlu1 %1198 }
  0xdb   :  { %4061 = vmatmul.mubr.msk.f32.gmra.mrb[4].mxu1 %vm361_vm0, %v4049_v26 }
  0xdc   :  { %545 = vmatprep.mubr.f32.mxu1 %v6689_v19 }
  0xdd   :  { %4058 = vmatmul.mubr.msk.f32.gmra.mrb[6].mxu0 %vm361_vm0, %v4050_v14 }
  0xde   :  { %674 = vmatprep.mubr.f32.mxu0 %v6689_v19 }
  0xdf   :  { %4062 = vmatmul.mubr.msk.f32.gmra.mrb[6].mxu1 %vm361_vm0, %v4050_v14  ;;  %v5256_v8 = vpop.permute.xlu1 %1051  ;;  %v344_v14 = vpop.permute.xlu0 %343 }
  0xe0   :  { %763 = vmatprep.mubr.f32.mxu1 %v6689_v19  ;;  %6769 = vst [vmem:[#allocation13_spill] sm:$0xff] %v5256_v8 }
  0xe3   :  { %v5258_v51 = vpop.permute.xlu1 %1056 }
  0xe8   :  { %v5260_v23 = vpop.permute.xlu1 %1126 }
  0xed   :  { %v5262_v46 = vpop.permute.xlu1 %1206 }
  0xee   :  { %6770 = vst [vmem:[#allocation14_spill] sm:$0xff] %v5262_v46 }
  0xf2   :  { %v5264_v42 = vpop.permute.xlu1 %1287 }
  0xf3   :  { %6771 = vst [vmem:[#allocation15_spill] sm:$0xff] %v5264_v42 }
  0xf6   :  { %v5266_v47 = vpop.permute.xlu1 %1292 }
  0xf7   :  { %6772 = vst [vmem:[#allocation16_spill] sm:$0xff] %v5266_v47 }
  0xfa   :  { %v5273_v58 = vpop.permute.xlu1 %1302 }
  0xfb   :  { %6773 = vst [vmem:[#allocation17_spill] sm:$0xff] %v5273_v58 }
  0xfe   :  { %v5277_v9 = vpop.permute.xlu1 %1347 }
  0xff   :  { %6774 = vst [vmem:[#allocation18_spill] sm:$0xff] %v5277_v9 }
 0x102   :  { %v5282_v60 = vpop.permute.xlu1 %1357 }
 0x103   :  { %6775 = vst [vmem:[#allocation19_spill] sm:$0xff] %v5282_v60 }
 0x106   :  { %v5290_v61 = vpop.permute.xlu1 %1581 }
 0x107   :  { %6776 = vst [vmem:[#allocation20_spill] sm:$0xff] %v5290_v61 }
 0x10a   :  { %v5306_v33 = vpop.permute.xlu1 %1591 }
 0x10b   :  { %6777 = vst [vmem:[#allocation21_spill] sm:$0xff] %v5306_v33 }
 0x10e   :  { %v2042_v17 = vpop.permute.xlu1 %2041 }
 0x10f   :  { %v2097_v53 = vmul.f32 %v5317_v36, %v2042_v17  ;;  %v2098_v63 = vmul.f32 %v5320_v37, %v2042_v17  ;;  %v2099_v2 = vmul.f32 %v5323_v38, %v2042_v17  ;;  %v2100_v57 = vmul.f32 %v5326_v39, %v2042_v17 }
 0x113   :  { %v2115_v52 = vpop.permute.xlu1 %2114 }
 0x114   :  { %v2165_v3 = vmul.f32 %v5329_v41, %v2115_v52  ;;  %v2166_v54 = vmul.f32 %v5332_v43, %v2115_v52  ;;  %v2167_v10 = vmul.f32 %v5335_v44, %v2115_v52  ;;  %v2168_v55 = vmul.f32 %v5338_v48, %v2115_v52 }
 0x116   :  { %v5348_v56 = vadd.f32 %v2165_v3, %v2097_v53  ;;  %v5350_v16 = vadd.f32 %v2166_v54, %v2098_v63  ;;  %v5352_v4 = vadd.f32 %v2167_v10, %v2099_v2  ;;  %v5354_v26 = vadd.f32 %v2168_v55, %v2100_v57  ;;  %v354_v54 = vpop.permute.xlu0 %353 }
 0x1a4   :  { %v440_v11 = vpop.f32.mrb[0].mxu0 }
 0x1a5   :  { %v441_v6 = vadd.f32 %v440_v11, %v344_v14  ;;  %v442_v62 = vpop.f32.mrb[1].mxu0 }
 0x1a6   :  { %v529_v40 = vpop.f32.mrb[0].mxu1  ;;  %v443_v13 = vadd.f32 %v442_v62, %v344_v14 }
 0x1a7   :  { %4503 = vtanh.f32 %v441_v6  ;;  %v530_v18 = vadd.f32 %v529_v40, %v344_v14  ;;  %v531_v20 = vpop.f32.mrb[1].mxu1 }
 0x1a8   :  { %4505 = vtanh.f32 %v443_v13  ;;  %v532_v35 = vadd.f32 %v531_v20, %v344_v14  ;;  %v446_v17 = vpop.f32.mrb[2].mxu0 }
 0x1a9   :  { %4507 = vtanh.f32 %v530_v18  ;;  %v447_v53 = vadd.f32 %v446_v17, %v5242_v15  ;;  %v448_v63 = vpop.f32.mrb[3].mxu0 }
 0x1aa   :  { %4509 = vtanh.f32 %v532_v35  ;;  %v535_v2 = vpop.f32.mrb[2].mxu1  ;;  %v449_v57 = vadd.f32 %v448_v63, %v5242_v15 }
 0x1ab   :  { %4511 = vtanh.f32 %v447_v53  ;;  %v536_v52 = vadd.f32 %v535_v2, %v5242_v15  ;;  %v537_v3 = vpop.f32.mrb[3].mxu1 }
 0x1ac   :  { %4513 = vtanh.f32 %v449_v57  ;;  %v538_v10 = vadd.f32 %v537_v3, %v5242_v15  ;;  %v452_v55 = vpop.f32.mrb[4].mxu0 }
 0x1ad   :  { %4515 = vtanh.f32 %v536_v52  ;;  %v453_v14 = vadd.f32 %v452_v55, %v354_v54  ;;  %v454_v11 = vpop.f32.mrb[5].mxu0 }
 0x1ae   :  { %4517 = vtanh.f32 %v538_v10  ;;  %v541_v6 = vpop.f32.mrb[4].mxu1  ;;  %v455_v62 = vadd.f32 %v454_v11, %v354_v54 }
 0x1af   :  { %4519 = vtanh.f32 %v453_v14  ;;  %v542_v40 = vadd.f32 %v541_v6, %v354_v54  ;;  %v543_v13 = vpop.f32.mrb[5].mxu1 }
 0x1b0   :  { %4521 = vtanh.f32 %v455_v62  ;;  %v544_v18 = vadd.f32 %v543_v13, %v354_v54  ;;  %v458_v20 = vpop.f32.mrb[6].mxu0 }
 0x1b1   :  { %v4504_v35 = vpop.eup %4503  ;;  %4523 = vtanh.f32 %v542_v40  ;;  %v459_v17 = vadd.f32 %v458_v20, %v5244_v45  ;;  %v460_v53 = vpop.f32.mrb[7].mxu0 }
 0x1b2   :  { %v4506_v63 = vpop.eup %4505  ;;  %4525 = vtanh.f32 %v544_v18  ;;  %v547_v15 = vpop.f32.mrb[6].mxu1  ;;  %v461_v2 = vadd.f32 %v460_v53, %v5244_v45 }
 0x1b3   :  { %v4508_v57 = vpop.eup %4507  ;;  %4527 = vtanh.f32 %v459_v17  ;;  %v548_v52 = vadd.f32 %v547_v15, %v5244_v45  ;;  %v549_v3 = vpop.f32.mrb[7].mxu1 }
 0x1b4   :  { %v4510_v10 = vpop.eup %4509  ;;  %4529 = vtanh.f32 %v461_v2  ;;  %v550_v54 = vadd.f32 %v549_v3, %v5244_v45 }
 0x1b5   :  { %v4512_v55 = vpop.eup %4511  ;;  %4531 = vtanh.f32 %v548_v52 }
 0x1b6   :  { %v4514_v14 = vpop.eup %4513  ;;  %4533 = vtanh.f32 %v550_v54  ;;  %v4257_v11 = vpack.c.bf16 %v4512_v55, %v4504_v35  ;;  %v4066_v55 = vld [vmem:[%s6684_s1 + $0x58] sm:$0xff] }
 0x1b7   :  { %v4516_v6 = vpop.eup %4515  ;;  %v4255_v62 = vpack.c.bf16 %v4514_v14, %v4506_v63  ;;  %v5392_v14 = vpop.permute.xlu0 %580 }
 0x1b8   :  { %v4518_v40 = vpop.eup %4517  ;;  %v4265_v13 = vpack.c.bf16 %v4516_v6, %v4508_v57  ;;  %v4063_v57 = vld [vmem:[%s6684_s1 + $0x40] sm:$0xff]  ;;  %6779 = vst [vmem:[#allocation23_spill] sm:$0xff] %v5392_v14 }
 0x1b9   :  { %v4520_v18 = vpop.eup %4519  ;;  %4256 = vmatprep.subr.bf16.mxu0 %v4255_v62  ;;  %v4263_v20 = vpack.c.bf16 %v4518_v40, %v4510_v10  ;;  %v4064_v10 = vld [vmem:[%s6684_s1 + $0x48] sm:$0xff] }
 0x1ba   :  { %v4522_v17 = vpop.eup %4521  ;;  %4258 = vmatpush1.bf16.msra.mxu0 %v4257_v11 }
 0x1bb   :  { %v4524_v53 = vpop.eup %4523  ;;  %4264 = vmatprep.subr.bf16.mxu1 %v4263_v20  ;;  %v5394_v11 = vpop.permute.xlu0 %590 }
 0x1bc   :  { %v4526_v15 = vpop.eup %4525  ;;  %4266 = vmatpush1.bf16.msra.mxu1 %v4265_v13  ;;  %6780 = vst [vmem:[#allocation24_spill] sm:$0xff] %v5394_v11 }
 0x1bd   :  { %v4528_v2 = vpop.eup %4527 }
 0x1be   :  { %v4530_v45 = vpop.eup %4529  ;;  %v4261_v3 = vpack.c.bf16 %v4528_v2, %v4520_v18  ;;  %v2199_v2 = vpop.permute.xlu1 %2198 }
 0x1bf   :  { %v4532_v52 = vpop.eup %4531  ;;  %v4259_v5 = vpack.c.bf16 %v4530_v45, %v4522_v17  ;;  %v5396_v6 = vpop.permute.xlu0 %1041 }
 0x1c0   :  { %v4534_v54 = vpop.eup %4533  ;;  %v4269_v35 = vpack.c.bf16 %v4532_v52, %v4524_v53 }
 0x1c1   :  { %4260 = vmatprep.subr.bf16.mxu0 %v4259_v5  ;;  %v4267_v63 = vpack.c.bf16 %v4534_v54, %v4526_v15  ;;  %v4065_v5 = vld [vmem:[%s6684_s1 + $0x50] sm:$0xff] }
 0x1c2   :  { %4262 = vmatpush1.bf16.msra.mxu0 %v4261_v3  ;;  %v2203_v3 = vpop.permute.xlu1 %2202 }
 0x1c3   :  { %4268 = vmatprep.subr.bf16.mxu1 %v4267_v63  ;;  %v5398_v62 = vpop.permute.xlu0 %1114  ;;  %v2220_v63 = vrot.slane %v5292_v28, %v5089_v34 }
 0x1c4   :  { %4270 = vmatpush1.bf16.msra.mxu1 %v4269_v35  ;;  %v2216_v35 = vrot.slane %v5292_v28, %v5085_v32 }
 0x1c5   :  { %4071 = vmatmul.mubr.msk.f32.vlgmr.msra.gmra.mrb[8].mxu0 %vm361_vm0, %v4063_v57  ;;  %v5434_v0 = vrot.slane %v2220_v63, %v5085_v32 }
 0x1c6   :  { %680 = vmatprep.mubr.f32.mxu0 %v6689_v19  ;;  %v5416_v54 = vpop.permute.xlu1 %2056 }
 0x1c7   :  { %4075 = vmatmul.mubr.msk.f32.vlgmr.msra.gmra.mrb[8].mxu1 %vm361_vm0, %v4063_v57  ;;  %v5400_v40 = vpop.permute.xlu0 %1122  ;;  %6788 = vst [vmem:[#allocation32_spill] sm:$0xff] %v5416_v54  ;;  %v2224_v57 = vrot.slane %v5294_v30, %v5085_v32  ;;  %6791 = vst [vmem:[#allocation35_spill] sm:$0xff] %v5434_v0  ;;  %v2254_v50 = vmul.f32 %v5434_v0, %v2203_v3 }
 0x1c8   :  { %769 = vmatprep.mubr.f32.mxu1 %v6689_v19  ;;  %6781 = vst [vmem:[#allocation25_spill] sm:$0xff] %v5400_v40 }
 0x1c9   :  { %4072 = vmatmul.mubr.msk.f32.gmra.mrb[10].mxu0 %vm361_vm0, %v4064_v10  ;;  %v5437_v1 = vrot.slane %v2224_v57, %v5085_v32 }
 0x1ca   :  { %686 = vmatprep.mubr.f32.mxu0 %v6689_v19 }
 0x1cb   :  { %4076 = vmatmul.mubr.msk.f32.gmra.mrb[10].mxu1 %vm361_vm0, %v4064_v10  ;;  %v5402_v13 = vpop.permute.xlu0 %1202  ;;  %v2228_v10 = vrot.slane %v5294_v30, %v5089_v34  ;;  %6792 = vst [vmem:[#allocation36_spill] sm:$0xff] %v5437_v1  ;;  %v2251_v9 = vmul.f32 %v5437_v1, %v2199_v2 }
 0x1cc   :  { %775 = vmatprep.mubr.f32.mxu1 %v6689_v19 }
 0x1cd   :  { %4073 = vmatmul.mubr.msk.f32.gmra.mrb[12].mxu0 %vm361_vm0, %v4065_v5  ;;  %v5440_v28 = vrot.slane %v2228_v10, %v5085_v32  ;;  %v2267_v40 = vadd.f32 %v2251_v9, %v5352_v4 }
 0x1ce   :  { %692 = vmatprep.mubr.f32.mxu0 %v6689_v19 }
 0x1cf   :  { %4077 = vmatmul.mubr.msk.f32.gmra.mrb[12].mxu1 %vm361_vm0, %v4065_v5  ;;  %v5404_v18 = vpop.permute.xlu0 %1210  ;;  %6793 = vst [vmem:[#allocation37_spill] sm:$0xff] %v5440_v28  ;;  %v2252_v21 = vmul.f32 %v5440_v28, %v2199_v2  ;;  %v2256_v49 = vmul.f32 %v5440_v28, %v2203_v3 }
 0x1d0   :  { %781 = vmatprep.mubr.f32.mxu1 %v6689_v19  ;;  %6782 = vst [vmem:[#allocation26_spill] sm:$0xff] %v5404_v18 }
 0x1d1   :  { %4074 = vmatmul.mubr.msk.f32.gmra.mrb[14].mxu0 %vm361_vm0, %v4066_v55 }
 0x1d2   :  { %907 = vmatprep.mubr.f32.mxu0 %v6689_v19 }
 0x1d3   :  { %4078 = vmatmul.mubr.msk.f32.gmra.mrb[14].mxu1 %vm361_vm0, %v4066_v55  ;;  %v5406_v20 = vpop.permute.xlu0 %1297  ;;  %v5428_v55 = vpop.permute.xlu1 %2122 }
 0x1d4   :  { %990 = vmatprep.mubr.f32.mxu1 %v6689_v19  ;;  %6783 = vst [vmem:[#allocation27_spill] sm:$0xff] %v5406_v20  ;;  %v5431_v19 = vrot.slane %v2216_v35, %v5085_v32 }
 0x1d6   :  { %6790 = vst [vmem:[#allocation34_spill] sm:$0xff] %v5431_v19  ;;  %v2249_v60 = vmul.f32 %v5431_v19, %v2199_v2  ;;  %v2253_v20 = vmul.f32 %v5431_v19, %v2203_v3 }
 0x1d7   :  { %v5408_v17 = vpop.permute.xlu0 %1352 }
 0x1d8   :  { %6784 = vst [vmem:[#allocation28_spill] sm:$0xff] %v5408_v17  ;;  %v2250_v17 = vmul.f32 %v5434_v0, %v2199_v2  ;;  %v2265_v8 = vadd.f32 %v2249_v60, %v5348_v56 }
 0x1da   :  { %v2266_v2 = vadd.f32 %v2250_v17, %v5350_v16  ;;  %v2173_v17 = vmul.f32 %v5329_v41, %v5428_v55 }
 0x1db   :  { %v5410_v53 = vpop.permute.xlu0 %1362 }
 0x1dc   :  { %6785 = vst [vmem:[#allocation29_spill] sm:$0xff] %v5410_v53 }
 0x1df   :  { %v2119_v15 = vpop.permute.xlu0 %2118 }
 0x1e0   :  { %v2169_v30 = vmul.f32 %v5329_v41, %v2119_v15  ;;  %v2171_v63 = vmul.f32 %v5335_v44, %v2119_v15  ;;  %v2172_v57 = vmul.f32 %v5338_v48, %v2119_v15 }
 0x1e3   :  { %v5412_v45 = vpop.permute.xlu0 %2126 }
 0x1e4   :  { %6786 = vst [vmem:[#allocation30_spill] sm:$0xff] %v5412_v45 }
 0x1e7   :  { %v5414_v52 = vpop.permute.xlu0 %1586 }
 0x1e8   :  { %6787 = vst [vmem:[#allocation31_spill] sm:$0xff] %v5414_v52  ;;  %v5442_v52 = vpop.permute.xlu1 %2206 }
 0x1eb   :  { %v5426_v5 = vpop.permute.xlu0 %1596 }
 0x1ec   :  { %6789 = vst [vmem:[#allocation33_spill] sm:$0xff] %v5426_v5  ;;  %v2170_v5 = vmul.f32 %v5332_v43, %v2119_v15  ;;  %v5458_v45 = vpop.permute.xlu1 %2210 }
 0x1ed   :  { %6794 = vst [vmem:[#allocation38_spill] sm:$0xff] %v5458_v45  ;;  %v2268_v45 = vadd.f32 %v2252_v21, %v5354_v26  ;;  %v5471_v21 = vld [vmem:[%s6685_s2 + $0x10] sm:$0xff] }
 0x1ee   :  { %2297 = vperm.xlu1 %4462, %v5471_v21  }
 0x1ef   :  { %v2047_v33 = vpop.permute.xlu0 %2046 }
 0x1f0   :  { %v2101_v61 = vmul.f32 %v5317_v36, %v2047_v33  ;;  %v2102_v35 = vmul.f32 %v5320_v37, %v2047_v33  ;;  %v2103_v53 = vmul.f32 %v5323_v38, %v2047_v33  ;;  %v2104_v10 = vmul.f32 %v5326_v39, %v2047_v33  ;;  %v2293_v42 = vpop.permute.xlu1 %2292 }
 0x1f1   :  { %v2255_v33 = vmul.f32 %v5437_v1, %v2203_v3 }
 0x1f2   :  { %v2185_v11 = vadd.f32 %v2169_v30, %v2101_v61  ;;  %v2186_v15 = vadd.f32 %v2170_v5, %v2102_v35  ;;  %v2187_v46 = vadd.f32 %v2171_v63, %v2103_v53  ;;  %v2188_v14 = vadd.f32 %v2172_v57, %v2104_v10 }
 0x1f3   :  { %v5456_v54 = vpop.permute.xlu0 %2051  ;;  %v2175_v10 = vmul.f32 %v5335_v44, %v5428_v55 }
 0x1f4   :  { %v2269_v47 = vadd.f32 %v2253_v20, %v2185_v11  ;;  %v2270_v18 = vadd.f32 %v2254_v50, %v2186_v15  ;;  %v2271_v35 = vadd.f32 %v2255_v33, %v2187_v46  ;;  %v2272_v63 = vadd.f32 %v2256_v49, %v2188_v14  ;;  %v5479_v50 = vld [vmem:[%s6685_s2 + $0x20] sm:$0xff]  ;;  %v5519_v20 = vld [vmem:[%s6685_s2 + $0x50] sm:$0xff] }
 0x1f5   :  { %2347 = vperm.xlu1 %4462, %v5479_v50   ;;  %v5509_v11 = vld [vmem:[%s6685_s2 + $0x40] sm:$0xff]  ;;  %v2176_v15 = vmul.f32 %v5338_v48, %v5428_v55  ;;  %v2105_v33 = vmul.f32 %v5317_v36, %v5456_v54 }
 0x1f6   :  { %v2309_v3 = vadd.f32 %v2293_v42, %v2269_v47  ;;  %v2310_v57 = vadd.f32 %v2293_v42, %v2270_v18  ;;  %v2311_v60 = vadd.f32 %v2293_v42, %v2271_v35  ;;  %v2312_v56 = vadd.f32 %v2293_v42, %v2272_v63  ;;  %v5491_v47 = vld [vmem:[%s6685_s2 + $0x30] sm:$0xff] }
 0x1f7   :  { %v2288_v58 = vpop.permute.xlu0 %2287  ;;  %v2258_v35 = vmul.f32 %v5434_v0, %v5442_v52  ;;  %v2260_v63 = vmul.f32 %v5440_v28, %v5442_v52 }
 0x1f8   :  { %v2305_v61 = vadd.f32 %v2288_v58, %v2265_v8  ;;  %v2306_v5 = vadd.f32 %v2288_v58, %v2266_v2  ;;  %v2307_v30 = vadd.f32 %v2288_v58, %v2267_v40  ;;  %v2308_v53 = vadd.f32 %v2288_v58, %v2268_v45 }
 0x1f9   :  { %2357 = vperm.xlu1 %4462, %v5491_v47   ;;  %v2174_v45 = vmul.f32 %v5332_v43, %v5428_v55  ;;  %v2106_v2 = vmul.f32 %v5320_v37, %v5456_v54  ;;  %v2257_v55 = vmul.f32 %v5431_v19, %v5442_v52 }
 0x1fa   :  { %4535 = vtanh.f32 %v2305_v61  ;;  %v2107_v61 = vmul.f32 %v5323_v38, %v5456_v54 }
 0x1fb   :  { %4537 = vtanh.f32 %v2306_v5  ;;  %v2108_v5 = vmul.f32 %v5326_v39, %v5456_v54 }
 0x1fc   :  { %4539 = vtanh.f32 %v2307_v30  ;;  %v3035_v30 = vld [vmem:[%s6684_s1] sm:$0xff]  ;;  %v2191_v54 = vadd.f32 %v2175_v10, %v2107_v61  ;;  %v1033_v10 = vld [vmem:[#allocation2 + $0x10] sm:$0x77] }
 0x1fd   :  { %4541 = vtanh.f32 %v2308_v53  ;;  %2581 = vperm.xlu1 %4462, %v5509_v11   ;;  %v2259_v53 = vmul.f32 %v5437_v1, %v5442_v52  ;;  %v5562_v52 = vld [vmem:[%s6684_s1 + $0x8] sm:$0xff]  ;;  %v6809_v1 = vld [vmem:[#allocation26_spill] sm:$0xff] }
 0x1fe   :  { %4543 = vtanh.f32 %v2309_v3  ;;  %v2189_v3 = vadd.f32 %v2173_v17, %v2105_v33  ;;  %6805 = vst [vmem:[#allocation47_spill] sm:$0xff] %v5562_v52  ;;  %v5568_v17 = vld [vmem:[%s6684_s1 + $0x18] sm:$0xff]  ;;  %v1132_v33 = vrot.slane %v1033_v10, %v5067_v24 }
 0x1ff   :  { %4545 = vtanh.f32 %v2310_v57  ;;  %v2190_v57 = vadd.f32 %v2174_v45, %v2106_v2  ;;  %v5554_v18 = vadd.f32 %v2259_v53, %v2191_v54  ;;  %6806 = vst [vmem:[#allocation48_spill] sm:$0xff] %v5568_v17  ;;  %v6807_v45 = vmov 0  }
 0x200   :  { %4547 = vtanh.f32 %v2311_v60  ;;  %v2192_v60 = vadd.f32 %v2176_v15, %v2108_v5  ;;  %v5550_v40 = vadd.f32 %v2257_v55, %v2189_v3  ;;  %v1034_v15 = vld [vmem:[#allocation2 + $0x18] sm:$0x77]  ;;  %v1136_v2 = vrot.slane %v1033_v10, %v5074_v27 }
 0x201   :  { %4549 = vtanh.f32 %v2312_v56  ;;  %2591 = vperm.xlu1 %4462, %v5519_v20   ;;  %v6803_v56 = vmov 1   ;;  %v5552_v16 = vadd.f32 %v2258_v35, %v2190_v57  ;;  %v1140_v61 = vrot.slane %v1034_v15, %v5067_v24 }
 0x202   :  { %v5556_v26 = vadd.f32 %v2260_v63, %v2192_v60  ;;  %v1068_v5 = vrot.slane %v1033_v10, %v5081_v31  ;;  %v5589_v55 = vrot.slane %v1132_v33, %v5067_v24  ;;  %v5592_v35 = vrot.slane %v1136_v2, %v5067_v24 }
 0x203   :  { %v1216_v57 = vrot.slane %v1033_v10, %v5085_v32 }
 0x204   :  { %v5474_v49 = vpop.eup %4535  ;;  %v5605_v3 = vrot.slane %v1068_v5, %v5077_v29  ;;  %v1165_v33 = vmul.f32 %v5589_v55, %v5398_v62  ;;  %v1166_v2 = vmul.f32 %v5592_v35, %v5398_v62 }
 0x205   :  { %6795 = vst [vmem:[#allocation39_spill] sm:$0xff] %v5474_v49  ;;  %v5481_v8 = vpop.eup %4537  ;;  %3041 = vperm.xlu1 %4462, %v3035_v30  }
 0x206   :  { %6796 = vst [vmem:[#allocation40_spill] sm:$0xff] %v5481_v8  ;;  %v5484_v46 = vpop.eup %4539  ;;  %v1169_v8 = vmul.f32 %v5589_v55, %v5252_v59 }
 0x207   :  { %6797 = vst [vmem:[#allocation41_spill] sm:$0xff] %v5484_v46  ;;  %v5486_v42 = vpop.eup %4541  ;;  %v6804_v46 = vmov 2  }
 0x208   :  { %6798 = vst [vmem:[#allocation42_spill] sm:$0xff] %v5486_v42  ;;  %v5493_v58 = vpop.eup %4543 }
 0x209   :  { %6799 = vst [vmem:[#allocation43_spill] sm:$0xff] %v5493_v58  ;;  %v5495_v9 = vpop.eup %4545  ;;  %4463 = vset.pattern.permute.xlu1 %v6803_v56 }
 0x20a   :  { %6800 = vst [vmem:[#allocation44_spill] sm:$0xff] %v5495_v9  ;;  %v5500_v4 = vpop.eup %4547  ;;  %3114 = vperm.xlu1 %4463, %v3035_v30  }
 0x20b   :  { %6801 = vst [vmem:[#allocation45_spill] sm:$0xff] %v5500_v4  ;;  %v5504_v14 = vpop.eup %4549 }
 0x20c   :  { %6802 = vst [vmem:[#allocation46_spill] sm:$0xff] %v5504_v14 }
 0x20e   :  { %4465 = vset.pattern.permute.xlu1 %v6804_v46 }
 0x20f   :  { %3198 = vperm.xlu1 %4465, %v3035_v30   ;;  %v1072_v30 = vrot.slane %v1034_v15, %v5077_v29 }
 0x211   :  { %v5609_v54 = vrot.slane %v1072_v30, %v5077_v29  ;;  %v1098_v30 = vmul.f32 %v5605_v3, %v5396_v6 }
 0x213   :  { %3202 = vperm.xlu1 %4465, %v5562_v52  }
 0x217   :  { %4466 = vset.pattern.permute.xlu1 %v6807_v45 }
 0x218   :  { %3056 = vperm.xlu1 %4466, %v5568_v17  }
 0x21c   :  { %4467 = vset.pattern.permute.xlu1 %v6803_v56 }
 0x21d   :  { %3122 = vperm.xlu1 %4467, %v5271_v25  }
 0x221   :  { %4469 = vset.pattern.permute.xlu1 %v6804_v46  ;;  %v1144_v46 = vrot.slane %v1034_v15, %v5074_v27 }
 0x222   :  { %3206 = vperm.xlu1 %4469, %v5271_v25   ;;  %v1064_v25 = vrot.slane %v1033_v10, %v5077_v29 }
 0x223   :  { %v5599_v53 = vrot.slane %v1144_v46, %v5067_v24  ;;  %v1228_v46 = vrot.slane %v1034_v15, %v5089_v34 }
 0x224   :  { %v5602_v63 = vrot.slane %v1064_v25, %v5077_v29 }
 0x225   :  { %v1168_v5 = vmul.f32 %v5599_v53, %v5398_v62  ;;  %v5644_v42 = vrot.slane %v1228_v46, %v5085_v32 }
 0x226   :  { %3210 = vperm.xlu1 %4469, %v5568_v17   ;;  %v5683_v17 = vld [vmem:[%s6685_s2 + $0x60] sm:$0xff] }
 0x22a   :  { %4470 = vset.pattern.permute.xlu1 %v6807_v45 }
 0x22b   :  { %3292 = vperm.xlu1 %4470, %v5288_v12   ;;  %v1076_v12 = vrot.slane %v1034_v15, %v5081_v31 }
 0x22d   :  { %v5612_v60 = vrot.slane %v1076_v12, %v5077_v29  ;;  %v5631_v12 = vrot.slane %v1216_v57, %v5085_v32 }
 0x22f   :  { %3297 = vperm.xlu1 %4470, %v5471_v21   ;;  %v5596_v21 = vrot.slane %v1140_v61, %v5067_v24  ;;  %v1224_v61 = vrot.slane %v1034_v15, %v5085_v32  ;;  %v1099_v15 = vmul.f32 %v5609_v54, %v5396_v6  ;;  %v1261_v0 = vmul.f32 %v5631_v12, %v6809_v1 }
 0x231   :  { %v1167_v25 = vmul.f32 %v5596_v21, %v5398_v62  ;;  %v1182_v62 = vadd.f32 %v1166_v2, %v1098_v30  ;;  %v5641_v58 = vrot.slane %v1224_v61, %v5085_v32  ;;  %v1253_v2 = vmul.f32 %v5631_v12, %v5402_v13 }
 0x232   :  { %v1101_v61 = vmul.f32 %v5602_v63, %v5250_v22  ;;  %v1103_v30 = vmul.f32 %v5609_v54, %v5250_v22 }
 0x233   :  { %3347 = vperm.xlu1 %4470, %v5479_v50   ;;  %v1220_v50 = vrot.slane %v1033_v10, %v5089_v34  ;;  %v1097_v10 = vmul.f32 %v5602_v63, %v5396_v6  ;;  %v1183_v57 = vadd.f32 %v1167_v25, %v1099_v15  ;;  %v1251_v46 = vmul.f32 %v5641_v58, %v5254_v7 }
 0x234   :  { %v1109_v25 = vmul.f32 %v5602_v63, %v5258_v51  ;;  %v1172_v15 = vmul.f32 %v5599_v53, %v5252_v59  ;;  %v1185_v9 = vadd.f32 %v1169_v8, %v1101_v61  ;;  %v6808_v61 = vld [vmem:[#allocation15_spill] sm:$0xff] }
 0x235   :  { %v5638_v4 = vrot.slane %v1220_v50, %v5085_v32  ;;  %v1181_v49 = vadd.f32 %v1165_v33, %v1097_v10  ;;  %v1170_v50 = vmul.f32 %v5592_v35, %v5252_v59  ;;  %v1171_v33 = vmul.f32 %v5596_v21, %v5252_v59 }
 0x236   :  { %v1102_v10 = vmul.f32 %v5605_v3, %v5250_v22  ;;  %v1255_v32 = vmul.f32 %v5641_v58, %v5402_v13  ;;  %v1104_v59 = vmul.f32 %v5612_v60, %v5250_v22  ;;  %v1267_v8 = vadd.f32 %v1251_v46, %v1183_v57 }
 0x237   :  { %3357 = vperm.xlu1 %4470, %v5491_v47   ;;  %v1100_v47 = vmul.f32 %v5612_v60, %v5396_v6  ;;  %v1249_v6 = vmul.f32 %v5631_v12, %v5254_v7  ;;  %v1254_v34 = vmul.f32 %v5638_v4, %v5402_v13 }
 0x238   :  { %v1186_v52 = vadd.f32 %v1170_v50, %v1102_v10  ;;  %v1188_v19 = vadd.f32 %v1172_v15, %v1104_v59  ;;  %v1307_v22 = vadd.f32 %v6808_v61, %v1267_v8  ;;  %v1269_v50 = vadd.f32 %v1253_v2, %v1185_v9  ;;  %v6812_v2 = vld [vmem:[#allocation13_spill] sm:$0xff]  ;;  %v6814_v10 = vld [vmem:[#allocation23_spill] sm:$0xff] }
 0x239   :  { %v1184_v14 = vadd.f32 %v1168_v5, %v1100_v47  ;;  %v1177_v5 = vmul.f32 %v5589_v55, %v5260_v23  ;;  %v1252_v47 = vmul.f32 %v5644_v42, %v5254_v7  ;;  %v1265_v45 = vadd.f32 %v1249_v6, %v1181_v49 }
 0x23a   :  { %v1256_v49 = vmul.f32 %v5644_v42, %v5402_v13  ;;  %v1270_v57 = vadd.f32 %v1254_v34, %v1186_v52  ;;  %v1105_v34 = vmul.f32 %v5602_v63, %v6812_v2  ;;  %v1107_v52 = vmul.f32 %v5609_v54, %v6812_v2 }
 0x23b   :  { %3581 = vperm.xlu1 %4470, %v5509_v11   ;;  %v1250_v11 = vmul.f32 %v5638_v4, %v5254_v7  ;;  %v1187_v7 = vadd.f32 %v1171_v33, %v1103_v30  ;;  %v1305_v28 = vadd.f32 %v6808_v61, %v1265_v45  ;;  %v1268_v6 = vadd.f32 %v1252_v47, %v1184_v14  ;;  %v6810_v33 = vld [vmem:[#allocation16_spill] sm:$0xff] }
 0x23c   :  { %v1310_v13 = vadd.f32 %v6810_v33, %v1270_v57  ;;  %v1108_v47 = vmul.f32 %v5612_v60, %v6812_v2  ;;  %v1110_v8 = vmul.f32 %v5605_v3, %v5258_v51 }
 0x23d   :  { %v1266_v56 = vadd.f32 %v1250_v11, %v1182_v62  ;;  %v1308_v62 = vadd.f32 %v6808_v61, %v1268_v6  ;;  %4551 = vtanh.f32 %v1305_v28  ;;  %v1271_v45 = vadd.f32 %v1255_v32, %v1187_v7  ;;  %v6813_v32 = vld [vmem:[#allocation17_spill] sm:$0xff] }
 0x23e   :  { %v1309_v11 = vadd.f32 %v6810_v33, %v1269_v50 }
 0x23f   :  { %3591 = vperm.xlu1 %4470, %v5519_v20   ;;  %v1193_v20 = vadd.f32 %v1177_v5, %v1109_v25  ;;  %v1306_v39 = vadd.f32 %v6808_v61, %v1266_v56  ;;  %v1272_v25 = vadd.f32 %v1256_v49, %v1188_v19  ;;  %v1311_v14 = vadd.f32 %v6810_v33, %v1271_v45  ;;  %v6811_v5 = vld [vmem:[#allocation25_spill] sm:$0xff] }
 0x240   :  { %v1173_v9 = vmul.f32 %v5589_v55, %v6811_v5  ;;  %v1175_v19 = vmul.f32 %v5596_v21, %v6811_v5  ;;  %v1176_v63 = vmul.f32 %v5599_v53, %v6811_v5  ;;  %v1178_v61 = vmul.f32 %v5592_v35, %v5260_v23 }
 0x241   :  { %v1277_v46 = vadd.f32 %v1261_v0, %v1193_v20  ;;  %4553 = vtanh.f32 %v1306_v39  ;;  %v1312_v56 = vadd.f32 %v6810_v33, %v1272_v25  ;;  %v1174_v0 = vmul.f32 %v5592_v35, %v6811_v5 }
 0x242   :  { %4555 = vtanh.f32 %v1307_v22  ;;  %v1106_v39 = vmul.f32 %v5605_v3, %v6812_v2  ;;  %v5718_v59 = vadd.f32 %v1173_v9, %v1105_v34  ;;  %v1112_v3 = vmul.f32 %v5612_v60, %v5258_v51 }
 0x243   :  { %816 = vperm.xlu1 %4470, %v5683_v17   ;;  %4557 = vtanh.f32 %v1308_v62  ;;  %v1317_v28 = vadd.f32 %v6813_v32, %v1277_v46  ;;  %v5728_v62 = vadd.f32 %v1175_v19, %v1107_v52  ;;  %v1180_v35 = vmul.f32 %v5599_v53, %v5260_v23 }
 0x244   :  { %4559 = vtanh.f32 %v1309_v11  ;;  %v1190_v50 = vadd.f32 %v1174_v0, %v1106_v39  ;;  %v6815_v11 = vld [vmem:[#allocation11_spill] sm:$0xff]  ;;  %v1194_v2 = vadd.f32 %v1178_v61, %v1110_v8  ;;  %v1262_v53 = vmul.f32 %v5638_v4, %v6809_v1 }
 0x245   :  { %4561 = vtanh.f32 %v1310_v13  ;;  %v1196_v52 = vadd.f32 %v1180_v35, %v1112_v3  ;;  %v1263_v3 = vmul.f32 %v5641_v58, %v6809_v1 }
 0x246   :  { %4563 = vtanh.f32 %v1311_v14  ;;  %v1111_v14 = vmul.f32 %v5609_v54, %v5258_v51  ;;  %v1192_v51 = vadd.f32 %v1176_v63, %v1108_v47  ;;  %v6816_v54 = vld [vmem:[#allocation14_spill] sm:$0xff] }
 0x247   :  { %4565 = vtanh.f32 %v1312_v56  ;;  %v5726_v22 = vpop.eup %4551  ;;  %v1179_v56 = vmul.f32 %v5596_v21, %v5260_v23  ;;  %v1258_v23 = vmul.f32 %v5638_v4, %v6816_v54  ;;  %v1260_v4 = vmul.f32 %v5644_v42, %v6816_v54 }
 0x248   :  { %4567 = vtanh.f32 %v1317_v28  ;;  %v1257_v61 = vmul.f32 %v5631_v12, %v6816_v54 }
 0x249   :  { %v1195_v63 = vadd.f32 %v1179_v56, %v1111_v14  ;;  %v6818_v14 = vld [vmem:[#allocation12_spill] sm:$0xff] }
 0x24b   :  { %v5731_v33 = vpop.eup %4553 }
 0x24c   :  { %v5738_v13 = vpop.eup %4555 }
 0x24d   :  { %v5745_v60 = vpop.eup %4557 }
 0x24e   :  { %v5750_v0 = vpop.eup %4559 }
 0x24f   :  { %v5755_v39 = vpop.eup %4561 }
 0x298   :  { %v676_v55 = vpop.f32.mrb[8].mxu0 }
 0x299   :  { %v677_v30 = vadd.f32 %v676_v55, %v6814_v10  ;;  %v678_v15 = vpop.f32.mrb[9].mxu0  ;;  %v1264_v55 = vmul.f32 %v5644_v42, %v6809_v1  ;;  %v1274_v42 = vadd.f32 %v1258_v23, %v1190_v50 }
 0x29a   :  { %v765_v7 = vpop.f32.mrb[8].mxu1  ;;  %v679_v20 = vadd.f32 %v678_v15, %v6814_v10 }
 0x29b   :  { %4569 = vtanh.f32 %v677_v30  ;;  %v766_v49 = vadd.f32 %v765_v7, %v6814_v10  ;;  %v767_v6 = vpop.f32.mrb[9].mxu1  ;;  %v5760_v7 = vpop.eup %4563  ;;  %v1280_v12 = vadd.f32 %v1264_v55, %v1196_v52 }
 0x29c   :  { %4571 = vtanh.f32 %v679_v20  ;;  %v768_v57 = vadd.f32 %v767_v6, %v6814_v10  ;;  %v682_v45 = vpop.f32.mrb[10].mxu0  ;;  %v6817_v10 = vld [vmem:[#allocation24_spill] sm:$0xff]  ;;  %v5765_v8 = vpop.eup %4565 }
 0x29d   :  { %4573 = vtanh.f32 %v766_v49  ;;  %v683_v46 = vadd.f32 %v682_v45, %v6815_v11  ;;  %v684_v25 = vpop.f32.mrb[11].mxu0  ;;  %v1278_v49 = vadd.f32 %v1262_v53, %v1194_v2  ;;  %v5770_v45 = vpop.eup %4567  ;;  %v1276_v2 = vadd.f32 %v1260_v4, %v1192_v51 }
 0x29e   :  { %4575 = vtanh.f32 %v768_v57  ;;  %v771_v5 = vpop.f32.mrb[10].mxu1  ;;  %v685_v9 = vadd.f32 %v684_v25, %v6815_v11  ;;  %v1259_v25 = vmul.f32 %v5641_v58, %v6816_v54 }
 0x29f   :  { %4577 = vtanh.f32 %v683_v46  ;;  %v772_v34 = vadd.f32 %v771_v5, %v6815_v11  ;;  %v773_v28 = vpop.f32.mrb[11].mxu1 }
 0x2a0   :  { %4579 = vtanh.f32 %v685_v9  ;;  %v774_v21 = vadd.f32 %v773_v28, %v6815_v11  ;;  %v688_v19 = vpop.f32.mrb[12].mxu0  ;;  %v1273_v28 = vadd.f32 %v1257_v61, %v5718_v59 }
 0x2a1   :  { %4581 = vtanh.f32 %v772_v34  ;;  %v689_v30 = vadd.f32 %v688_v19, %v6817_v10  ;;  %v690_v15 = vpop.f32.mrb[13].mxu0  ;;  %v1318_v34 = vadd.f32 %v6813_v32, %v1278_v49  ;;  %v6819_v19 = vld [vmem:[#allocation27_spill] sm:$0xff] }
 0x2a2   :  { %4583 = vtanh.f32 %v774_v21  ;;  %v777_v47 = vpop.f32.mrb[12].mxu1  ;;  %v691_v20 = vadd.f32 %v690_v15, %v6817_v10  ;;  %v1279_v21 = vadd.f32 %v1263_v3, %v1195_v63  ;;  %v1314_v52 = vadd.f32 %v6819_v19, %v1274_v42 }
 0x2a3   :  { %4585 = vtanh.f32 %v689_v30  ;;  %v778_v6 = vadd.f32 %v777_v47, %v6817_v10  ;;  %v779_v57 = vpop.f32.mrb[13].mxu1  ;;  %v1275_v30 = vadd.f32 %v1259_v25, %v5728_v62  ;;  %v1316_v59 = vadd.f32 %v6819_v19, %v1276_v2 }
 0x2a4   :  { %4587 = vtanh.f32 %v691_v20  ;;  %v780_v35 = vadd.f32 %v779_v57, %v6817_v10  ;;  %v694_v11 = vpop.f32.mrb[14].mxu0  ;;  %v1320_v10 = vadd.f32 %v6813_v32, %v1280_v12  ;;  %v1313_v63 = vadd.f32 %v6819_v19, %v1273_v28 }
 0x2a5   :  { %v4570_v46 = vpop.eup %4569  ;;  %4589 = vtanh.f32 %v778_v6  ;;  %v695_v56 = vadd.f32 %v694_v11, %v6818_v14  ;;  %v696_v5 = vpop.f32.mrb[15].mxu0  ;;  %v1319_v49 = vadd.f32 %v6813_v32, %v1279_v21  ;;  %v1315_v62 = vadd.f32 %v6819_v19, %v1275_v30 }
 0x2a6   :  { %v4572_v9 = vpop.eup %4571  ;;  %4591 = vtanh.f32 %v780_v35  ;;  %v783_v53 = vpop.f32.mrb[14].mxu1  ;;  %v697_v1 = vadd.f32 %v696_v5, %v6818_v14  ;;  %v4295_v28 = vpack.c.bf16 %v5765_v8, %v5745_v60  ;;  %v4297_v21 = vpack.c.bf16 %v5760_v7, %v5738_v13  ;;  %v5806_v60 = vld [vmem:[%s6684_s1 + $0x68] sm:$0xff] }
 0x2a7   :  { %v4574_v50 = vpop.eup %4573  ;;  %4593 = vtanh.f32 %v695_v56  ;;  %v784_v23 = vadd.f32 %v783_v53, %v6818_v14  ;;  %v785_v58 = vpop.f32.mrb[15].mxu1  ;;  %v4287_v53 = vpack.c.bf16 %v5755_v39, %v5731_v33  ;;  %v6820_v19 = vmov 0.0  }
 0x2a8   :  { %v4576_v54 = vpop.eup %4575  ;;  %4595 = vtanh.f32 %v697_v1  ;;  %v786_v51 = vadd.f32 %v785_v58, %v6818_v14  ;;  %v4289_v58 = vpack.c.bf16 %v5750_v0, %v5726_v22 }
 0x2a9   :  { %v4578_v55 = vpop.eup %4577  ;;  %4597 = vtanh.f32 %v784_v23 }
 0x2aa   :  { %v4580_v15 = vpop.eup %4579  ;;  %4599 = vtanh.f32 %v786_v51  ;;  %v4273_v4 = vpack.c.bf16 %v4578_v55, %v4570_v46 }
 0x2ab   :  { %v4582_v47 = vpop.eup %4581  ;;  %4601 = vtanh.f32 %v1318_v34  ;;  %v4271_v20 = vpack.c.bf16 %v4580_v15, %v4572_v9  ;;  %v5864_v15 = vld [vmem:[#allocation2 + $0x30] sm:$0x77] }
 0x2ac   :  { %v4584_v61 = vpop.eup %4583  ;;  %4603 = vtanh.f32 %v1314_v52  ;;  %v4281_v6 = vpack.c.bf16 %v4582_v47, %v4574_v50  ;;  %v4079_v50 = vld [vmem:[%s6684_s1 + $0x60] sm:$0xff]  ;;  %v2298_v52 = vpop.permute.xlu1 %2297  ;;  %v3064_v47 = vrot.slane %v5864_v15, %v5077_v29 }
 0x2ad   :  { %v4586_v57 = vpop.eup %4585  ;;  %4605 = vtanh.f32 %v1320_v10  ;;  %4272 = vmatprep.subr.bf16.mxu0 %v4271_v20  ;;  %v4279_v3 = vpack.c.bf16 %v4584_v61, %v4576_v54  ;;  %v5814_v13 = vadd.f32 %v2298_v52, %v5550_v40  ;;  %v5817_v7 = vadd.f32 %v2298_v52, %v5552_v16  ;;  %v5842_v40 = vld [vmem:[%s6684_s1 + $0x78] sm:$0xff] }
 0x2ae   :  { %v4588_v42 = vpop.eup %4587  ;;  %4607 = vtanh.f32 %v1316_v59  ;;  %4274 = vmatpush1.bf16.msra.mxu0 %v4273_v4  ;;  %v5820_v51 = vadd.f32 %v2298_v52, %v5554_v18  ;;  %v5829_v10 = vadd.f32 %v2298_v52, %v5556_v26  ;;  %v5855_v18 = vld [vmem:[%s6684_s1 + $0x20] sm:$0xff]  ;;  %v5866_v59 = vld [vmem:[#allocation2 + $0x38] sm:$0x77] }
 0x2af   :  { %v4590_v35 = vpop.eup %4589  ;;  %4609 = vtanh.f32 %v1313_v63  ;;  %4280 = vmatprep.subr.bf16.mxu1 %v4279_v3  ;;  %v3068_v63 = vrot.slane %v5864_v15, %v5081_v31  ;;  %v3072_v20 = vrot.slane %v5866_v59, %v5077_v29  ;;  %v3076_v61 = vrot.slane %v5866_v59, %v5081_v31 }
 0x2b0   :  { %v4592_v11 = vpop.eup %4591  ;;  %4611 = vtanh.f32 %v1319_v49  ;;  %4282 = vmatpush1.bf16.msra.mxu1 %v4281_v6  ;;  %v5834_v16 = vpop.permute.xlu1 %2347  ;;  %v4855_v49 = vld [vmem:[%s6684_s1 + $0x28] sm:$0xff]  ;;  %v3132_v6 = vrot.slane %v5864_v15, %v5067_v24  ;;  %v3144_v31 = vrot.slane %v5866_v59, %v5074_v27  ;;  %v5898_v3 = vrot.slane %v3064_v47, %v5077_v29 }
 0x2b1   :  { %v4594_v46 = vpop.eup %4593  ;;  %4613 = vtanh.f32 %v1315_v62  ;;  %6821 = vst [vmem:[#allocation15_spill] sm:$0xff] %v5834_v16  ;;  %v3140_v62 = vrot.slane %v5866_v59, %v5067_v24 }
 0x2b2   :  { %v4596_v32 = vpop.eup %4595  ;;  %v4277_v25 = vpack.c.bf16 %v4594_v46, %v4586_v57  ;;  %v3136_v57 = vrot.slane %v5864_v15, %v5074_v27  ;;  %v4856_v27 = vld [vmem:[%s6684_s1 + $0x30] sm:$0xff] }
 0x2b3   :  { %v4598_v12 = vpop.eup %4597  ;;  %v4275_v14 = vpack.c.bf16 %v4596_v32, %v4588_v42  ;;  %v5901_v42 = vrot.slane %v3068_v63, %v5077_v29  ;;  %v5915_v32 = vrot.slane %v3132_v6, %v5067_v24  ;;  %v6828_v6 = vld [vmem:[#allocation38_spill] sm:$0xff] }
 0x2b4   :  { %v4600_v56 = vpop.eup %4599  ;;  %v4285_v5 = vpack.c.bf16 %v4598_v12, %v4590_v35  ;;  %v5847_v26 = vpop.permute.xlu1 %2357  ;;  %v5904_v35 = vrot.slane %v3072_v20, %v5077_v29  ;;  %v5921_v12 = vrot.slane %v3140_v62, %v5067_v24 }
 0x2b5   :  { %v4602_v9 = vpop.eup %4601  ;;  %4276 = vmatprep.subr.bf16.mxu0 %v4275_v14  ;;  %v4283_v2 = vpack.c.bf16 %v4600_v56, %v4592_v11  ;;  %6822 = vst [vmem:[#allocation26_spill] sm:$0xff] %v5847_v26  ;;  %v5907_v11 = vrot.slane %v3076_v61, %v5077_v29  ;;  %v5924_v29 = vrot.slane %v3144_v31, %v5067_v24 }
 0x2b6   :  { %v4604_v1 = vpop.eup %4603  ;;  %4278 = vmatpush1.bf16.msra.mxu0 %v4277_v25  ;;  %v5918_v25 = vrot.slane %v3136_v57, %v5067_v24 }
 0x2b7   :  { %v4606_v34 = vpop.eup %4605  ;;  %4284 = vmatprep.subr.bf16.mxu1 %v4283_v2  ;;  %4288 = vmatprep.subr.bf16.mxu0 %v4287_v53  ;;  %v4291_v33 = vpack.c.bf16 %v4602_v9, %v4604_v1  ;;  %v4857_v2 = vld [vmem:[%s6684_s1 + $0x38] sm:$0xff] }
 0x2b8   :  { %v4608_v23 = vpop.eup %4607  ;;  %4286 = vmatpush1.bf16.msra.mxu1 %v4285_v5  ;;  %v5860_v30 = vpop.permute.xlu1 %2581 }
 0x2b9   :  { %v4610_v54 = vpop.eup %4609  ;;  %4296 = vmatprep.subr.bf16.mxu1 %v4295_v28  ;;  %4087 = vmatmul.mubr.msk.f32.vlgmr.msra.gmra.mrb[16].mxu0 %vm361_vm0, %v4079_v50  ;;  %v4299_v22 = vpack.c.bf16 %v4606_v34, %v4608_v23  ;;  %6823 = vst [vmem:[#allocation16_spill] sm:$0xff] %v5860_v30 }
 0x2ba   :  { %v4612_v39 = vpop.eup %4611  ;;  %4290 = vmatpush1.bf16.msra.mxu0 %v4289_v58  ;;  %913 = vmatprep.mubr.f32.mxu0 %v6820_v19  ;;  %v4293_v0 = vpack.c.bf16 %v5770_v45, %v4610_v54  ;;  %v5826_v45 = vld [vmem:[%s6684_s1 + $0x70] sm:$0xff] }
 0x2bb   :  { %v4614_v8 = vpop.eup %4613  ;;  %4091 = vmatmul.mubr.msk.f32.vlgmr.msra.gmra.mrb[16].mxu1 %vm361_vm0, %v4079_v50  ;;  %4292 = vmatprep.subr.bf16.mxu0 %v4291_v33  ;;  %v6825_v33 = vld [vmem:[#allocation30_spill] sm:$0xff] }
 0x2bc   :  { %4298 = vmatpush1.bf16.msra.mxu1 %v4297_v21  ;;  %996 = vmatprep.mubr.f32.mxu1 %v6820_v19  ;;  %v4301_v55 = vpack.c.bf16 %v4612_v39, %v4614_v8  ;;  %v5872_v4 = vpop.permute.xlu1 %2591  ;;  %v2177_v39 = vmul.f32 %v5329_v41, %v6825_v33  ;;  %v2178_v21 = vmul.f32 %v5332_v43, %v6825_v33  ;;  %v6827_v41 = vld [vmem:[#allocation22_spill] sm:$0xff] }
 0x2bd   :  { %4300 = vmatprep.subr.bf16.mxu1 %v4299_v22  ;;  %4088 = vmatmul.mubr.msk.f32.gmra.mrb[18].mxu0 %vm361_vm0, %v5806_v60  ;;  %6824 = vst [vmem:[#allocation25_spill] sm:$0xff] %v5872_v4  ;;  %v2179_v8 = vmul.f32 %v5335_v44, %v6825_v33  ;;  %v2180_v22 = vmul.f32 %v5338_v48, %v6825_v33  ;;  %v6829_v48 = vld [vmem:[#allocation34_spill] sm:$0xff]  ;;  %v6834_v33 = vld [vmem:[#allocation47_spill] sm:$0xff] }
 0x2be   :  { %4294 = vmatpush1.bf16.msra.mxu0 %v4293_v0  ;;  %917 = vmatprep.mubr.f32.mxu0 %v6820_v19  ;;  %v6826_v0 = vld [vmem:[#allocation32_spill] sm:$0xff]  ;;  %v2261_v57 = vmul.f32 %v6829_v48, %v6828_v6 }
 0x2bf   :  { %4092 = vmatmul.mubr.msk.f32.gmra.mrb[18].mxu1 %vm361_vm0, %v5806_v60  ;;  %v2109_v52 = vmul.f32 %v5317_v36, %v6826_v0  ;;  %v2111_v47 = vmul.f32 %v5323_v38, %v6826_v0  ;;  %v2112_v63 = vmul.f32 %v6827_v41, %v6826_v0  ;;  %v6830_v36 = vld [vmem:[#allocation35_spill] sm:$0xff]  ;;  %v6832_v38 = vld [vmem:[#allocation37_spill] sm:$0xff]  ;;  %v4858_v41 = vld [vmem:[%s6684_s1 + $0x10] sm:$0xff] }
 0x2c0   :  { %4302 = vmatpush1.bf16.msra.mxu1 %v4301_v55  ;;  %1000 = vmatprep.mubr.f32.mxu1 %v6820_v19  ;;  %v3042_v46 = vpop.permute.xlu1 %3041  ;;  %v2110_v55 = vmul.f32 %v5320_v37, %v6826_v0  ;;  %v2262_v62 = vmul.f32 %v6830_v36, %v6828_v6  ;;  %v6831_v37 = vld [vmem:[#allocation36_spill] sm:$0xff]  ;;  %v6836_v0 = vmov 0  }
 0x2c1   :  { %4089 = vmatmul.mubr.msk.f32.gmra.mrb[20].mxu0 %vm361_vm0, %v5826_v45  ;;  %v3097_v14 = vmul.f32 %v5898_v3, %v3042_v46  ;;  %v3098_v56 = vmul.f32 %v5901_v42, %v3042_v46  ;;  %v3099_v5 = vmul.f32 %v5904_v35, %v3042_v46  ;;  %v3100_v9 = vmul.f32 %v5907_v11, %v3042_v46 }
 0x2c2   :  { %921 = vmatprep.mubr.f32.mxu0 %v6820_v19  ;;  %v2193_v43 = vadd.f32 %v2177_v39, %v2109_v52  ;;  %v2194_v61 = vadd.f32 %v2178_v21, %v2110_v55  ;;  %v2195_v44 = vadd.f32 %v2179_v8, %v2111_v47  ;;  %v2263_v31 = vmul.f32 %v6831_v37, %v6828_v6  ;;  %v6835_v21 = vld [vmem:[#allocation48_spill] sm:$0xff]  ;;  %v4164_v8 = vld [vmem:[%s6685_s2 + $0x48] sm:$0xff]  ;;  %v4166_v52 = vld [vmem:[%s6685_s2 + $0x58] sm:$0xff] }
 0x2c3   :  { %4093 = vmatmul.mubr.msk.f32.gmra.mrb[20].mxu1 %vm361_vm0, %v5826_v45  ;;  %v2264_v46 = vmul.f32 %v6832_v38, %v6828_v6  ;;  %v4913_v6 = vmov 1983009808  }
 0x2c4   :  { %1004 = vmatprep.mubr.f32.mxu1 %v6820_v19  ;;  %v3115_v24 = vpop.permute.xlu1 %3114  ;;  %v1016_v48 = vunpack.c.l.s4 %v4913_v6 }
 0x2c5   :  { %4090 = vmatmul.mubr.msk.f32.gmra.mrb[22].mxu0 %vm361_vm0, %v5842_v40  ;;  %v3165_v53 = vmul.f32 %v5915_v32, %v3115_v24  ;;  %v3166_v1 = vmul.f32 %v5918_v25, %v3115_v24  ;;  %v3167_v50 = vmul.f32 %v5921_v12, %v3115_v24  ;;  %v3168_v34 = vmul.f32 %v5924_v29, %v3115_v24  ;;  %v4148_v24 = vld [vmem:[%s6685_s2 + $0x28] sm:$0xff] }
 0x2c6   :  { %1441 = vmatprep.mubr.f32.mxu0 %v6820_v19  ;;  %v1017_v36 = vunpack.c.0.s8 %v1016_v48 }
 0x2c7   :  { %4094 = vmatmul.mubr.msk.f32.gmra.mrb[22].mxu1 %vm361_vm0, %v5842_v40  ;;  %v5942_v28 = vadd.f32 %v3165_v53, %v3097_v14  ;;  %v5944_v23 = vadd.f32 %v3166_v1, %v3098_v56  ;;  %v5946_v58 = vadd.f32 %v3167_v50, %v3099_v5  ;;  %v5948_v54 = vadd.f32 %v3168_v34, %v3100_v9  ;;  %v2284_v14 = vld [vmem:[%s6685_s2 + $0x18] sm:$0xff] }
 0x2c8   :  { %1530 = vmatprep.mubr.f32.mxu1 %v6820_v19  ;;  %v5967_v20 = vpop.permute.xlu1 %3198  ;;  %v5982_v56 = vadd.f32 %v2261_v57, %v2193_v43  ;;  %v5984_v5 = vadd.f32 %v2262_v62, %v2194_v61  ;;  %v5986_v9 = vadd.f32 %v2263_v31, %v2195_v44  ;;  %2302 = vperm.xlu0 %4460, %v2284_v14   ;;  %v4150_v1 = vld [vmem:[%s6685_s2 + $0x38] sm:$0xff]  ;;  %v6833_v34 = vmov 1  }
 0x2c9   :  { %4103 = vmatmul.mubr.msk.f32.vlgmr.msra.gmra.mrb[24].mxu0 %vm361_vm0, %v5855_v18 }
 0x2ca   :  { %1447 = vmatprep.mubr.f32.mxu0 %v6820_v19 }
 0x2cb   :  { %4107 = vmatmul.mubr.msk.f32.vlgmr.msra.gmra.mrb[24].mxu1 %vm361_vm0, %v5855_v18 }
 0x2cc   :  { %1536 = vmatprep.mubr.f32.mxu1 %v6820_v19  ;;  %2352 = vperm.xlu0 %4460, %v4148_v24  }
 0x2cd   :  { %4104 = vmatmul.mubr.msk.f32.gmra.mrb[26].mxu0 %vm361_vm0, %v4855_v49 }
 0x2ce   :  { %1453 = vmatprep.mubr.f32.mxu0 %v6820_v19 }
 0x2cf   :  { %4108 = vmatmul.mubr.msk.f32.gmra.mrb[26].mxu1 %vm361_vm0, %v4855_v49  ;;  %v2196_v49 = vadd.f32 %v2180_v22, %v2112_v63  ;;  %v3281_v63 = vld [vmem:[%s6685_s2] sm:$0xff] }
 0x2d0   :  { %1542 = vmatprep.mubr.f32.mxu1 %v6820_v19  ;;  %2362 = vperm.xlu0 %4460, %v4150_v1  }
 0x2d1   :  { %4105 = vmatmul.mubr.msk.f32.gmra.mrb[28].mxu0 %vm361_vm0, %v4856_v27 }
 0x2d2   :  { %1459 = vmatprep.mubr.f32.mxu0 %v6820_v19 }
 0x2d3   :  { %4109 = vmatmul.mubr.msk.f32.gmra.mrb[28].mxu1 %vm361_vm0, %v4856_v27  ;;  %v5977_v27 = vpop.permute.xlu1 %3202 }
 0x2d4   :  { %1548 = vmatprep.mubr.f32.mxu1 %v6820_v19  ;;  %4464 = vset.pattern.permute.xlu0 %v6833_v34 }
 0x2d5   :  { %4106 = vmatmul.mubr.msk.f32.gmra.mrb[30].mxu0 %vm361_vm0, %v4857_v2  ;;  %3118 = vperm.xlu0 %4464, %v6834_v33  }
 0x2d6   :  { %1675 = vmatprep.mubr.f32.mxu0 %v6820_v19 }
 0x2d7   :  { %4110 = vmatmul.mubr.msk.f32.gmra.mrb[30].mxu1 %vm361_vm0, %v4857_v2  ;;  %v5988_v2 = vadd.f32 %v2264_v46, %v2196_v49  ;;  %v5993_v53 = vpop.permute.xlu1 %3056 }
 0x2d8   :  { %1764 = vmatprep.mubr.f32.mxu1 %v6820_v19 }
 0x2d9   :  { %3126 = vperm.xlu0 %4464, %v6835_v21  }
 0x2db   :  { %v5998_v50 = vpop.permute.xlu1 %3122 }
 0x2dc   :  { %v3176_v16 = vmul.f32 %v5924_v29, %v5998_v50 }
 0x2dd   :  { %4468 = vset.pattern.permute.xlu0 %v6836_v0 }
 0x2de   :  { %2586 = vperm.xlu0 %4468, %v4164_v8  }
 0x2df   :  { %v6002_v39 = vpop.permute.xlu1 %3206 }
 0x2e2   :  { %2596 = vperm.xlu0 %4468, %v4166_v52  }
 0x2e3   :  { %v6008_v22 = vpop.permute.xlu1 %3210 }
 0x2e6   :  { %3046 = vperm.xlu0 %4468, %v6834_v33  }
 0x2e7   :  { %v6014_v55 = vpop.permute.xlu1 %3292 }
 0x2ea   :  { %3051 = vperm.xlu0 %4468, %v4858_v41  }
 0x2eb   :  { %v6017_v47 = vpop.permute.xlu1 %3297 }
 0x2ec   :  { %6837 = vst [vmem:[#allocation13_spill] sm:$0xff] %v6017_v47 }
 0x2ee   :  { %3287 = vperm.xlu0 %4468, %v3281_v63  }
 0x2ef   :  { %v6025_v43 = vpop.permute.xlu1 %3347 }
 0x2f0   :  { %6838 = vst [vmem:[#allocation17_spill] sm:$0xff] %v6025_v43  ;;  %v3174_v43 = vmul.f32 %v5918_v25, %v5998_v50 }
 0x2f2   :  { %3302 = vperm.xlu0 %4468, %v2284_v14   ;;  %v6842_v14 = vld [vmem:[#allocation8_spill] sm:$0xff] }
 0x2f3   :  { %v6027_v61 = vpop.permute.xlu1 %3357 }
 0x2f4   :  { %6839 = vst [vmem:[#allocation23_spill] sm:$0xff] %v6027_v61  ;;  %v3173_v61 = vmul.f32 %v5915_v32, %v5998_v50 }
 0x2f6   :  { %3352 = vperm.xlu0 %4468, %v4148_v24   ;;  %v6035_v24 = vsub.s32 %v1017_v36, %v6842_v14 }
 0x2f7   :  { %v6029_v44 = vpop.permute.xlu1 %3581 }
 0x2f8   :  { %6840 = vst [vmem:[#allocation11_spill] sm:$0xff] %v6029_v44  ;;  %6843 = vst [vmem:[#allocation24_spill] sm:$0xff] %v6035_v24 }
 0x2fa   :  { %3362 = vperm.xlu0 %4468, %v4150_v1  }
 0x2fb   :  { %v6031_v49 = vpop.permute.xlu1 %3591 }
 0x2fc   :  { %6841 = vst [vmem:[#allocation14_spill] sm:$0xff] %v6031_v49 }
 0x2fe   :  { %3586 = vperm.xlu0 %4468, %v4164_v8  }
 0x2ff   :  { %v817_v57 = vpop.permute.xlu1 %816 }
 0x302   :  { %3596 = vperm.xlu0 %4468, %v4166_v52  }
 0x306   :  { %1815 = vperm.xlu0 %4468, %v5683_v17  }
 0x38c   :  { %v909_v62 = vpop.f32.mrb[16].mxu0 }
 0x38d   :  { %v910_v37 = vadd.f32 %v909_v62, %v817_v57  ;;  %v911_v31 = vpop.f32.mrb[17].mxu0 }
 0x38e   :  { %v992_v38 = vpop.f32.mrb[16].mxu1  ;;  %v912_v46 = vadd.f32 %v911_v31, %v817_v57 }
 0x38f   :  { %v993_v34 = vadd.f32 %v992_v38, %v817_v57  ;;  %v994_v1 = vpop.f32.mrb[17].mxu1 }
 0x390   :  { %v1013_v33 = vcombine.low %v910_v37, %v912_v46  ;;  %v995_v21 = vadd.f32 %v994_v1, %v817_v57  ;;  %v915_v8 = vpop.f32.mrb[18].mxu0  ;;  %v6844_v46 = vld [vmem:[#allocation18_spill] sm:$0xff] }
 0x391   :  { %v916_v0 = vpop.f32.mrb[19].mxu0 }
 0x392   :  { %v1021_v52 = vrot.slane %v1013_v33, %v6035_v24  ;;  %v1014_v41 = vcombine.low %v993_v34, %v995_v21  ;;  %v998_v63 = vpop.f32.mrb[18].mxu1 }
 0x393   :  { %v999_v6 = vpop.f32.mrb[19].mxu1 }
 0x394   :  { %v1028_v17 = vrot.slane %v1014_v41, %v6035_v24  ;;  %v919_v48 = vpop.f32.mrb[20].mxu0 }
 0x395   :  { %v920_v62 = vpop.f32.mrb[21].mxu0 }
 0x396   :  { %v1029_v49 = vcombine.low %v1021_v52, %v1028_v17  ;;  %v1002_v31 = vpop.f32.mrb[20].mxu1 }
 0x397   :  { %v1003_v44 = vpop.f32.mrb[21].mxu1 }
 0x398   :  { %1031 = vst [vmem:[#allocation5] sm:$0xff] %v1029_v49  ;;  %v923_v36 = vpop.f32.mrb[22].mxu0  ;;  %v6845_v49 = vld [vmem:[#allocation28_spill] sm:$0xff] }
 0x399   :  { %v924_v38 = vpop.f32.mrb[23].mxu0 }
 0x39a   :  { %v1006_v14 = vpop.f32.mrb[22].mxu1  ;;  %v6846_v38 = vld [vmem:[#allocation19_spill] sm:$0xff] }
 0x39b   :  { %v1007_v37 = vpop.f32.mrb[23].mxu1 }
 0x39c   :  { %v1443_v57 = vpop.f32.mrb[24].mxu0 }
 0x39d   :  { %v1444_v1 = vadd.f32 %v1443_v57, %v6844_v46  ;;  %v1445_v8 = vpop.f32.mrb[25].mxu0 }
 0x39e   :  { %v1532_v33 = vpop.f32.mrb[24].mxu1  ;;  %v1446_v34 = vadd.f32 %v1445_v8, %v6844_v46 }
 0x39f   :  { %4615 = vtanh.f32 %v1444_v1  ;;  %v1533_v21 = vadd.f32 %v1532_v33, %v6844_v46  ;;  %v1534_v0 = vpop.f32.mrb[25].mxu1 }
 0x3a0   :  { %4617 = vtanh.f32 %v1446_v34  ;;  %v1535_v52 = vadd.f32 %v1534_v0, %v6844_v46  ;;  %v1449_v44 = vpop.f32.mrb[26].mxu0  ;;  %v6847_v0 = vld [vmem:[#allocation29_spill] sm:$0xff] }
 0x3a1   :  { %4619 = vtanh.f32 %v1533_v21  ;;  %v1450_v41 = vadd.f32 %v1449_v44, %v6845_v49  ;;  %v1451_v63 = vpop.f32.mrb[27].mxu0 }
 0x3a2   :  { %4621 = vtanh.f32 %v1535_v52  ;;  %v1538_v6 = vpop.f32.mrb[26].mxu1  ;;  %v1452_v17 = vadd.f32 %v1451_v63, %v6845_v49 }
 0x3a3   :  { %4623 = vtanh.f32 %v1450_v41  ;;  %v1539_v48 = vadd.f32 %v1538_v6, %v6845_v49  ;;  %v1540_v62 = vpop.f32.mrb[27].mxu1 }
 0x3a4   :  { %4625 = vtanh.f32 %v1452_v17  ;;  %v1541_v31 = vadd.f32 %v1540_v62, %v6845_v49  ;;  %v1455_v36 = vpop.f32.mrb[28].mxu0 }
 0x3a5   :  { %4627 = vtanh.f32 %v1539_v48  ;;  %v1456_v14 = vadd.f32 %v1455_v36, %v6846_v38  ;;  %v1457_v37 = vpop.f32.mrb[29].mxu0 }
 0x3a6   :  { %4629 = vtanh.f32 %v1541_v31  ;;  %v1544_v57 = vpop.f32.mrb[28].mxu1  ;;  %v1458_v46 = vadd.f32 %v1457_v37, %v6846_v38 }
 0x3a7   :  { %4631 = vtanh.f32 %v1456_v14  ;;  %v1545_v1 = vadd.f32 %v1544_v57, %v6846_v38  ;;  %v1546_v8 = vpop.f32.mrb[29].mxu1 }
 0x3a8   :  { %4633 = vtanh.f32 %v1458_v46  ;;  %v1547_v33 = vadd.f32 %v1546_v8, %v6846_v38  ;;  %v1461_v34 = vpop.f32.mrb[30].mxu0 }
 0x3a9   :  { %v4616_v21 = vpop.eup %4615  ;;  %4635 = vtanh.f32 %v1545_v1  ;;  %v1462_v52 = vadd.f32 %v1461_v34, %v6847_v0  ;;  %v1463_v44 = vpop.f32.mrb[31].mxu0 }
 0x3aa   :  { %v4618_v49 = vpop.eup %4617  ;;  %4637 = vtanh.f32 %v1547_v33  ;;  %v1550_v41 = vpop.f32.mrb[30].mxu1  ;;  %v1464_v63 = vadd.f32 %v1463_v44, %v6847_v0 }
 0x3ab   :  { %v4620_v6 = vpop.eup %4619  ;;  %4639 = vtanh.f32 %v1462_v52  ;;  %v1551_v17 = vadd.f32 %v1550_v41, %v6847_v0  ;;  %v1552_v48 = vpop.f32.mrb[31].mxu1 }
 0x3ac   :  { %v4622_v62 = vpop.eup %4621  ;;  %4641 = vtanh.f32 %v1464_v63  ;;  %v1553_v31 = vadd.f32 %v1552_v48, %v6847_v0 }
 0x3ad   :  { %v4624_v36 = vpop.eup %4623  ;;  %4643 = vtanh.f32 %v1551_v17 }
 0x3ae   :  { %v4626_v38 = vpop.eup %4625  ;;  %4645 = vtanh.f32 %v1553_v31  ;;  %v4305_v14 = vpack.c.bf16 %v4624_v36, %v4616_v21  ;;  %v6077_v36 = vld [vmem:[%s6684_s1 + $0x50] sm:$0xff] }
 0x3af   :  { %v4628_v37 = vpop.eup %4627  ;;  %v4303_v57 = vpack.c.bf16 %v4626_v38, %v4618_v49  ;;  %6850 = vst [vmem:[#allocation30_spill] sm:$0xff] %v6077_v36  ;;  %v6088_v38 = vld [vmem:[%s6684_s1 + $0x58] sm:$0xff]  ;;  %4647 = vtanh.f32 %v5814_v13  ;;  %v3109_v13 = vmul.f32 %v5898_v3, %v5993_v53 }
 0x3b0   :  { %v4630_v46 = vpop.eup %4629  ;;  %v4313_v1 = vpack.c.bf16 %v4628_v37, %v4620_v6  ;;  %v6058_v6 = vld [vmem:[%s6684_s1 + $0x40] sm:$0xff]  ;;  %6851 = vst [vmem:[#allocation32_spill] sm:$0xff] %v6088_v38  ;;  %4649 = vtanh.f32 %v5817_v7  ;;  %v3110_v7 = vmul.f32 %v5901_v42, %v5993_v53 }
 0x3b1   :  { %v4632_v8 = vpop.eup %4631  ;;  %4304 = vmatprep.subr.bf16.mxu0 %v4303_v57  ;;  %v4311_v33 = vpack.c.bf16 %v4630_v46, %v4622_v62  ;;  %6848 = vst [vmem:[#allocation12_spill] sm:$0xff] %v6058_v6  ;;  %v6066_v62 = vld [vmem:[%s6684_s1 + $0x48] sm:$0xff]  ;;  %4651 = vtanh.f32 %v5820_v51  ;;  %v3112_v51 = vmul.f32 %v5907_v11, %v5993_v53 }
 0x3b2   :  { %v4634_v34 = vpop.eup %4633  ;;  %4306 = vmatpush1.bf16.msra.mxu0 %v4305_v14  ;;  %6849 = vst [vmem:[#allocation27_spill] sm:$0xff] %v6066_v62  ;;  %v2303_v14 = vpop.permute.xlu0 %2302  ;;  %4653 = vtanh.f32 %v5829_v10  ;;  %v6854_v10 = vld [vmem:[#allocation9_spill] sm:$0xff] }
 0x3b3   :  { %v4636_v52 = vpop.eup %4635  ;;  %4312 = vmatprep.subr.bf16.mxu1 %v4311_v33  ;;  %v2317_v46 = vadd.f32 %v2303_v14, %v5982_v56  ;;  %v2320_v33 = vadd.f32 %v2303_v14, %v5988_v2  ;;  %v3111_v56 = vmul.f32 %v5904_v35, %v5993_v53 }
 0x3b4   :  { %v4638_v44 = vpop.eup %4637  ;;  %4314 = vmatpush1.bf16.msra.mxu1 %v4313_v1  ;;  %v2318_v1 = vadd.f32 %v2303_v14, %v5984_v5  ;;  %v3216_v5 = vrot.slane %v5864_v15, %v6854_v10 }
 0x3b5   :  { %v4640_v41 = vpop.eup %4639  ;;  %4655 = vtanh.f32 %v2317_v46 }
 0x3b6   :  { %v4642_v0 = vpop.eup %4641  ;;  %v4309_v63 = vpack.c.bf16 %v4640_v41, %v4632_v8  ;;  %v6099_v37 = vpop.permute.xlu0 %2352  ;;  %v2319_v8 = vadd.f32 %v2303_v14, %v5986_v9  ;;  %4657 = vtanh.f32 %v2318_v1  ;;  %v6855_v9 = vld [vmem:[#allocation10_spill] sm:$0xff]  ;;  %v6146_v46 = vrot.slane %v3216_v5, %v6854_v10 }
 0x3b7   :  { %v4644_v17 = vpop.eup %4643  ;;  %v4307_v48 = vpack.c.bf16 %v4642_v0, %v4634_v34  ;;  %6852 = vst [vmem:[#allocation22_spill] sm:$0xff] %v6099_v37  ;;  %v3220_v2 = vrot.slane %v5864_v15, %v6855_v9 }
 0x3b8   :  { %v4646_v31 = vpop.eup %4645  ;;  %v4317_v21 = vpack.c.bf16 %v4644_v17, %v4636_v52  ;;  %4659 = vtanh.f32 %v2319_v8  ;;  %v3224_v52 = vrot.slane %v5866_v59, %v6854_v10  ;;  %v3249_v5 = vmul.f32 %v6146_v46, %v5967_v20 }
 0x3b9   :  { %4308 = vmatprep.subr.bf16.mxu0 %v4307_v48  ;;  %v4315_v49 = vpack.c.bf16 %v4646_v31, %v4638_v44  ;;  %4661 = vtanh.f32 %v2320_v33  ;;  %v3228_v44 = vrot.slane %v5866_v59, %v6855_v9  ;;  %v6131_v48 = vpop.eup %4647  ;;  %v6149_v1 = vrot.slane %v3220_v2, %v6854_v10 }
 0x3ba   :  { %4310 = vmatpush1.bf16.msra.mxu0 %v4309_v63  ;;  %v6101_v57 = vpop.permute.xlu0 %2362  ;;  %v6133_v31 = vpop.eup %4649  ;;  %v6152_v8 = vrot.slane %v3224_v52, %v6854_v10  ;;  %v3257_v24 = vmul.f32 %v6146_v46, %v6002_v39 }
 0x3bb   :  { %4316 = vmatprep.subr.bf16.mxu1 %v4315_v49  ;;  %6853 = vst [vmem:[#allocation38_spill] sm:$0xff] %v6101_v57  ;;  %v6143_v14 = vpop.eup %4651  ;;  %v3250_v2 = vmul.f32 %v6149_v1, %v5967_v20 }
 0x3bc   :  { %4318 = vmatpush1.bf16.msra.mxu1 %v4317_v21  ;;  %v3251_v52 = vmul.f32 %v6152_v8, %v5967_v20 }
 0x3bd   :  { %4119 = vmatmul.mubr.msk.f32.vlgmr.msra.gmra.mrb[32].mxu0 %vm361_vm0, %v6058_v6 }
 0x3be   :  { %1681 = vmatprep.mubr.f32.mxu0 %v6820_v19  ;;  %v3119_v34 = vpop.permute.xlu0 %3118 }
 0x3bf   :  { %4123 = vmatmul.mubr.msk.f32.vlgmr.msra.gmra.mrb[32].mxu1 %vm361_vm0, %v6058_v6  ;;  %v3170_v4 = vmul.f32 %v5918_v25, %v3119_v34  ;;  %v3172_v30 = vmul.f32 %v5924_v29, %v3119_v34  ;;  %v3265_v6 = vadd.f32 %v3249_v5, %v5942_v28  ;;  %v3259_v28 = vmul.f32 %v6152_v8, %v6002_v39 }
 0x3c0   :  { %1770 = vmatprep.mubr.f32.mxu1 %v6820_v19 }
 0x3c1   :  { %4120 = vmatmul.mubr.msk.f32.gmra.mrb[34].mxu0 %vm361_vm0, %v6066_v62 }
 0x3c2   :  { %1687 = vmatprep.mubr.f32.mxu0 %v6820_v19  ;;  %v3127_v41 = vpop.permute.xlu0 %3126 }
 0x3c3   :  { %4124 = vmatmul.mubr.msk.f32.gmra.mrb[34].mxu1 %vm361_vm0, %v6066_v62  ;;  %v3177_v0 = vmul.f32 %v5915_v32, %v3127_v41  ;;  %v3178_v63 = vmul.f32 %v5918_v25, %v3127_v41  ;;  %v3179_v53 = vmul.f32 %v5921_v12, %v3127_v41  ;;  %v3180_v17 = vmul.f32 %v5924_v29, %v3127_v41 }
 0x3c4   :  { %1776 = vmatprep.mubr.f32.mxu1 %v6820_v19 }
 0x3c5   :  { %4121 = vmatmul.mubr.msk.f32.gmra.mrb[36].mxu0 %vm361_vm0, %v6077_v36  ;;  %v6135_v15 = vadd.f32 %v3177_v0, %v3109_v13  ;;  %v6137_v21 = vadd.f32 %v3178_v63, %v3110_v7  ;;  %v6139_v49 = vadd.f32 %v3179_v53, %v3111_v56  ;;  %v6141_v59 = vadd.f32 %v3180_v17, %v3112_v51  ;;  %v6156_v13 = vpop.eup %4653 }
 0x3c6   :  { %1693 = vmatprep.mubr.f32.mxu0 %v6820_v19  ;;  %v6154_v33 = vpop.permute.xlu0 %2586  ;;  %v6159_v7 = vrot.slane %v3228_v44, %v6854_v10  ;;  %v6161_v56 = vpop.eup %4655  ;;  %v3253_v44 = vmul.f32 %v6146_v46, %v5977_v27  ;;  %v3254_v63 = vmul.f32 %v6149_v1, %v5977_v27  ;;  %v3255_v53 = vmul.f32 %v6152_v8, %v5977_v27 }
 0x3c7   :  { %4125 = vmatmul.mubr.msk.f32.gmra.mrb[36].mxu1 %vm361_vm0, %v6077_v36  ;;  %6856 = vst [vmem:[#allocation34_spill] sm:$0xff] %v6154_v33  ;;  %v6163_v51 = vpop.eup %4657  ;;  %v3171_v33 = vmul.f32 %v5921_v12, %v3119_v34 }
 0x3c8   :  { %1782 = vmatprep.mubr.f32.mxu1 %v6820_v19  ;;  %v6165_v9 = vpop.eup %4659  ;;  %v3252_v10 = vmul.f32 %v6159_v7, %v5967_v20  ;;  %v3256_v17 = vmul.f32 %v6159_v7, %v5977_v27  ;;  %v3175_v20 = vmul.f32 %v5921_v12, %v5998_v50  ;;  %v3266_v27 = vadd.f32 %v3250_v2, %v5944_v23 }
 0x3c9   :  { %4122 = vmatmul.mubr.msk.f32.gmra.mrb[38].mxu0 %vm361_vm0, %v6088_v38  ;;  %v6175_v0 = vpop.eup %4661 }
 0x3ca   :  { %1906 = vmatprep.mubr.f32.mxu0 %v6820_v19  ;;  %v6173_v41 = vpop.permute.xlu0 %2596  ;;  %v3268_v57 = vadd.f32 %v3252_v10, %v5948_v54 }
 0x3cb   :  { %4126 = vmatmul.mubr.msk.f32.gmra.mrb[38].mxu1 %vm361_vm0, %v6088_v38  ;;  %6857 = vst [vmem:[#allocation35_spill] sm:$0xff] %v6173_v41  ;;  %v3169_v41 = vmul.f32 %v5915_v32, %v3119_v34  ;;  %v3267_v38 = vadd.f32 %v3251_v52, %v5946_v58 }
 0x3cc   :  { %1989 = vmatprep.mubr.f32.mxu1 %v6820_v19 }
 0x3ce   :  { %v3047_v47 = vpop.permute.xlu0 %3046 }
 0x3cf   :  { %v3101_v32 = vmul.f32 %v5898_v3, %v3047_v47  ;;  %v3102_v25 = vmul.f32 %v5901_v42, %v3047_v47  ;;  %v3103_v12 = vmul.f32 %v5904_v35, %v3047_v47  ;;  %v3104_v34 = vmul.f32 %v5907_v11, %v3047_v47 }
 0x3d0   :  { %v3258_v47 = vmul.f32 %v6149_v1, %v6002_v39 }
 0x3d1   :  { %v3185_v36 = vadd.f32 %v3169_v41, %v3101_v32  ;;  %v3186_v26 = vadd.f32 %v3170_v4, %v3102_v25  ;;  %v3187_v37 = vadd.f32 %v3171_v33, %v3103_v12  ;;  %v3188_v62 = vadd.f32 %v3172_v30, %v3104_v34 }
 0x3d2   :  { %v3052_v23 = vpop.permute.xlu0 %3051  ;;  %v3260_v33 = vmul.f32 %v6159_v7, %v6002_v39  ;;  %v3261_v34 = vmul.f32 %v6146_v46, %v6008_v22 }
 0x3d3   :  { %v3269_v58 = vadd.f32 %v3253_v44, %v3185_v36  ;;  %v3270_v5 = vadd.f32 %v3254_v63, %v3186_v26  ;;  %v3271_v54 = vadd.f32 %v3255_v53, %v3187_v37  ;;  %v3272_v2 = vadd.f32 %v3256_v17, %v3188_v62 }
 0x3d4   :  { %v3105_v4 = vmul.f32 %v5898_v3, %v3052_v23  ;;  %v3106_v30 = vmul.f32 %v5901_v42, %v3052_v23  ;;  %v3107_v29 = vmul.f32 %v5904_v35, %v3052_v23  ;;  %v3108_v50 = vmul.f32 %v5907_v11, %v3052_v23 }
 0x3d5   :  { %v3309_v52 = vadd.f32 %v6014_v55, %v3269_v58  ;;  %v3310_v11 = vadd.f32 %v6014_v55, %v3270_v5  ;;  %v3264_v23 = vmul.f32 %v6159_v7, %v6008_v22  ;;  %v3277_v58 = vadd.f32 %v3261_v34, %v6135_v15 }
 0x3d6   :  { %v3189_v41 = vadd.f32 %v3173_v61, %v3105_v4  ;;  %v3190_v10 = vadd.f32 %v3174_v43, %v3106_v30  ;;  %v3191_v32 = vadd.f32 %v3175_v20, %v3107_v29  ;;  %v3192_v36 = vadd.f32 %v3176_v16, %v3108_v50  ;;  %v3288_v26 = vpop.permute.xlu0 %3287  ;;  %v6858_v50 = vld [vmem:[#allocation20_spill] sm:$0xff] }
 0x3d7   :  { %v3305_v37 = vadd.f32 %v3288_v26, %v3265_v6  ;;  %v3306_v62 = vadd.f32 %v3288_v26, %v3266_v27  ;;  %v3307_v44 = vadd.f32 %v3288_v26, %v3267_v38  ;;  %v3308_v39 = vadd.f32 %v3288_v26, %v3268_v57 }
 0x3d8   :  { %v6228_v3 = vadd.f32 %v3257_v24, %v3189_v41  ;;  %v6230_v42 = vadd.f32 %v3258_v47, %v3190_v10  ;;  %v6232_v35 = vadd.f32 %v3259_v28, %v3191_v32  ;;  %v6235_v63 = vadd.f32 %v3260_v33, %v3192_v36  ;;  %v6859_v41 = vld [vmem:[#allocation31_spill] sm:$0xff] }
 0x3d9   :  { %v3311_v61 = vadd.f32 %v6014_v55, %v3271_v54  ;;  %4663 = vtanh.f32 %v3309_v52  ;;  %v3312_v16 = vadd.f32 %v6014_v55, %v3272_v2  ;;  %v3262_v47 = vmul.f32 %v6149_v1, %v6008_v22 }
 0x3da   :  { %4665 = vtanh.f32 %v3305_v37  ;;  %v3263_v28 = vmul.f32 %v6152_v8, %v6008_v22  ;;  %v3280_v2 = vadd.f32 %v3264_v23, %v6141_v59  ;;  %v3303_v4 = vpop.permute.xlu0 %3302 }
 0x3db   :  { %4667 = vtanh.f32 %v3310_v11  ;;  %v3278_v5 = vadd.f32 %v3262_v47, %v6137_v21  ;;  %v6275_v30 = vadd.f32 %v3303_v4, %v3277_v58 }
 0x3dc   :  { %4669 = vtanh.f32 %v3311_v61  ;;  %v3279_v54 = vadd.f32 %v3263_v28, %v6139_v49  ;;  %v6281_v29 = vadd.f32 %v3303_v4, %v3280_v2  ;;  %v6861_v2 = vld [vmem:[#allocation33_spill] sm:$0xff] }
 0x3dd   :  { %4671 = vtanh.f32 %v3312_v16  ;;  %v6277_v46 = vadd.f32 %v3303_v4, %v3278_v5 }
 0x3de   :  { %4673 = vtanh.f32 %v3306_v62  ;;  %v6279_v1 = vadd.f32 %v3303_v4, %v3279_v54 }
 0x3df   :  { %4675 = vtanh.f32 %v3307_v44 }
 0x3e0   :  { %4677 = vtanh.f32 %v3308_v39  ;;  %v6860_v39 = vld [vmem:[#allocation21_spill] sm:$0xff] }
 0x3e3   :  { %v6239_v43 = vpop.eup %4663 }
 0x3e4   :  { %v6241_v24 = vpop.eup %4665 }
 0x3e5   :  { %v6243_v6 = vpop.eup %4667  ;;  %v4385_v38 = vpack.c.bf16 %v6239_v43, %v6241_v24  ;;  %v6535_v43 = vld [vmem:[%s6684_s1 + $0x70] sm:$0xff]  ;;  %v6549_v24 = vld [vmem:[%s6684_s1 + $0x78] sm:$0xff] }
 0x3e6   :  { %v6247_v57 = vpop.eup %4669 }
 0x3e7   :  { %v6249_v53 = vpop.eup %4671 }
 0x3e8   :  { %v6251_v55 = vpop.eup %4673 }
 0x3e9   :  { %v6253_v17 = vpop.eup %4675  ;;  %v4383_v20 = vpack.c.bf16 %v6243_v6, %v6251_v55  ;;  %v4191_v6 = vld [vmem:[%s6684_s1 + $0x20] sm:$0xff] }
 0x3ea   :  { %v6257_v27 = vpop.eup %4677  ;;  %v4393_v25 = vpack.c.bf16 %v6247_v57, %v6253_v17 }
 0x3eb   :  { %v4391_v12 = vpack.c.bf16 %v6249_v53, %v6257_v27 }
 0x490   :  { %v1677_v8 = vpop.f32.mrb[32].mxu0 }
 0x491   :  { %v1678_v22 = vadd.f32 %v1677_v8, %v6858_v50  ;;  %v1679_v7 = vpop.f32.mrb[33].mxu0 }
 0x492   :  { %v1766_v15 = vpop.f32.mrb[32].mxu1  ;;  %v1680_v21 = vadd.f32 %v1679_v7, %v6858_v50 }
 0x493   :  { %4679 = vtanh.f32 %v1678_v22  ;;  %v1767_v49 = vadd.f32 %v1766_v15, %v6858_v50  ;;  %v1768_v59 = vpop.f32.mrb[33].mxu1 }
 0x494   :  { %4681 = vtanh.f32 %v1680_v21  ;;  %v1769_v33 = vadd.f32 %v1768_v59, %v6858_v50  ;;  %v1683_v52 = vpop.f32.mrb[34].mxu0 }
 0x495   :  { %4683 = vtanh.f32 %v1767_v49  ;;  %v1684_v10 = vadd.f32 %v1683_v52, %v6859_v41  ;;  %v1685_v32 = vpop.f32.mrb[35].mxu0 }
 0x496   :  { %4685 = vtanh.f32 %v1769_v33  ;;  %v1772_v36 = vpop.f32.mrb[34].mxu1  ;;  %v1686_v26 = vadd.f32 %v1685_v32, %v6859_v41 }
 0x497   :  { %4687 = vtanh.f32 %v1684_v10  ;;  %v1773_v37 = vadd.f32 %v1772_v36, %v6859_v41  ;;  %v1774_v62 = vpop.f32.mrb[35].mxu1 }
 0x498   :  { %4689 = vtanh.f32 %v1686_v26  ;;  %v1775_v44 = vadd.f32 %v1774_v62, %v6859_v41  ;;  %v1689_v11 = vpop.f32.mrb[36].mxu0 }
 0x499   :  { %4691 = vtanh.f32 %v1773_v37  ;;  %v1690_v61 = vadd.f32 %v1689_v11, %v6860_v39  ;;  %v1691_v16 = vpop.f32.mrb[37].mxu0 }
 0x49a   :  { %4693 = vtanh.f32 %v1775_v44  ;;  %v1778_v34 = vpop.f32.mrb[36].mxu1  ;;  %v1692_v47 = vadd.f32 %v1691_v16, %v6860_v39 }
 0x49b   :  { %4695 = vtanh.f32 %v1690_v61  ;;  %v1779_v28 = vadd.f32 %v1778_v34, %v6860_v39  ;;  %v1780_v23 = vpop.f32.mrb[37].mxu1 }
 0x49c   :  { %4697 = vtanh.f32 %v1692_v47  ;;  %v1781_v58 = vadd.f32 %v1780_v23, %v6860_v39  ;;  %v1695_v5 = vpop.f32.mrb[38].mxu0 }
 0x49d   :  { %v4680_v54 = vpop.eup %4679  ;;  %4699 = vtanh.f32 %v1779_v28  ;;  %v1696_v4 = vadd.f32 %v1695_v5, %v6861_v2  ;;  %v1697_v8 = vpop.f32.mrb[39].mxu0 }
 0x49e   :  { %v4682_v50 = vpop.eup %4681  ;;  %4701 = vtanh.f32 %v1781_v58  ;;  %v1784_v22 = vpop.f32.mrb[38].mxu1  ;;  %v1698_v7 = vadd.f32 %v1697_v8, %v6861_v2 }
 0x49f   :  { %v4684_v15 = vpop.eup %4683  ;;  %4703 = vtanh.f32 %v1696_v4  ;;  %v1785_v21 = vadd.f32 %v1784_v22, %v6861_v2  ;;  %v1786_v49 = vpop.f32.mrb[39].mxu1  ;;  %v6863_v4 = vld [vmem:[#allocation40_spill] sm:$0xff]  ;;  %v6866_v22 = vld [vmem:[#allocation42_spill] sm:$0xff] }
 0x4a0   :  { %v4686_v59 = vpop.eup %4685  ;;  %4705 = vtanh.f32 %v1698_v7  ;;  %v1787_v33 = vadd.f32 %v1786_v49, %v6861_v2  ;;  %v6862_v2 = vld [vmem:[#allocation44_spill] sm:$0xff]  ;;  %v6869_v49 = vld [vmem:[#allocation39_spill] sm:$0xff] }
 0x4a1   :  { %v4688_v52 = vpop.eup %4687  ;;  %4707 = vtanh.f32 %v1785_v21  ;;  %v6864_v8 = vpack.c.bf16 %v6862_v2, %v6863_v4  ;;  %v6868_v21 = vld [vmem:[#allocation43_spill] sm:$0xff] }
 0x4a2   :  { %v4690_v41 = vpop.eup %4689  ;;  %4709 = vtanh.f32 %v1787_v33  ;;  %v4321_v10 = vpack.c.bf16 %v4688_v52, %v4680_v54  ;;  %v6871_v33 = vpack.c.bf16 %v6163_v51, %v6133_v31  ;;  %v6872_v52 = vld [vmem:[#allocation45_spill] sm:$0xff]  ;;  %v6877_v31 = vpack.c.bf16 %v6165_v9, %v6143_v14 }
 0x4a3   :  { %v4692_v32 = vpop.eup %4691  ;;  %v4319_v36 = vpack.c.bf16 %v4690_v41, %v4682_v50  ;;  %v6865_v50 = vld [vmem:[#allocation46_spill] sm:$0xff]  ;;  %v6873_v41 = vld [vmem:[#allocation41_spill] sm:$0xff] }
 0x4a4   :  { %v4694_v26 = vpop.eup %4693  ;;  %v4329_v37 = vpack.c.bf16 %v4692_v32, %v4684_v15  ;;  %v6867_v7 = vpack.c.bf16 %v6865_v50, %v6866_v22  ;;  %v4859_v15 = vld [vmem:[%s6684_s1 + $0x60] sm:$0xff]  ;;  %v6875_v32 = vpack.c.bf16 %v6175_v0, %v6156_v13 }
 0x4a5   :  { %v4696_v62 = vpop.eup %4695  ;;  %4320 = vmatprep.subr.bf16.mxu0 %v4319_v36  ;;  %v4327_v44 = vpack.c.bf16 %v4694_v26, %v4686_v59  ;;  %v6870_v59 = vpack.c.bf16 %v6868_v21, %v6869_v49  ;;  %v6876_v36 = vpack.c.bf16 %v6161_v56, %v6131_v48  ;;  %v6390_v48 = vpop.permute.xlu0 %3352 }
 0x4a6   :  { %v4698_v11 = vpop.eup %4697  ;;  %4322 = vmatpush1.bf16.msra.mxu0 %v4321_v10  ;;  %v6874_v10 = vpack.c.bf16 %v6872_v52, %v6873_v41 }
 0x4a7   :  { %v4700_v39 = vpop.eup %4699  ;;  %4328 = vmatprep.subr.bf16.mxu1 %v4327_v44 }
 0x4a8   :  { %v4702_v61 = vpop.eup %4701  ;;  %4330 = vmatpush1.bf16.msra.mxu1 %v4329_v37 }
 0x4a9   :  { %v4704_v16 = vpop.eup %4703  ;;  %v6392_v14 = vpop.permute.xlu0 %3362 }
 0x4aa   :  { %v4706_v34 = vpop.eup %4705  ;;  %v4325_v47 = vpack.c.bf16 %v4704_v16, %v4696_v62 }
 0x4ab   :  { %v4708_v28 = vpop.eup %4707  ;;  %v4323_v23 = vpack.c.bf16 %v4706_v34, %v4698_v11 }
 0x4ac   :  { %v4710_v58 = vpop.eup %4709  ;;  %v4333_v5 = vpack.c.bf16 %v4708_v28, %v4700_v39 }
 0x4ad   :  { %4324 = vmatprep.subr.bf16.mxu0 %v4323_v23  ;;  %v4331_v54 = vpack.c.bf16 %v4710_v58, %v4702_v61  ;;  %v6394_v13 = vpop.permute.xlu0 %3586 }
 0x4ae   :  { %4326 = vmatpush1.bf16.msra.mxu0 %v4325_v47  ;;  %v6878_v47 = vld [vmem:[#allocation24_spill] sm:$0xff] }
 0x4af   :  { %4332 = vmatprep.subr.bf16.mxu1 %v4331_v54  ;;  %4336 = vmatprep.subr.bf16.mxu0 %v6864_v8 }
 0x4b0   :  { %4334 = vmatpush1.bf16.msra.mxu1 %v4333_v5 }
 0x4b1   :  { %4344 = vmatprep.subr.bf16.mxu1 %v6867_v7  ;;  %4135 = vmatmul.mubr.msk.f32.vlgmr.msra.gmra.mrb[40].mxu0 %vm361_vm0, %v4859_v15  ;;  %v6396_v56 = vpop.permute.xlu0 %3596 }
 0x4b2   :  { %4338 = vmatpush1.bf16.msra.mxu0 %v6870_v59  ;;  %1912 = vmatprep.mubr.f32.mxu0 %v6820_v19 }
 0x4b3   :  { %4139 = vmatmul.mubr.msk.f32.vlgmr.msra.gmra.mrb[40].mxu1 %vm361_vm0, %v4859_v15  ;;  %4340 = vmatprep.subr.bf16.mxu0 %v6871_v33  ;;  %v6879_v33 = vld [vmem:[#allocation15_spill] sm:$0xff] }
 0x4b4   :  { %4346 = vmatpush1.bf16.msra.mxu1 %v6874_v10  ;;  %1995 = vmatprep.mubr.f32.mxu1 %v6820_v19 }
 0x4b5   :  { %4348 = vmatprep.subr.bf16.mxu1 %v6875_v32  ;;  %4136 = vmatmul.mubr.msk.f32.gmra.mrb[42].mxu0 %vm361_vm0, %v5806_v60  ;;  %v1816_v51 = vpop.permute.xlu0 %1815 }
 0x4b6   :  { %4342 = vmatpush1.bf16.msra.mxu0 %v6876_v36  ;;  %1916 = vmatprep.mubr.f32.mxu0 %v6820_v19 }
 0x4b7   :  { %4140 = vmatmul.mubr.msk.f32.gmra.mrb[42].mxu1 %vm361_vm0, %v5806_v60  ;;  %v6354_v60 = vld [vmem:[%s6684_s1 + $0x28] sm:$0xff] }
 0x4b8   :  { %4350 = vmatpush1.bf16.msra.mxu1 %v6877_v31  ;;  %1999 = vmatprep.mubr.f32.mxu1 %v6820_v19 }
 0x4b9   :  { %4137 = vmatmul.mubr.msk.f32.gmra.mrb[44].mxu0 %vm361_vm0, %v5826_v45 }
 0x4ba   :  { %1920 = vmatprep.mubr.f32.mxu0 %v6820_v19 }
 0x4bb   :  { %4141 = vmatmul.mubr.msk.f32.gmra.mrb[44].mxu1 %vm361_vm0, %v5826_v45  ;;  %v6365_v45 = vld [vmem:[%s6684_s1 + $0x30] sm:$0xff] }
 0x4bc   :  { %2003 = vmatprep.mubr.f32.mxu1 %v6820_v19 }
 0x4bd   :  { %4138 = vmatmul.mubr.msk.f32.gmra.mrb[46].mxu0 %vm361_vm0, %v5842_v40 }
 0x4be   :  { %2441 = vmatprep.mubr.f32.mxu0 %v6820_v19 }
 0x4bf   :  { %4142 = vmatmul.mubr.msk.f32.gmra.mrb[46].mxu1 %vm361_vm0, %v5842_v40  ;;  %v6376_v40 = vld [vmem:[%s6684_s1 + $0x38] sm:$0xff] }
 0x4c0   :  { %2530 = vmatprep.mubr.f32.mxu1 %v6820_v19 }
 0x4c1   :  { %4151 = vmatmul.mubr.msk.f32.vlgmr.msra.gmra.mrb[48].mxu0 %vm361_vm0, %v5855_v18 }
 0x4c2   :  { %2447 = vmatprep.mubr.f32.mxu0 %v6820_v19 }
 0x4c3   :  { %4155 = vmatmul.mubr.msk.f32.vlgmr.msra.gmra.mrb[48].mxu1 %vm361_vm0, %v5855_v18  ;;  %v4227_v18 = vld [vmem:[%s6685_s2 + $0x60] sm:$0xff] }
 0x4c4   :  { %2536 = vmatprep.mubr.f32.mxu1 %v6820_v19  ;;  %3815 = vperm.xlu0 %4468, %v4227_v18  }
 0x4c5   :  { %4152 = vmatmul.mubr.msk.f32.gmra.mrb[50].mxu0 %vm361_vm0, %v6354_v60  ;;  %2815 = vperm.xlu1 %4470, %v4227_v18  }
 0x4c6   :  { %2453 = vmatprep.mubr.f32.mxu0 %v6820_v19 }
 0x4c7   :  { %4156 = vmatmul.mubr.msk.f32.gmra.mrb[50].mxu1 %vm361_vm0, %v6354_v60 }
 0x4c8   :  { %2542 = vmatprep.mubr.f32.mxu1 %v6820_v19 }
 0x4c9   :  { %4153 = vmatmul.mubr.msk.f32.gmra.mrb[52].mxu0 %vm361_vm0, %v6365_v45 }
 0x4ca   :  { %2459 = vmatprep.mubr.f32.mxu0 %v6820_v19 }
 0x4cb   :  { %4157 = vmatmul.mubr.msk.f32.gmra.mrb[52].mxu1 %vm361_vm0, %v6365_v45 }
 0x4cc   :  { %2548 = vmatprep.mubr.f32.mxu1 %v6820_v19 }
 0x4cd   :  { %4154 = vmatmul.mubr.msk.f32.gmra.mrb[54].mxu0 %vm361_vm0, %v6376_v40 }
 0x4ce   :  { %2675 = vmatprep.mubr.f32.mxu0 %v6820_v19 }
 0x4cf   :  { %4158 = vmatmul.mubr.msk.f32.gmra.mrb[54].mxu1 %vm361_vm0, %v6376_v40 }
 0x4d0   :  { %2764 = vmatprep.mubr.f32.mxu1 %v6820_v19 }
 0x584   :  { %v1908_v9 = vpop.f32.mrb[40].mxu0 }
 0x585   :  { %v1909_v0 = vadd.f32 %v1908_v9, %v1816_v51  ;;  %v1910_v26 = vpop.f32.mrb[41].mxu0  ;;  %v6880_v9 = vld [vmem:[#allocation22_spill] sm:$0xff] }
 0x586   :  { %v1991_v37 = vpop.f32.mrb[40].mxu1  ;;  %v1911_v62 = vadd.f32 %v1910_v26, %v1816_v51 }
 0x587   :  { %v1992_v44 = vadd.f32 %v1991_v37, %v1816_v51  ;;  %v1993_v11 = vpop.f32.mrb[41].mxu1 }
 0x588   :  { %v2012_v39 = vcombine.low %v1909_v0, %v1911_v62  ;;  %v1994_v61 = vadd.f32 %v1993_v11, %v1816_v51  ;;  %v1914_v16 = vpop.f32.mrb[42].mxu0 }
 0x589   :  { %v1915_v34 = vpop.f32.mrb[43].mxu0  ;;  %v6881_v16 = vld [vmem:[#allocation26_spill] sm:$0xff] }
 0x58a   :  { %v2020_v28 = vrot.slane %v2012_v39, %v6878_v47  ;;  %v2013_v23 = vcombine.low %v1992_v44, %v1994_v61  ;;  %v1997_v58 = vpop.f32.mrb[42].mxu1 }
 0x58b   :  { %v1998_v5 = vpop.f32.mrb[43].mxu1 }
 0x58c   :  { %v2027_v54 = vrot.slane %v2013_v23, %v6878_v47  ;;  %v1918_v2 = vpop.f32.mrb[44].mxu0 }
 0x58d   :  { %v1919_v4 = vpop.f32.mrb[45].mxu0 }
 0x58e   :  { %v2028_v8 = vcombine.low %v2020_v28, %v2027_v54  ;;  %v2001_v50 = vpop.f32.mrb[44].mxu1 }
 0x58f   :  { %v2002_v22 = vpop.f32.mrb[45].mxu1  ;;  %v6882_v50 = vld [vmem:[#allocation38_spill] sm:$0xff] }
 0x590   :  { %2031 = vst [vmem:[#allocation5 + $0x8] sm:$0xff] %v2028_v8  ;;  %v1922_v7 = vpop.f32.mrb[46].mxu0 }
 0x591   :  { %v1923_v15 = vpop.f32.mrb[47].mxu0 }
 0x592   :  { %v2005_v21 = vpop.f32.mrb[46].mxu1 }
 0x593   :  { %v2006_v49 = vpop.f32.mrb[47].mxu1 }
 0x594   :  { %v2443_v59 = vpop.f32.mrb[48].mxu0 }
 0x595   :  { %v2444_v52 = vadd.f32 %v2443_v59, %v6879_v33  ;;  %v2445_v41 = vpop.f32.mrb[49].mxu0 }
 0x596   :  { %v2532_v10 = vpop.f32.mrb[48].mxu1  ;;  %v2446_v32 = vadd.f32 %v2445_v41, %v6879_v33 }
 0x597   :  { %4711 = vtanh.f32 %v2444_v52  ;;  %v2533_v36 = vadd.f32 %v2532_v10, %v6879_v33  ;;  %v2534_v31 = vpop.f32.mrb[49].mxu1 }
 0x598   :  { %4713 = vtanh.f32 %v2446_v32  ;;  %v2535_v18 = vadd.f32 %v2534_v31, %v6879_v33  ;;  %v2449_v51 = vpop.f32.mrb[50].mxu0 }
 0x599   :  { %4715 = vtanh.f32 %v2533_v36  ;;  %v2450_v0 = vadd.f32 %v2449_v51, %v6880_v9  ;;  %v2451_v26 = vpop.f32.mrb[51].mxu0 }
 0x59a   :  { %4717 = vtanh.f32 %v2535_v18  ;;  %v2538_v37 = vpop.f32.mrb[50].mxu1  ;;  %v2452_v62 = vadd.f32 %v2451_v26, %v6880_v9 }
 0x59b   :  { %4719 = vtanh.f32 %v2450_v0  ;;  %v2539_v44 = vadd.f32 %v2538_v37, %v6880_v9  ;;  %v2540_v11 = vpop.f32.mrb[51].mxu1 }
 0x59c   :  { %4721 = vtanh.f32 %v2452_v62  ;;  %v2541_v39 = vadd.f32 %v2540_v11, %v6880_v9  ;;  %v2455_v61 = vpop.f32.mrb[52].mxu0 }
 0x59d   :  { %4723 = vtanh.f32 %v2539_v44  ;;  %v2456_v34 = vadd.f32 %v2455_v61, %v6881_v16  ;;  %v2457_v28 = vpop.f32.mrb[53].mxu0 }
 0x59e   :  { %4725 = vtanh.f32 %v2541_v39  ;;  %v2544_v23 = vpop.f32.mrb[52].mxu1  ;;  %v2458_v58 = vadd.f32 %v2457_v28, %v6881_v16 }
 0x59f   :  { %4727 = vtanh.f32 %v2456_v34  ;;  %v2545_v5 = vadd.f32 %v2544_v23, %v6881_v16  ;;  %v2546_v54 = vpop.f32.mrb[53].mxu1 }
 0x5a0   :  { %4729 = vtanh.f32 %v2458_v58  ;;  %v2547_v2 = vadd.f32 %v2546_v54, %v6881_v16  ;;  %v2461_v4 = vpop.f32.mrb[54].mxu0  ;;  %v6883_v54 = vld [vmem:[#allocation12_spill] sm:$0xff] }
 0x5a1   :  { %v4712_v8 = vpop.eup %4711  ;;  %4731 = vtanh.f32 %v2545_v5  ;;  %v2462_v22 = vadd.f32 %v2461_v4, %v6882_v50  ;;  %v2463_v7 = vpop.f32.mrb[55].mxu0  ;;  %v6885_v4 = vld [vmem:[#allocation30_spill] sm:$0xff] }
 0x5a2   :  { %v4714_v15 = vpop.eup %4713  ;;  %4733 = vtanh.f32 %v2547_v2  ;;  %v2550_v21 = vpop.f32.mrb[54].mxu1  ;;  %v2464_v49 = vadd.f32 %v2463_v7, %v6882_v50  ;;  %v6884_v2 = vld [vmem:[#allocation27_spill] sm:$0xff] }
 0x5a3   :  { %v4716_v59 = vpop.eup %4715  ;;  %4735 = vtanh.f32 %v2462_v22  ;;  %v2551_v33 = vadd.f32 %v2550_v21, %v6882_v50  ;;  %v2552_v52 = vpop.f32.mrb[55].mxu1 }
 0x5a4   :  { %v4718_v41 = vpop.eup %4717  ;;  %4737 = vtanh.f32 %v2464_v49  ;;  %v2553_v10 = vadd.f32 %v2552_v52, %v6882_v50  ;;  %v6887_v50 = vld [vmem:[#allocation13_spill] sm:$0xff] }
 0x5a5   :  { %v4720_v32 = vpop.eup %4719  ;;  %4739 = vtanh.f32 %v2551_v33  ;;  %v3313_v22 = vadd.f32 %v6887_v50, %v6228_v3  ;;  %v3314_v7 = vadd.f32 %v6887_v50, %v6230_v42  ;;  %v3316_v21 = vadd.f32 %v6887_v50, %v6235_v63 }
 0x5a6   :  { %v4722_v36 = vpop.eup %4721  ;;  %4741 = vtanh.f32 %v2553_v10  ;;  %v4353_v31 = vpack.c.bf16 %v4720_v32, %v4712_v8  ;;  %v6886_v8 = vld [vmem:[#allocation32_spill] sm:$0xff] }
 0x5a7   :  { %v4724_v18 = vpop.eup %4723  ;;  %v4351_v51 = vpack.c.bf16 %v4722_v36, %v4714_v15  ;;  %v3315_v15 = vadd.f32 %v6887_v50, %v6232_v35  ;;  %4743 = vtanh.f32 %v3313_v22  ;;  %v6888_v10 = vld [vmem:[#allocation16_spill] sm:$0xff] }
 0x5a8   :  { %v4726_v9 = vpop.eup %4725  ;;  %v4361_v0 = vpack.c.bf16 %v4724_v18, %v4716_v59  ;;  %4745 = vtanh.f32 %v3314_v7 }
 0x5a9   :  { %v4728_v26 = vpop.eup %4727  ;;  %4352 = vmatprep.subr.bf16.mxu0 %v4351_v51  ;;  %v4359_v37 = vpack.c.bf16 %v4726_v9, %v4718_v41  ;;  %4747 = vtanh.f32 %v3315_v15  ;;  %v6891_v15 = vld [vmem:[#allocation35_spill] sm:$0xff] }
 0x5aa   :  { %v4730_v62 = vpop.eup %4729  ;;  %4354 = vmatpush1.bf16.msra.mxu0 %v4353_v31  ;;  %4749 = vtanh.f32 %v3316_v21 }
 0x5ab   :  { %v4732_v44 = vpop.eup %4731  ;;  %4360 = vmatprep.subr.bf16.mxu1 %v4359_v37  ;;  %4751 = vtanh.f32 %v6275_v30  ;;  %v6889_v37 = vld [vmem:[#allocation34_spill] sm:$0xff] }
 0x5ac   :  { %v4734_v11 = vpop.eup %4733  ;;  %4362 = vmatpush1.bf16.msra.mxu1 %v4361_v0  ;;  %4753 = vtanh.f32 %v6277_v46 }
 0x5ad   :  { %v4736_v39 = vpop.eup %4735  ;;  %4755 = vtanh.f32 %v6279_v1 }
 0x5ae   :  { %v4738_v61 = vpop.eup %4737  ;;  %v4357_v16 = vpack.c.bf16 %v4736_v39, %v4728_v26  ;;  %4757 = vtanh.f32 %v6281_v29 }
 0x5af   :  { %v4740_v34 = vpop.eup %4739  ;;  %v4355_v28 = vpack.c.bf16 %v4738_v61, %v4730_v62 }
 0x5b0   :  { %v4742_v23 = vpop.eup %4741  ;;  %v4365_v58 = vpack.c.bf16 %v4740_v34, %v4732_v44 }
 0x5b1   :  { %4356 = vmatprep.subr.bf16.mxu0 %v4355_v28  ;;  %v4363_v5 = vpack.c.bf16 %v4742_v23, %v4734_v11  ;;  %v6452_v3 = vpop.eup %4743  ;;  %v6890_v23 = vld [vmem:[#allocation25_spill] sm:$0xff] }
 0x5b2   :  { %4358 = vmatpush1.bf16.msra.mxu0 %v4357_v16  ;;  %v6454_v42 = vpop.eup %4745 }
 0x5b3   :  { %4364 = vmatprep.subr.bf16.mxu1 %v4363_v5  ;;  %v6456_v35 = vpop.eup %4747 }
 0x5b4   :  { %4366 = vmatpush1.bf16.msra.mxu1 %v4365_v58  ;;  %v6458_v49 = vpop.eup %4749 }
 0x5b5   :  { %4167 = vmatmul.mubr.msk.f32.vlgmr.msra.gmra.mrb[56].mxu0 %vm361_vm0, %v6883_v54  ;;  %v6460_v63 = vpop.eup %4751 }
 0x5b6   :  { %2681 = vmatprep.mubr.f32.mxu0 %v6820_v19  ;;  %v6462_v59 = vpop.eup %4753  ;;  %v4389_v29 = vpack.c.bf16 %v6460_v63, %v6452_v3 }
 0x5b7   :  { %4171 = vmatmul.mubr.msk.f32.vlgmr.msra.gmra.mrb[56].mxu1 %vm361_vm0, %v6883_v54  ;;  %v6464_v33 = vpop.eup %4755  ;;  %v4387_v46 = vpack.c.bf16 %v6462_v59, %v6454_v42 }
 0x5b8   :  { %2770 = vmatprep.mubr.f32.mxu1 %v6820_v19  ;;  %v6466_v30 = vpop.eup %4757  ;;  %v4397_v52 = vpack.c.bf16 %v6464_v33, %v6456_v35 }
 0x5b9   :  { %4168 = vmatmul.mubr.msk.f32.gmra.mrb[58].mxu0 %vm361_vm0, %v6884_v2  ;;  %v4395_v1 = vpack.c.bf16 %v6466_v30, %v6458_v49 }
 0x5ba   :  { %2687 = vmatprep.mubr.f32.mxu0 %v6820_v19 }
 0x5bb   :  { %4172 = vmatmul.mubr.msk.f32.gmra.mrb[58].mxu1 %vm361_vm0, %v6884_v2 }
 0x5bc   :  { %2776 = vmatprep.mubr.f32.mxu1 %v6820_v19 }
 0x5bd   :  { %4169 = vmatmul.mubr.msk.f32.gmra.mrb[60].mxu0 %vm361_vm0, %v6885_v4 }
 0x5be   :  { %2693 = vmatprep.mubr.f32.mxu0 %v6820_v19 }
 0x5bf   :  { %4173 = vmatmul.mubr.msk.f32.gmra.mrb[60].mxu1 %vm361_vm0, %v6885_v4 }
 0x5c0   :  { %2782 = vmatprep.mubr.f32.mxu1 %v6820_v19 }
 0x5c1   :  { %4170 = vmatmul.mubr.msk.f32.gmra.mrb[62].mxu0 %vm361_vm0, %v6886_v8 }
 0x5c2   :  { %2906 = vmatprep.mubr.f32.mxu0 %v6820_v19 }
 0x5c3   :  { %4174 = vmatmul.mubr.msk.f32.gmra.mrb[62].mxu1 %vm361_vm0, %v6886_v8 }
 0x5c4   :  { %2989 = vmatprep.mubr.f32.mxu1 %v6820_v19 }
 0x688   :  { %v2677_v41 = vpop.f32.mrb[56].mxu0 }
 0x689   :  { %v2678_v32 = vadd.f32 %v2677_v41, %v6888_v10  ;;  %v2679_v36 = vpop.f32.mrb[57].mxu0 }
 0x68a   :  { %v2766_v31 = vpop.f32.mrb[56].mxu1  ;;  %v2680_v18 = vadd.f32 %v2679_v36, %v6888_v10 }
 0x68b   :  { %4759 = vtanh.f32 %v2678_v32  ;;  %v2767_v51 = vadd.f32 %v2766_v31, %v6888_v10  ;;  %v2768_v9 = vpop.f32.mrb[57].mxu1 }
 0x68c   :  { %4761 = vtanh.f32 %v2680_v18  ;;  %v2769_v0 = vadd.f32 %v2768_v9, %v6888_v10  ;;  %v2683_v26 = vpop.f32.mrb[58].mxu0 }
 0x68d   :  { %4763 = vtanh.f32 %v2767_v51  ;;  %v2684_v62 = vadd.f32 %v2683_v26, %v6889_v37  ;;  %v2685_v44 = vpop.f32.mrb[59].mxu0 }
 0x68e   :  { %4765 = vtanh.f32 %v2769_v0  ;;  %v2772_v11 = vpop.f32.mrb[58].mxu1  ;;  %v2686_v39 = vadd.f32 %v2685_v44, %v6889_v37 }
 0x68f   :  { %4767 = vtanh.f32 %v2684_v62  ;;  %v2773_v61 = vadd.f32 %v2772_v11, %v6889_v37  ;;  %v2774_v16 = vpop.f32.mrb[59].mxu1 }
 0x690   :  { %4769 = vtanh.f32 %v2686_v39  ;;  %v2775_v34 = vadd.f32 %v2774_v16, %v6889_v37  ;;  %v2689_v28 = vpop.f32.mrb[60].mxu0 }
 0x691   :  { %4771 = vtanh.f32 %v2773_v61  ;;  %v2690_v58 = vadd.f32 %v2689_v28, %v6890_v23  ;;  %v2691_v5 = vpop.f32.mrb[61].mxu0 }
 0x692   :  { %4773 = vtanh.f32 %v2775_v34  ;;  %v2778_v54 = vpop.f32.mrb[60].mxu1  ;;  %v2692_v2 = vadd.f32 %v2691_v5, %v6890_v23 }
 0x693   :  { %4775 = vtanh.f32 %v2690_v58  ;;  %v2779_v4 = vadd.f32 %v2778_v54, %v6890_v23  ;;  %v2780_v8 = vpop.f32.mrb[61].mxu1 }
 0x694   :  { %4777 = vtanh.f32 %v2692_v2  ;;  %v2781_v50 = vadd.f32 %v2780_v8, %v6890_v23  ;;  %v2695_v22 = vpop.f32.mrb[62].mxu0 }
 0x695   :  { %v4760_v7 = vpop.eup %4759  ;;  %4779 = vtanh.f32 %v2779_v4  ;;  %v2696_v21 = vadd.f32 %v2695_v22, %v6891_v15  ;;  %v2697_v41 = vpop.f32.mrb[63].mxu0 }
 0x696   :  { %v4762_v10 = vpop.eup %4761  ;;  %4781 = vtanh.f32 %v2781_v50  ;;  %v2784_v32 = vpop.f32.mrb[62].mxu1  ;;  %v2698_v36 = vadd.f32 %v2697_v41, %v6891_v15 }
 0x697   :  { %v4764_v31 = vpop.eup %4763  ;;  %4783 = vtanh.f32 %v2696_v21  ;;  %v2785_v18 = vadd.f32 %v2784_v32, %v6891_v15  ;;  %v2786_v51 = vpop.f32.mrb[63].mxu1  ;;  %v6512_v21 = vld [vmem:[%s6684_s1 + $0x68] sm:$0xff] }
 0x698   :  { %v4766_v9 = vpop.eup %4765  ;;  %4785 = vtanh.f32 %v2698_v36  ;;  %v2787_v0 = vadd.f32 %v2786_v51, %v6891_v15  ;;  %v6495_v15 = vld [vmem:[%s6684_s1 + $0x60] sm:$0xff]  ;;  %v6892_v36 = vld [vmem:[#allocation17_spill] sm:$0xff] }
 0x699   :  { %v4768_v26 = vpop.eup %4767  ;;  %4787 = vtanh.f32 %v2785_v18 }
 0x69a   :  { %v4770_v37 = vpop.eup %4769  ;;  %4789 = vtanh.f32 %v2787_v0  ;;  %v4369_v62 = vpack.c.bf16 %v4768_v26, %v4760_v7 }
 0x69b   :  { %v4772_v44 = vpop.eup %4771  ;;  %v4367_v11 = vpack.c.bf16 %v4770_v37, %v4762_v10 }
 0x69c   :  { %v4774_v39 = vpop.eup %4773  ;;  %v4377_v61 = vpack.c.bf16 %v4772_v44, %v4764_v31 }
 0x69d   :  { %v4776_v16 = vpop.eup %4775  ;;  %4368 = vmatprep.subr.bf16.mxu0 %v4367_v11  ;;  %v4375_v34 = vpack.c.bf16 %v4774_v39, %v4766_v9 }
 0x69e   :  { %v4778_v28 = vpop.eup %4777  ;;  %4370 = vmatpush1.bf16.msra.mxu0 %v4369_v62 }
 0x69f   :  { %v4780_v23 = vpop.eup %4779  ;;  %4376 = vmatprep.subr.bf16.mxu1 %v4375_v34 }
 0x6a0   :  { %v4782_v58 = vpop.eup %4781  ;;  %4378 = vmatpush1.bf16.msra.mxu1 %v4377_v61 }
 0x6a1   :  { %v4784_v5 = vpop.eup %4783 }
 0x6a2   :  { %v4786_v54 = vpop.eup %4785  ;;  %v4373_v2 = vpack.c.bf16 %v4784_v5, %v4776_v16 }
 0x6a3   :  { %v4788_v4 = vpop.eup %4787  ;;  %v4371_v8 = vpack.c.bf16 %v4786_v54, %v4778_v28 }
 0x6a4   :  { %v4790_v50 = vpop.eup %4789  ;;  %v4381_v22 = vpack.c.bf16 %v4788_v4, %v4780_v23 }
 0x6a5   :  { %4372 = vmatprep.subr.bf16.mxu0 %v4371_v8  ;;  %v4379_v7 = vpack.c.bf16 %v4790_v50, %v4782_v58  ;;  %v6893_v58 = vld [vmem:[#allocation23_spill] sm:$0xff] }
 0x6a6   :  { %4374 = vmatpush1.bf16.msra.mxu0 %v4373_v2 }
 0x6a7   :  { %4380 = vmatprep.subr.bf16.mxu1 %v4379_v7  ;;  %4384 = vmatprep.subr.bf16.mxu0 %v4383_v20 }
 0x6a8   :  { %4382 = vmatpush1.bf16.msra.mxu1 %v4381_v22 }
 0x6a9   :  { %4392 = vmatprep.subr.bf16.mxu1 %v4391_v12  ;;  %4183 = vmatmul.mubr.msk.f32.vlgmr.msra.gmra.mrb[64].mxu0 %vm361_vm0, %v6495_v15 }
 0x6aa   :  { %4386 = vmatpush1.bf16.msra.mxu0 %v4385_v38  ;;  %2912 = vmatprep.mubr.f32.mxu0 %v6820_v19  ;;  %v2816_v38 = vpop.permute.xlu1 %2815 }
 0x6ab   :  { %4187 = vmatmul.mubr.msk.f32.vlgmr.msra.gmra.mrb[64].mxu1 %vm361_vm0, %v6495_v15  ;;  %4388 = vmatprep.subr.bf16.mxu0 %v4387_v46 }
 0x6ac   :  { %4394 = vmatpush1.bf16.msra.mxu1 %v4393_v25  ;;  %2995 = vmatprep.mubr.f32.mxu1 %v6820_v19 }
 0x6ad   :  { %4396 = vmatprep.subr.bf16.mxu1 %v4395_v1  ;;  %4184 = vmatmul.mubr.msk.f32.gmra.mrb[66].mxu0 %vm361_vm0, %v6512_v21 }
 0x6ae   :  { %4390 = vmatpush1.bf16.msra.mxu0 %v4389_v29  ;;  %2916 = vmatprep.mubr.f32.mxu0 %v6820_v19 }
 0x6af   :  { %4188 = vmatmul.mubr.msk.f32.gmra.mrb[66].mxu1 %vm361_vm0, %v6512_v21 }
 0x6b0   :  { %4398 = vmatpush1.bf16.msra.mxu1 %v4397_v52  ;;  %2999 = vmatprep.mubr.f32.mxu1 %v6820_v19 }
 0x6b1   :  { %4185 = vmatmul.mubr.msk.f32.gmra.mrb[68].mxu0 %vm361_vm0, %v6535_v43 }
 0x6b2   :  { %2920 = vmatprep.mubr.f32.mxu0 %v6820_v19 }
 0x6b3   :  { %4189 = vmatmul.mubr.msk.f32.gmra.mrb[68].mxu1 %vm361_vm0, %v6535_v43 }
 0x6b4   :  { %3003 = vmatprep.mubr.f32.mxu1 %v6820_v19 }
 0x6b5   :  { %4186 = vmatmul.mubr.msk.f32.gmra.mrb[70].mxu0 %vm361_vm0, %v6549_v24 }
 0x6b6   :  { %3441 = vmatprep.mubr.f32.mxu0 %v6820_v19 }
 0x6b7   :  { %4190 = vmatmul.mubr.msk.f32.gmra.mrb[70].mxu1 %vm361_vm0, %v6549_v24 }
 0x6b8   :  { %3530 = vmatprep.mubr.f32.mxu1 %v6820_v19 }
 0x6b9   :  { %4199 = vmatmul.mubr.msk.f32.vlgmr.msra.gmra.mrb[72].mxu0 %vm361_vm0, %v4191_v6 }
 0x6ba   :  { %3447 = vmatprep.mubr.f32.mxu0 %v6820_v19 }
 0x6bb   :  { %4203 = vmatmul.mubr.msk.f32.vlgmr.msra.gmra.mrb[72].mxu1 %vm361_vm0, %v4191_v6 }
 0x6bc   :  { %3536 = vmatprep.mubr.f32.mxu1 %v6820_v19 }
 0x6bd   :  { %4200 = vmatmul.mubr.msk.f32.gmra.mrb[74].mxu0 %vm361_vm0, %v6354_v60 }
 0x6be   :  { %3453 = vmatprep.mubr.f32.mxu0 %v6820_v19 }
 0x6bf   :  { %4204 = vmatmul.mubr.msk.f32.gmra.mrb[74].mxu1 %vm361_vm0, %v6354_v60 }
 0x6c0   :  { %3542 = vmatprep.mubr.f32.mxu1 %v6820_v19 }
 0x6c1   :  { %4201 = vmatmul.mubr.msk.f32.gmra.mrb[76].mxu0 %vm361_vm0, %v6365_v45 }
 0x6c2   :  { %3459 = vmatprep.mubr.f32.mxu0 %v6820_v19 }
 0x6c3   :  { %4205 = vmatmul.mubr.msk.f32.gmra.mrb[76].mxu1 %vm361_vm0, %v6365_v45 }
 0x6c4   :  { %3548 = vmatprep.mubr.f32.mxu1 %v6820_v19 }
 0x6c5   :  { %4202 = vmatmul.mubr.msk.f32.gmra.mrb[78].mxu0 %vm361_vm0, %v6376_v40 }
 0x6c6   :  { %3675 = vmatprep.mubr.f32.mxu0 %v6820_v19 }
 0x6c7   :  { %4206 = vmatmul.mubr.msk.f32.gmra.mrb[78].mxu1 %vm361_vm0, %v6376_v40 }
 0x6c8   :  { %3764 = vmatprep.mubr.f32.mxu1 %v6820_v19 }
 0x77c   :  { %v2908_v57 = vpop.f32.mrb[64].mxu0 }
 0x77d   :  { %v2909_v53 = vadd.f32 %v2908_v57, %v2816_v38  ;;  %v2910_v55 = vpop.f32.mrb[65].mxu0 }
 0x77e   :  { %v2991_v17 = vpop.f32.mrb[64].mxu1  ;;  %v2911_v20 = vadd.f32 %v2910_v55, %v2816_v38 }
 0x77f   :  { %v2992_v27 = vadd.f32 %v2991_v17, %v2816_v38  ;;  %v2993_v25 = vpop.f32.mrb[65].mxu1 }
 0x780   :  { %v3012_v12 = vcombine.low %v2909_v53, %v2911_v20  ;;  %v2994_v60 = vadd.f32 %v2993_v25, %v2816_v38  ;;  %v2914_v45 = vpop.f32.mrb[66].mxu0 }
 0x781   :  { %v2915_v3 = vpop.f32.mrb[67].mxu0 }
 0x782   :  { %v3020_v42 = vrot.slane %v3012_v12, %v6878_v47  ;;  %v3013_v35 = vcombine.low %v2992_v27, %v2994_v60  ;;  %v2997_v49 = vpop.f32.mrb[66].mxu1 }
 0x783   :  { %v2998_v63 = vpop.f32.mrb[67].mxu1 }
 0x784   :  { %v3027_v40 = vrot.slane %v3013_v35, %v6878_v47  ;;  %v2918_v59 = vpop.f32.mrb[68].mxu0 }
 0x785   :  { %v2919_v33 = vpop.f32.mrb[69].mxu0 }
 0x786   :  { %v3028_v30 = vcombine.low %v3020_v42, %v3027_v40  ;;  %v3001_v46 = vpop.f32.mrb[68].mxu1 }
 0x787   :  { %v3002_v1 = vpop.f32.mrb[69].mxu1 }
 0x788   :  { %3031 = vst [vmem:[#allocation5 + $0x10] sm:$0xff] %v3028_v30  ;;  %v2922_v29 = vpop.f32.mrb[70].mxu0 }
 0x789   :  { %v2923_v52 = vpop.f32.mrb[71].mxu0 }
 0x78a   :  { %v3005_v41 = vpop.f32.mrb[70].mxu1 }
 0x78b   :  { %v3006_v10 = vpop.f32.mrb[71].mxu1 }
 0x78c   :  { %v3443_v32 = vpop.f32.mrb[72].mxu0 }
 0x78d   :  { %v3444_v31 = vadd.f32 %v3443_v32, %v6892_v36  ;;  %v3445_v18 = vpop.f32.mrb[73].mxu0 }
 0x78e   :  { %v3532_v51 = vpop.f32.mrb[72].mxu1  ;;  %v3446_v9 = vadd.f32 %v3445_v18, %v6892_v36  ;;  %v4208_v18 = vld [vmem:[%s6684_s1 + $0x48] sm:$0xff] }
 0x78f   :  { %4791 = vtanh.f32 %v3444_v31  ;;  %v3533_v0 = vadd.f32 %v3532_v51, %v6892_v36  ;;  %v3534_v26 = vpop.f32.mrb[73].mxu1  ;;  %v4207_v31 = vld [vmem:[%s6684_s1 + $0x40] sm:$0xff]  ;;  %v4209_v51 = vld [vmem:[%s6684_s1 + $0x50] sm:$0xff] }
 0x790   :  { %4793 = vtanh.f32 %v3446_v9  ;;  %v3535_v37 = vadd.f32 %v3534_v26, %v6892_v36  ;;  %v3449_v62 = vpop.f32.mrb[74].mxu0  ;;  %v4210_v9 = vld [vmem:[%s6684_s1 + $0x58] sm:$0xff]  ;;  %s4914_s1 = smov [#allocation5]  }
 0x791   :  { %4795 = vtanh.f32 %v3533_v0  ;;  %v3450_v44 = vadd.f32 %v3449_v62, %v6390_v48  ;;  %v3451_v11 = vpop.f32.mrb[75].mxu0  ;;  %v6894_v26 = vld [vmem:[#allocation11_spill] sm:$0xff]  ;;  %s4038_s19 = sshll.u32 %s4914_s1, 4  ;;  %s4039_s19 = int_to_ptr.vmem [resolvable:$true] %s4038_s19 }
 0x792   :  { %4797 = vtanh.f32 %v3535_v37  ;;  %v3538_v39 = vpop.f32.mrb[74].mxu1  ;;  %v3452_v61 = vadd.f32 %v3451_v11, %v6390_v48  ;;  %s4882_s20 = scalar_lea.vmem %s4039_s19, 512  ;;  %p4887_p9 = scmp.lt.s32.totalorder %s4039_s19, %s4039_s19 }
 0x793   :  { %4799 = vtanh.f32 %v3450_v44  ;;  %v3539_v16 = vadd.f32 %v3538_v39, %v6390_v48  ;;  %v3540_v34 = vpop.f32.mrb[75].mxu1  ;;  %p4883_p8 = scmp.ne.s32.totalorder %s4039_s19, %s4882_s20  ;;  %p4888_p10 = scmp.lt.s32.totalorder %s4882_s20, %s4882_s20 }
 0x794   :  { %4801 = vtanh.f32 %v3452_v61  ;;  %v3541_v28 = vadd.f32 %v3540_v34, %v6390_v48  ;;  %v3455_v23 = vpop.f32.mrb[76].mxu0 }
 0x795   :  { %4803 = vtanh.f32 %v3539_v16  ;;  %v3456_v5 = vadd.f32 %v3455_v23, %v6893_v58  ;;  %v3457_v54 = vpop.f32.mrb[77].mxu0  ;;  %p4889_p11 = por %p4888_p10, %p4887_p9 }
 0x796   :  { %4805 = vtanh.f32 %v3541_v28  ;;  %v3544_v2 = vpop.f32.mrb[76].mxu1  ;;  %v3458_v4 = vadd.f32 %v3457_v54, %v6893_v58 }
 0x797   :  { %4807 = vtanh.f32 %v3456_v5  ;;  %v3545_v8 = vadd.f32 %v3544_v2, %v6893_v58  ;;  %v3546_v50 = vpop.f32.mrb[77].mxu1  ;;  %p4890_p12 = pnand %p4889_p11, %p4883_p8 }
 0x798   :  { %4809 = vtanh.f32 %v3458_v4  ;;  %v3547_v22 = vadd.f32 %v3546_v50, %v6893_v58  ;;  %v3461_v7 = vpop.f32.mrb[78].mxu0  ;;  %v6895_v50 = vld [vmem:[#allocation14_spill] sm:$0xff] }
 0x799   :  { %v4792_v6 = vpop.eup %4791  ;;  %4811 = vtanh.f32 %v3545_v8  ;;  %v3462_v48 = vadd.f32 %v3461_v7, %v6392_v14  ;;  %v3463_v38 = vpop.f32.mrb[79].mxu0 }
 0x79a   :  { %v4794_v57 = vpop.eup %4793  ;;  %4813 = vtanh.f32 %v3547_v22  ;;  %v3550_v53 = vpop.f32.mrb[78].mxu1  ;;  %v3464_v55 = vadd.f32 %v3463_v38, %v6392_v14 }
 0x79b   :  { %v4796_v17 = vpop.eup %4795  ;;  %4815 = vtanh.f32 %v3462_v48  ;;  %v3551_v20 = vadd.f32 %v3550_v53, %v6392_v14  ;;  %v3552_v27 = vpop.f32.mrb[79].mxu1 }
 0x79c   :  { %v4798_v25 = vpop.eup %4797  ;;  %4817 = vtanh.f32 %v3464_v55  ;;  %v3553_v12 = vadd.f32 %v3552_v27, %v6392_v14 }
 0x79d   :  { %v4800_v60 = vpop.eup %4799  ;;  %4819 = vtanh.f32 %v3551_v20 }
 0x79e   :  { %v4802_v45 = vpop.eup %4801  ;;  %4821 = vtanh.f32 %v3553_v12  ;;  %v4401_v3 = vpack.c.bf16 %v4800_v60, %v4792_v6 }
 0x79f   :  { %v4804_v42 = vpop.eup %4803  ;;  %v4399_v35 = vpack.c.bf16 %v4802_v45, %v4794_v57 }
 0x7a0   :  { %v4806_v49 = vpop.eup %4805  ;;  %v4409_v63 = vpack.c.bf16 %v4804_v42, %v4796_v17 }
 0x7a1   :  { %v4808_v40 = vpop.eup %4807  ;;  %4400 = vmatprep.subr.bf16.mxu0 %v4399_v35  ;;  %v4407_v59 = vpack.c.bf16 %v4806_v49, %v4798_v25 }
 0x7a2   :  { %v4810_v33 = vpop.eup %4809  ;;  %4402 = vmatpush1.bf16.msra.mxu0 %v4401_v3 }
 0x7a3   :  { %v4812_v30 = vpop.eup %4811  ;;  %4408 = vmatprep.subr.bf16.mxu1 %v4407_v59 }
 0x7a4   :  { %v4814_v46 = vpop.eup %4813  ;;  %4410 = vmatpush1.bf16.msra.mxu1 %v4409_v63 }
 0x7a5   :  { %v4816_v1 = vpop.eup %4815 }
 0x7a6   :  { %v4818_v14 = vpop.eup %4817  ;;  %v4405_v29 = vpack.c.bf16 %v4816_v1, %v4808_v40 }
 0x7a7   :  { %v4820_v52 = vpop.eup %4819  ;;  %v4403_v41 = vpack.c.bf16 %v4818_v14, %v4810_v33 }
 0x7a8   :  { %v4822_v10 = vpop.eup %4821  ;;  %v4413_v32 = vpack.c.bf16 %v4820_v52, %v4812_v30 }
 0x7a9   :  { %4404 = vmatprep.subr.bf16.mxu0 %v4403_v41  ;;  %v4411_v36 = vpack.c.bf16 %v4822_v10, %v4814_v46 }
 0x7aa   :  { %4406 = vmatpush1.bf16.msra.mxu0 %v4405_v29 }
 0x7ab   :  { %4412 = vmatprep.subr.bf16.mxu1 %v4411_v36 }
 0x7ac   :  { %4414 = vmatpush1.bf16.msra.mxu1 %v4413_v32 }
 0x7ad   :  { %4215 = vmatmul.mubr.msk.f32.vlgmr.msra.gmra.mrb[80].mxu0 %vm361_vm0, %v4207_v31 }
 0x7ae   :  { %3681 = vmatprep.mubr.f32.mxu0 %v6820_v19 }
 0x7af   :  { %4219 = vmatmul.mubr.msk.f32.vlgmr.msra.gmra.mrb[80].mxu1 %vm361_vm0, %v4207_v31 }
 0x7b0   :  { %3770 = vmatprep.mubr.f32.mxu1 %v6820_v19 }
 0x7b1   :  { %4216 = vmatmul.mubr.msk.f32.gmra.mrb[82].mxu0 %vm361_vm0, %v4208_v18 }
 0x7b2   :  { %3687 = vmatprep.mubr.f32.mxu0 %v6820_v19 }
 0x7b3   :  { %4220 = vmatmul.mubr.msk.f32.gmra.mrb[82].mxu1 %vm361_vm0, %v4208_v18 }
 0x7b4   :  { %3776 = vmatprep.mubr.f32.mxu1 %v6820_v19 }
 0x7b5   :  { %4217 = vmatmul.mubr.msk.f32.gmra.mrb[84].mxu0 %vm361_vm0, %v4209_v51 }
 0x7b6   :  { %3693 = vmatprep.mubr.f32.mxu0 %v6820_v19 }
 0x7b7   :  { %4221 = vmatmul.mubr.msk.f32.gmra.mrb[84].mxu1 %vm361_vm0, %v4209_v51 }
 0x7b8   :  { %3782 = vmatprep.mubr.f32.mxu1 %v6820_v19 }
 0x7b9   :  { %4218 = vmatmul.mubr.msk.f32.gmra.mrb[86].mxu0 %vm361_vm0, %v4210_v9 }
 0x7ba   :  { %3906 = vmatprep.mubr.f32.mxu0 %v6820_v19 }
 0x7bb   :  { %4222 = vmatmul.mubr.msk.f32.gmra.mrb[86].mxu1 %vm361_vm0, %v4210_v9 }
 0x7bc   :  { %3989 = vmatprep.mubr.f32.mxu1 %v6820_v19 }
 0x880   :  { %v3677_v0 = vpop.f32.mrb[80].mxu0 }
 0x881   :  { %v3678_v37 = vadd.f32 %v3677_v0, %v6894_v26  ;;  %v3679_v62 = vpop.f32.mrb[81].mxu0 }
 0x882   :  { %v3766_v44 = vpop.f32.mrb[80].mxu1  ;;  %v3680_v11 = vadd.f32 %v3679_v62, %v6894_v26 }
 0x883   :  { %4823 = vtanh.f32 %v3678_v37  ;;  %v3767_v39 = vadd.f32 %v3766_v44, %v6894_v26  ;;  %v3768_v61 = vpop.f32.mrb[81].mxu1 }
 0x884   :  { %4825 = vtanh.f32 %v3680_v11  ;;  %v3769_v16 = vadd.f32 %v3768_v61, %v6894_v26  ;;  %v3683_v34 = vpop.f32.mrb[82].mxu0 }
 0x885   :  { %4827 = vtanh.f32 %v3767_v39  ;;  %v3684_v28 = vadd.f32 %v3683_v34, %v6394_v13  ;;  %v3685_v23 = vpop.f32.mrb[83].mxu0 }
 0x886   :  { %4829 = vtanh.f32 %v3769_v16  ;;  %v3772_v58 = vpop.f32.mrb[82].mxu1  ;;  %v3686_v5 = vadd.f32 %v3685_v23, %v6394_v13 }
 0x887   :  { %4831 = vtanh.f32 %v3684_v28  ;;  %v3773_v54 = vadd.f32 %v3772_v58, %v6394_v13  ;;  %v3774_v2 = vpop.f32.mrb[83].mxu1 }
 0x888   :  { %4833 = vtanh.f32 %v3686_v5  ;;  %v3775_v4 = vadd.f32 %v3774_v2, %v6394_v13  ;;  %v3689_v8 = vpop.f32.mrb[84].mxu0 }
 0x889   :  { %4835 = vtanh.f32 %v3773_v54  ;;  %v3690_v22 = vadd.f32 %v3689_v8, %v6895_v50  ;;  %v3691_v7 = vpop.f32.mrb[85].mxu0 }
 0x88a   :  { %4837 = vtanh.f32 %v3775_v4  ;;  %v3778_v6 = vpop.f32.mrb[84].mxu1  ;;  %v3692_v48 = vadd.f32 %v3691_v7, %v6895_v50 }
 0x88b   :  { %4839 = vtanh.f32 %v3690_v22  ;;  %v3779_v38 = vadd.f32 %v3778_v6, %v6895_v50  ;;  %v3780_v57 = vpop.f32.mrb[85].mxu1 }
 0x88c   :  { %4841 = vtanh.f32 %v3692_v48  ;;  %v3781_v53 = vadd.f32 %v3780_v57, %v6895_v50  ;;  %v3695_v55 = vpop.f32.mrb[86].mxu0 }
 0x88d   :  { %v4824_v17 = vpop.eup %4823  ;;  %4843 = vtanh.f32 %v3779_v38  ;;  %v3696_v13 = vadd.f32 %v3695_v55, %v6396_v56  ;;  %v3697_v20 = vpop.f32.mrb[87].mxu0 }
 0x88e   :  { %v4826_v27 = vpop.eup %4825  ;;  %4845 = vtanh.f32 %v3781_v53  ;;  %v3784_v25 = vpop.f32.mrb[86].mxu1  ;;  %v3698_v12 = vadd.f32 %v3697_v20, %v6396_v56 }
 0x88f   :  { %v4828_v60 = vpop.eup %4827  ;;  %4847 = vtanh.f32 %v3696_v13  ;;  %v3785_v45 = vadd.f32 %v3784_v25, %v6396_v56  ;;  %v3786_v3 = vpop.f32.mrb[87].mxu1 }
 0x890   :  { %v4830_v42 = vpop.eup %4829  ;;  %4849 = vtanh.f32 %v3698_v12  ;;  %v3787_v35 = vadd.f32 %v3786_v3, %v6396_v56 }
 0x891   :  { %v4832_v49 = vpop.eup %4831  ;;  %4851 = vtanh.f32 %v3785_v45 }
 0x892   :  { %v4834_v63 = vpop.eup %4833  ;;  %4853 = vtanh.f32 %v3787_v35  ;;  %v4417_v40 = vpack.c.bf16 %v4832_v49, %v4824_v17 }
 0x893   :  { %v4836_v59 = vpop.eup %4835  ;;  %v4415_v33 = vpack.c.bf16 %v4834_v63, %v4826_v27 }
 0x894   :  { %v4838_v30 = vpop.eup %4837  ;;  %v4425_v46 = vpack.c.bf16 %v4836_v59, %v4828_v60 }
 0x895   :  { %v4840_v1 = vpop.eup %4839  ;;  %4416 = vmatprep.subr.bf16.mxu0 %v4415_v33  ;;  %v4423_v14 = vpack.c.bf16 %v4838_v30, %v4830_v42 }
 0x896   :  { %v4842_v29 = vpop.eup %4841  ;;  %4418 = vmatpush1.bf16.msra.mxu0 %v4417_v40 }
 0x897   :  { %v4844_v52 = vpop.eup %4843  ;;  %4424 = vmatprep.subr.bf16.mxu1 %v4423_v14 }
 0x898   :  { %v4846_v41 = vpop.eup %4845  ;;  %4426 = vmatpush1.bf16.msra.mxu1 %v4425_v46 }
 0x899   :  { %v4848_v10 = vpop.eup %4847 }
 0x89a   :  { %v4850_v56 = vpop.eup %4849  ;;  %v4421_v32 = vpack.c.bf16 %v4848_v10, %v4840_v1 }
 0x89b   :  { %v4852_v36 = vpop.eup %4851  ;;  %v4419_v31 = vpack.c.bf16 %v4850_v56, %v4842_v29 }
 0x89c   :  { %v4854_v18 = vpop.eup %4853  ;;  %v4429_v51 = vpack.c.bf16 %v4852_v36, %v4844_v52 }
 0x89d   :  { %4420 = vmatprep.subr.bf16.mxu0 %v4419_v31  ;;  %v4427_v9 = vpack.c.bf16 %v4854_v18, %v4846_v41 }
 0x89e   :  { %4422 = vmatpush1.bf16.msra.mxu0 %v4421_v32 }
 0x89f   :  { %4428 = vmatprep.subr.bf16.mxu1 %v4427_v9 }
 0x8a0   :  { %4430 = vmatpush1.bf16.msra.mxu1 %v4429_v51 }
 0x8a1   :  { %4231 = vmatmul.mubr.msk.f32.vlgmr.msra.gmra.mrb[88].mxu0 %vm361_vm0, %v6495_v15 }
 0x8a2   :  { %3912 = vmatprep.mubr.f32.mxu0 %v6820_v19 }
 0x8a3   :  { %4235 = vmatmul.mubr.msk.f32.vlgmr.msra.gmra.mrb[88].mxu1 %vm361_vm0, %v6495_v15  ;;  %v3816_v15 = vpop.permute.xlu0 %3815 }
 0x8a4   :  { %3995 = vmatprep.mubr.f32.mxu1 %v6820_v19 }
 0x8a5   :  { %4232 = vmatmul.mubr.msk.f32.gmra.mrb[90].mxu0 %vm361_vm0, %v6512_v21 }
 0x8a6   :  { %3916 = vmatprep.mubr.f32.mxu0 %v6820_v19 }
 0x8a7   :  { %4236 = vmatmul.mubr.msk.f32.gmra.mrb[90].mxu1 %vm361_vm0, %v6512_v21 }
 0x8a8   :  { %3999 = vmatprep.mubr.f32.mxu1 %v6820_v19 }
 0x8a9   :  { %4233 = vmatmul.mubr.msk.f32.gmra.mrb[92].mxu0 %vm361_vm0, %v6535_v43 }
 0x8aa   :  { %3920 = vmatprep.mubr.f32.mxu0 %v6820_v19 }
 0x8ab   :  { %4237 = vmatmul.mubr.msk.f32.gmra.mrb[92].mxu1 %vm361_vm0, %v6535_v43 }
 0x8ac   :  { %4003 = vmatprep.mubr.f32.mxu1 %v6820_v19 }
 0x8ad   :  { %4234 = vmatmul.mubr.msk.f32.gmra.mrb[94].mxu0 %vm361_vm0, %v6549_v24 }
 0x8af   :  { %4238 = vmatmul.mubr.msk.f32.gmra.mrb[94].mxu1 %vm361_vm0, %v6549_v24 }
 0x974   :  { %v3908_v21 = vpop.f32.mrb[88].mxu0 }
 0x975   :  { %v3909_v0 = vadd.f32 %v3908_v21, %v3816_v15  ;;  %v3910_v26 = vpop.f32.mrb[89].mxu0 }
 0x976   :  { %v3991_v37 = vpop.f32.mrb[88].mxu1  ;;  %v3911_v62 = vadd.f32 %v3910_v26, %v3816_v15 }
 0x977   :  { %v3992_v44 = vadd.f32 %v3991_v37, %v3816_v15  ;;  %v3993_v11 = vpop.f32.mrb[89].mxu1 }
 0x978   :  { %v4012_v39 = vcombine.low %v3909_v0, %v3911_v62  ;;  %v3994_v61 = vadd.f32 %v3993_v11, %v3816_v15  ;;  %v3914_v16 = vpop.f32.mrb[90].mxu0 }
 0x979   :  { %v3915_v43 = vpop.f32.mrb[91].mxu0 }
 0x97a   :  { %v4020_v19 = vrot.slane %v4012_v39, %v6878_v47  ;;  %v4013_v34 = vcombine.low %v3992_v44, %v3994_v61  ;;  %v3997_v28 = vpop.f32.mrb[90].mxu1 }
 0x97b   :  { %v3998_v23 = vpop.f32.mrb[91].mxu1 }
 0x97c   :  { %v4027_v24 = vrot.slane %v4013_v34, %v6878_v47  ;;  %v3918_v58 = vpop.f32.mrb[92].mxu0 }
 0x97d   :  { %v3919_v5 = vpop.f32.mrb[93].mxu0 }
 0x97e   :  { %v4028_v54 = vcombine.low %v4020_v19, %v4027_v24  ;;  %v4001_v2 = vpop.f32.mrb[92].mxu1 }
 0x97f   :  { %v4002_v4 = vpop.f32.mrb[93].mxu1 }
 0x980   :  { %4031 = vst [vmem:[#allocation5 + $0x18] sm:$0xff] %v4028_v54  ;;  %v3922_v8 = vpop.f32.mrb[94].mxu0 }
 0x981   :  { %v3923_v50 = vpop.f32.mrb[95].mxu0 }
 0x982   :  { %4893 = shalt.err (!%p4890_p12)
}
 0x983   :  { %s4894_s23 = scalar_lea.hbm %s6686_s3, 512 }
 0x984   :  { %p4895_p13 = scmp.ne.s32.totalorder %s6686_s3, %s4894_s23  ;;  %p4898_p0 = scmp.lt.u32.totalorder %s4894_s23, %s6686_s3 }
 0x986   :  { %p4900_p1 = pnand %p4898_p0, %p4895_p13 }
 0x988   :  { %4903 = shalt.err (!%p4900_p1)
}
 0x989   :  { %4041 = dma.vmem_to_hbm [thread:$0]  %s4039_s19, 512, %s6686_s3, [#allocation4]   ;;  %v4005_v47 = vpop.f32.mrb[94].mxu1 }
 0x98a   :  { %v4006_v22 = vpop.f32.mrb[95].mxu1 }
 0x98b   :  { %4906 = dma.done.wait [#allocation4], 512  }
 0x98c   :  { %4907 = vsyncadd [#allocation4], 4294966784 }
 0x98d   :  { %4045 = vsyncpa [#allocation3], 1 }
 0x98e   :  { %4046 = vsyncpa [#allocation4], 1 }

</bundles_post_ra>
